<compile_context>
chip_gen: v7x
topology: tpu7x:2x2x1
jax: 0.10.0
libtpu: 0.0.40
codegen_flags: <defaults>
</compile_context>

<pallas_src>
from typing import Callable, Dict, Optional

import jax
import jax.numpy as jnp
from jax import lax
from jax.experimental import pallas as pl
from jax.experimental.pallas import tpu as pltpu


_TWO_PI = float(2.0 * jnp.pi)


def _round_up(x: int, m: int) -> int:
    return ((x + m - 1) // m) * m


# ----------------------------- Pallas kernel -------------------------------

def _sine_gaussian_kernel(p_ref, t_ref, hp_ref, hc_ref, c0_ref, s0_ref):
    """Compute one (tile_n, T_pad) row-block of hplus / hcross.

    p_ref  : (tile_n, 8) packed params [f, q, a, phi, cos_d, sin_d, 0, 0]
    t_ref  : (1, T_pad)  shared, resident time row
    hp_ref, hc_ref : (tile_n, T_pad) lane-dense outputs
    c0_ref, s0_ref : (tile_n, C) VMEM scratch with cos/sin of the first time
        chunk; subsequent chunks are rotated by the per-row constant
        (cos_d, sin_d) = (cos, sin)(2*pi*f*C*dt) on the VALU instead of
        issuing new sin/cos on the single EUP slot.
    """
    p = p_ref[...]
    f = p[:, 0:1]
    q = p[:, 1:2]
    a = p[:, 2:3]
    phi = p[:, 3:4]
    cos_d = p[:, 4:5]
    sin_d = p[:, 5:6]

    w = _TWO_PI * f                    # angular frequency, (tile_n, 1)
    inv_tau = w / q                    # 1/tau with tau = q / (2*pi*f)
    inv_tau2 = inv_tau * inv_tau

    C = c0_ref.shape[1]
    n_chunks = hp_ref.shape[1] // C

    # First time chunk: the only explicit sin/cos evaluation.
    t0 = t_ref[:, :C]                  # (1, C)
    theta0 = w * t0 + phi              # (tile_n, C)
    c0_ref[...] = jnp.cos(theta0)
    s0_ref[...] = jnp.sin(theta0)

    def body(j, carry):
        cj, sj = carry                 # (tile_n, 1): cos/sin of j*delta
        off = pl.multiple_of(j * C, 128)
        t_chunk = t_ref[:, pl.ds(off, C)]                       # (1, C)
        env = a * jnp.exp(-(t_chunk * t_chunk) * inv_tau2)      # (tile_n, C)
        c0 = c0_ref[...]
        s0 = s0_ref[...]
        # cos/sin(theta0 + j*delta) via angle addition (pure VALU work).
        cos_th = c0 * cj - s0 * sj
        sin_th = s0 * cj + c0 * sj
        hp_ref[:, pl.ds(off, C)] = (env * cos_th).astype(hp_ref.dtype)
        hc_ref[:, pl.ds(off, C)] = (env * sin_th).astype(hc_ref.dtype)
        cj_next = cj * cos_d - sj * sin_d
        sj_next = sj * cos_d + cj * sin_d
        return (cj_next, sj_next)

    init = (jnp.ones_like(f), jnp.zeros_like(f))
    lax.fori_loop(0, n_chunks, body, init, unroll=(n_chunks <= 8))


def sine_gaussian_waveform(frequency, quality, amplitude, phase, times, *,
                           out_dtype=jnp.float32,
                           use_pallas: Optional[bool] = None):
    """Evaluate the sine-Gaussian waveform.

    Args:
        frequency, quality, amplitude, phase: (N,) parameter vectors.
        times: (T,) uniformly spaced time grid (shared across waveforms).
        out_dtype: output dtype; pass jnp.bfloat16 to halve HBM store traffic
            if downstream tolerates it (math stays f32 in-kernel).
        use_pallas: None = auto (plain jnp below ~1M elements), True/False to
            force a path.
    Returns:
        (hplus, hcross), each of shape (N, T).
    """
    frequency = jnp.asarray(frequency, jnp.float32)
    quality = jnp.asarray(quality, jnp.float32)
    amplitude = jnp.asarray(amplitude, jnp.float32)
    phase = jnp.asarray(phase, jnp.float32)
    times = jnp.asarray(times, jnp.float32)

    N = frequency.shape[0]
    T = times.shape[0]

    if use_pallas is None:
        # Tiny problems: a single XLA fusion beats any Pallas tiling.
        use_pallas = N * T >= (1 << 20)

    if not use_pallas:
        f = frequency[:, None]
        q = quality[:, None]
        a = amplitude[:, None]
        phi = phase[:, None]
        t = times[None, :]
        w = _TWO_PI * f
        env = a * jnp.exp(-(t * t) * (w / q) ** 2)
        th = w * t + phi
        return ((env * jnp.cos(th)).astype(out_dtype),
                (env * jnp.sin(th)).astype(out_dtype))

    # ---- tiling: lane-dense over time, 1-D grid over waveforms ----------
    T128 = _round_up(T, 128)
    C = min(512, T128)                   # in-kernel time-chunk width
    T_pad = _round_up(T128, C)
    row_bytes = 4 * T_pad                # f32 math inside the kernel

    # Cap each output block at ~4 MiB so 2 outputs x 2 pipeline buffers plus
    # scratch stay far below v7x's 64 MiB physical VMEM.
    max_rows = max(8, ((4 << 20) // row_bytes) // 8 * 8)
    tile_n = min(256, max_rows)
    if N >= 16:
        # Prefer >= 2 row blocks so the grid can shard across v7x's two TCs.
        tile_n = min(tile_n, _round_up((N + 1) // 2, 8))
    else:
        tile_n = min(tile_n, _round_up(max(N, 1), 8))
    N_pad = _round_up(N, tile_n)

    # Per-row chunk-advance rotation: delta = 2*pi*f * (C * dt).
    dt = times[1] - times[0] if T > 1 else jnp.float32(0.0)
    delta = _TWO_PI * frequency * (C * dt)
    cos_d = jnp.cos(delta)
    sin_d = jnp.sin(delta)

    zeros = jnp.zeros_like(frequency)
    params = jnp.stack(
        [frequency, quality, amplitude, phase, cos_d, sin_d, zeros, zeros],
        axis=1)                                                  # (N, 8)
    if N_pad > N:
        # Dummy rows: f=q=1 (finite tau), a=0 so their output is zero.
        pad_row = jnp.array([1.0, 1.0, 0.0, 0.0, 1.0, 0.0, 0.0, 0.0],
                            jnp.float32)
        params = jnp.concatenate(
            [params, jnp.broadcast_to(pad_row, (N_pad - N, 8))], axis=0)

    t_row = jnp.pad(times, (0, T_pad - T)).reshape(1, T_pad)

    grid_n = N_pad // tile_n
    param_spec = pl.BlockSpec((tile_n, 8), lambda i: (i, 0))
    time_spec = pl.BlockSpec((1, T_pad), lambda i: (0, 0))   # resident row
    out_spec = pl.BlockSpec((tile_n, T_pad), lambda i: (i, 0))

    hp, hc = pl.pallas_call(
        _sine_gaussian_kernel,
        out_shape=(
            jax.ShapeDtypeStruct((N_pad, T_pad), out_dtype),
            jax.ShapeDtypeStruct((N_pad, T_pad), out_dtype),
        ),
        grid_spec=pltpu.PrefetchScalarGridSpec(
            num_scalar_prefetch=0,
            grid=(grid_n,),
            in_specs=[param_spec, time_spec],
            out_specs=[out_spec, out_spec],
            scratch_shapes=[pltpu.VMEM((tile_n, C), jnp.float32),
                            pltpu.VMEM((tile_n, C), jnp.float32)],
        ),
        compiler_params=pltpu.CompilerParams(
            dimension_semantics=("parallel",),
            vmem_limit_bytes=64 * 1024 * 1024),
    )(params, t_row)

    return hp[:N, :T], hc[:N, :T]


# ------------------------- Module-equivalent wrappers -----------------------

class ParameterSampler:
    """JAX equivalent of the torch ParameterSampler: holds callables
    sample_fn(key, shape) -> array for each parameter name."""

    def __init__(self, **parameters: Callable):
        self.parameters = parameters

    def __call__(self, key, N: int) -> Dict[str, jnp.ndarray]:
        keys = jax.random.split(key, len(self.parameters))
        return {
            name: sampler(k, (N,))
            for (name, sampler), k in zip(self.parameters.items(), keys)
        }


class WaveformGenerator:
    """JAX/Pallas equivalent of the torch WaveformGenerator forward pass."""

    def __init__(self, waveform: Callable, parameter_sampler: ParameterSampler):
        self.waveform = waveform
        self.parameter_sampler = parameter_sampler

    def __call__(self, key, N: int):
        parameters = self.parameter_sampler(key, N)
        return self.waveform(**parameters), parameters


# ----------------------------------- main -----------------------------------

if __name__ == "__main__":
    # Small but large enough that the Pallas tiling is meaningfully exercised:
    # 64 waveforms x 1024 samples (0.5 s at 2048 Hz).
    N = 64
    T = 1024
    sample_rate = 2048.0
    duration = T / sample_rate
    # uniform time grid centered at 0, shared across the batch
    times = (jnp.arange(T, dtype=jnp.float32) / sample_rate) - duration / 2.0

    # Deterministic "distributions" for the sampler (uniform ranges).
    def uniform(lo, hi):
        def sample(key, shape):
            return jax.random.uniform(key, shape, jnp.float32, lo, hi)
        return sample

    parameter_sampler = ParameterSampler(
        frequency=uniform(32.0, 256.0),
        quality=uniform(3.0, 10.0),
        amplitude=uniform(0.5, 2.0),
        phase=uniform(0.0, _TWO_PI),
    )

    def waveform(frequency, quality, amplitude, phase):
        # Force the Pallas path even at demo size so the kernel is exercised.
        return sine_gaussian_waveform(frequency, quality, amplitude, phase,
                                      times, use_pallas=True)

    generator = WaveformGenerator(waveform, parameter_sampler)

    key = jax.random.PRNGKey(0)
    (hplus, hcross), params = generator(key, N)
    jax.block_until_ready((hplus, hcross))

    # sanity: shapes and reference check in plain JAX
    assert hplus.shape == (N, T) and hcross.shape == (N, T)
    assert hplus.dtype == jnp.float32 and hcross.dtype == jnp.float32

    f = params["frequency"][:, None]
    q = params["quality"][:, None]
    a = params["amplitude"][:, None]
    phi = params["phase"][:, None]
    t = times[None, :]
    tau = q / (_TWO_PI * f)
    env = a * jnp.exp(-(t * t) / (tau * tau))
    ref_hp = env * jnp.cos(_TWO_PI * f * t + phi)
    ref_hc = env * jnp.sin(_TWO_PI * f * t + phi)
    # Tolerance covers f32 rounding of large carrier phases (|2*pi*f*t| up to
    # ~4e2 rad) along the slightly different kernel / reference paths.
    assert jnp.allclose(hplus, ref_hp, atol=1e-3, rtol=1e-3)
    assert jnp.allclose(hcross, ref_hc, atol=1e-3, rtol=1e-3)

    print("KERNEL_OK")
</pallas_src>

<mosaic_0001>
module attributes {stable_mosaic.version = 11 : i64} {
  func.func @_sine_gaussian_kernel(%arg0: i32, %arg1: memref<32x8xf32, #tpu.memory_space<vmem>>, %arg2: memref<1x1024xf32, #tpu.memory_space<vmem>>, %arg3: memref<32x1024xf32, #tpu.memory_space<vmem>>, %arg4: memref<32x1024xf32, #tpu.memory_space<vmem>>, %arg5: memref<32x512xf32, #tpu.memory_space<vmem>>, %arg6: memref<32x512xf32, #tpu.memory_space<vmem>>) attributes {dimension_semantics = [#tpu.dimension_semantics<parallel>], iteration_bounds = array<i64: 2>, scalar_prefetch = 0 : i64, scratch_operands = 2 : i64, tpu.core_type = #tpu.core_type<tc>, window_params = [{transform_indices = @transform_0, window_bounds = array<i64: 32, 8>}, {pipeline_mode = #tpu.pipeline_mode<synchronous>, transform_indices = @transform_1, window_bounds = array<i64: 1, 1024>}, {transform_indices = @transform_2, window_bounds = array<i64: 32, 1024>}, {transform_indices = @transform_3, window_bounds = array<i64: 32, 1024>}]} {
    %c0 = arith.constant 0 : index
    %c0_0 = arith.constant 0 : index
    %0 = vector.load %arg1[%c0, %c0_0] : memref<32x8xf32, #tpu.memory_space<vmem>>, vector<32x8xf32>
    %1 = vector.extract_strided_slice %0 {offsets = [0, 0], sizes = [32, 1], strides = [1, 1]} : vector<32x8xf32> to vector<32x1xf32>
    %2 = vector.extract_strided_slice %0 {offsets = [0, 1], sizes = [32, 1], strides = [1, 1]} : vector<32x8xf32> to vector<32x1xf32>
    %3 = vector.extract_strided_slice %0 {offsets = [0, 2], sizes = [32, 1], strides = [1, 1]} : vector<32x8xf32> to vector<32x1xf32>
    %4 = vector.extract_strided_slice %0 {offsets = [0, 3], sizes = [32, 1], strides = [1, 1]} : vector<32x8xf32> to vector<32x1xf32>
    %5 = vector.extract_strided_slice %0 {offsets = [0, 4], sizes = [32, 1], strides = [1, 1]} : vector<32x8xf32> to vector<32x1xf32>
    %6 = vector.extract_strided_slice %0 {offsets = [0, 5], sizes = [32, 1], strides = [1, 1]} : vector<32x8xf32> to vector<32x1xf32>
    %cst = arith.constant 6.28318548 : f32
    %7 = vector.broadcast %cst : f32 to vector<32x1xf32>
    %8 = arith.mulf %7, %1 : vector<32x1xf32>
    %9 = arith.divf %8, %2 : vector<32x1xf32>
    %10 = arith.mulf %9, %9 : vector<32x1xf32>
    %c0_1 = arith.constant 0 : index
    %c0_2 = arith.constant 0 : index
    %11 = vector.load %arg2[%c0_1, %c0_2] : memref<1x1024xf32, #tpu.memory_space<vmem>>, vector<1x512xf32>
    %12 = vector.broadcast %8 : vector<32x1xf32> to vector<32x512xf32>
    %13 = vector.broadcast %11 : vector<1x512xf32> to vector<32x512xf32>
    %14 = arith.mulf %12, %13 : vector<32x512xf32>
    %15 = vector.broadcast %4 : vector<32x1xf32> to vector<32x512xf32>
    %16 = arith.addf %14, %15 : vector<32x512xf32>
    %17 = math.cos %16 : vector<32x512xf32>
    %c0_3 = arith.constant 0 : index
    %c0_4 = arith.constant 0 : index
    %18 = vector.load %arg5[%c0_3, %c0_4] : memref<32x512xf32, #tpu.memory_space<vmem>>, vector<32x512xf32>
    tpu.vector_store %arg5[%c0_3, %c0_4], %17 {strides = array<i32>} : memref<32x512xf32, #tpu.memory_space<vmem>>, vector<32x512xf32>,
    %19 = math.sin %16 : vector<32x512xf32>
    %c0_5 = arith.constant 0 : index
    %c0_6 = arith.constant 0 : index
    %20 = vector.load %arg6[%c0_5, %c0_6] : memref<32x512xf32, #tpu.memory_space<vmem>>, vector<32x512xf32>
    tpu.vector_store %arg6[%c0_5, %c0_6], %19 {strides = array<i32>} : memref<32x512xf32, #tpu.memory_space<vmem>>, vector<32x512xf32>,
    %cst_7 = arith.constant 1.000000e+00 : f32
    %21 = vector.broadcast %cst_7 : f32 to vector<32x1xf32>
    %cst_8 = arith.constant 0.000000e+00 : f32
    %22 = vector.broadcast %cst_8 : f32 to vector<32x1xf32>
    %c0_i32 = arith.constant 0 : i32
    %c512_i32 = arith.constant 512 : i32
    %23 = arith.muli %c0_i32, %c512_i32 : i32
    %24 = tpu.assume_multiple %23, 128 : i32
    %c0_9 = arith.constant 0 : index
    %25 = arith.index_cast %24 : i32 to index
    %26 = vector.load %arg2[%c0_9, %25] : memref<1x1024xf32, #tpu.memory_space<vmem>>, vector<1x512xf32>
    %27 = arith.mulf %26, %26 : vector<1x512xf32>
    %cst_10 = arith.constant 0.000000e+00 : f32
    %28 = vector.broadcast %cst_10 : f32 to vector<1x512xf32>
    %29 = arith.subf %28, %27 : vector<1x512xf32>
    %30 = vector.broadcast %29 : vector<1x512xf32> to vector<32x512xf32>
    %31 = vector.broadcast %10 : vector<32x1xf32> to vector<32x512xf32>
    %32 = arith.mulf %30, %31 : vector<32x512xf32>
    %33 = math.exp %32 : vector<32x512xf32>
    %34 = vector.broadcast %3 : vector<32x1xf32> to vector<32x512xf32>
    %35 = arith.mulf %34, %33 : vector<32x512xf32>
    %c0_11 = arith.constant 0 : index
    %c0_12 = arith.constant 0 : index
    %36 = vector.load %arg5[%c0_11, %c0_12] : memref<32x512xf32, #tpu.memory_space<vmem>>, vector<32x512xf32>
    %c0_13 = arith.constant 0 : index
    %c0_14 = arith.constant 0 : index
    %37 = vector.load %arg6[%c0_13, %c0_14] : memref<32x512xf32, #tpu.memory_space<vmem>>, vector<32x512xf32>
    %38 = vector.broadcast %21 : vector<32x1xf32> to vector<32x512xf32>
    %39 = arith.mulf %36, %38 : vector<32x512xf32>
    %40 = vector.broadcast %22 : vector<32x1xf32> to vector<32x512xf32>
    %41 = arith.mulf %37, %40 : vector<32x512xf32>
    %42 = arith.subf %39, %41 : vector<32x512xf32>
    %43 = vector.broadcast %21 : vector<32x1xf32> to vector<32x512xf32>
    %44 = arith.mulf %37, %43 : vector<32x512xf32>
    %45 = vector.broadcast %22 : vector<32x1xf32> to vector<32x512xf32>
    %46 = arith.mulf %36, %45 : vector<32x512xf32>
    %47 = arith.addf %44, %46 : vector<32x512xf32>
    %48 = arith.mulf %35, %42 : vector<32x512xf32>
    %c0_15 = arith.constant 0 : index
    %49 = arith.index_cast %24 : i32 to index
    %50 = vector.load %arg3[%c0_15, %49] : memref<32x1024xf32, #tpu.memory_space<vmem>>, vector<32x512xf32>
    tpu.vector_store %arg3[%c0_15, %49], %48 {strides = array<i32>} : memref<32x1024xf32, #tpu.memory_space<vmem>>, vector<32x512xf32>,
    %51 = arith.mulf %35, %47 : vector<32x512xf32>
    %c0_16 = arith.constant 0 : index
    %52 = arith.index_cast %24 : i32 to index
    %53 = vector.load %arg4[%c0_16, %52] : memref<32x1024xf32, #tpu.memory_space<vmem>>, vector<32x512xf32>
    tpu.vector_store %arg4[%c0_16, %52], %51 {strides = array<i32>} : memref<32x1024xf32, #tpu.memory_space<vmem>>, vector<32x512xf32>,
    %54 = arith.mulf %21, %5 : vector<32x1xf32>
    %55 = arith.mulf %22, %6 : vector<32x1xf32>
    %56 = arith.subf %54, %55 : vector<32x1xf32>
    %57 = arith.mulf %22, %5 : vector<32x1xf32>
    %58 = arith.mulf %21, %6 : vector<32x1xf32>
    %59 = arith.addf %57, %58 : vector<32x1xf32>
    %c1_i32 = arith.constant 1 : i32
    %c512_i32_17 = arith.constant 512 : i32
    %60 = arith.muli %c1_i32, %c512_i32_17 : i32
    %61 = tpu.assume_multiple %60, 128 : i32
    %c0_18 = arith.constant 0 : index
    %62 = arith.index_cast %61 : i32 to index
    %63 = vector.load %arg2[%c0_18, %62] : memref<1x1024xf32, #tpu.memory_space<vmem>>, vector<1x512xf32>
    %64 = arith.mulf %63, %63 : vector<1x512xf32>
    %cst_19 = arith.constant 0.000000e+00 : f32
    %65 = vector.broadcast %cst_19 : f32 to vector<1x512xf32>
    %66 = arith.subf %65, %64 : vector<1x512xf32>
    %67 = vector.broadcast %66 : vector<1x512xf32> to vector<32x512xf32>
    %68 = vector.broadcast %10 : vector<32x1xf32> to vector<32x512xf32>
    %69 = arith.mulf %67, %68 : vector<32x512xf32>
    %70 = math.exp %69 : vector<32x512xf32>
    %71 = vector.broadcast %3 : vector<32x1xf32> to vector<32x512xf32>
    %72 = arith.mulf %71, %70 : vector<32x512xf32>
    %c0_20 = arith.constant 0 : index
    %c0_21 = arith.constant 0 : index
    %73 = vector.load %arg5[%c0_20, %c0_21] : memref<32x512xf32, #tpu.memory_space<vmem>>, vector<32x512xf32>
    %c0_22 = arith.constant 0 : index
    %c0_23 = arith.constant 0 : index
    %74 = vector.load %arg6[%c0_22, %c0_23] : memref<32x512xf32, #tpu.memory_space<vmem>>, vector<32x512xf32>
    %75 = vector.broadcast %56 : vector<32x1xf32> to vector<32x512xf32>
    %76 = arith.mulf %73, %75 : vector<32x512xf32>
    %77 = vector.broadcast %59 : vector<32x1xf32> to vector<32x512xf32>
    %78 = arith.mulf %74, %77 : vector<32x512xf32>
    %79 = arith.subf %76, %78 : vector<32x512xf32>
    %80 = vector.broadcast %56 : vector<32x1xf32> to vector<32x512xf32>
    %81 = arith.mulf %74, %80 : vector<32x512xf32>
    %82 = vector.broadcast %59 : vector<32x1xf32> to vector<32x512xf32>
    %83 = arith.mulf %73, %82 : vector<32x512xf32>
    %84 = arith.addf %81, %83 : vector<32x512xf32>
    %85 = arith.mulf %72, %79 : vector<32x512xf32>
    %c0_24 = arith.constant 0 : index
    %86 = arith.index_cast %61 : i32 to index
    %87 = vector.load %arg3[%c0_24, %86] : memref<32x1024xf32, #tpu.memory_space<vmem>>, vector<32x512xf32>
    tpu.vector_store %arg3[%c0_24, %86], %85 {strides = array<i32>} : memref<32x1024xf32, #tpu.memory_space<vmem>>, vector<32x512xf32>,
    %88 = arith.mulf %72, %84 : vector<32x512xf32>
    %c0_25 = arith.constant 0 : index
    %89 = arith.index_cast %61 : i32 to index
    %90 = vector.load %arg4[%c0_25, %89] : memref<32x1024xf32, #tpu.memory_space<vmem>>, vector<32x512xf32>
    tpu.vector_store %arg4[%c0_25, %89], %88 {strides = array<i32>} : memref<32x1024xf32, #tpu.memory_space<vmem>>, vector<32x512xf32>,
    %91 = arith.mulf %56, %5 : vector<32x1xf32>
    %92 = arith.mulf %59, %6 : vector<32x1xf32>
    %93 = arith.subf %91, %92 : vector<32x1xf32>
    %94 = arith.mulf %59, %5 : vector<32x1xf32>
    %95 = arith.mulf %56, %6 : vector<32x1xf32>
    %96 = arith.addf %94, %95 : vector<32x1xf32>
    %c2_i32 = arith.constant 2 : i32
    return
  }
  func.func @transform_0(%arg0: i32) -> (i32, i32) {
    %c0_i32 = arith.constant 0 : i32
    %c0_i32_0 = arith.constant 0 : i32
    return %arg0, %c0_i32 : i32, i32
  }
  func.func @transform_1(%arg0: i32) -> (i32, i32) {
    %c0_i32 = arith.constant 0 : i32
    %c0_i32_0 = arith.constant 0 : i32
    %c0_i32_1 = arith.constant 0 : i32
    return %c0_i32, %c0_i32_0 : i32, i32
  }
  func.func @transform_2(%arg0: i32) -> (i32, i32) {
    %c0_i32 = arith.constant 0 : i32
    %c0_i32_0 = arith.constant 0 : i32
    return %arg0, %c0_i32 : i32, i32
  }
  func.func @transform_3(%arg0: i32) -> (i32, i32) {
    %c0_i32 = arith.constant 0 : i32
    %c0_i32_0 = arith.constant 0 : i32
    return %arg0, %c0_i32 : i32, i32
  }
}

</mosaic_0001>

<bundles_post_ra>
// kernel: tpu_custom_call.1
= control target key start
LH: loop header
LB: loop body
LE: loop exit
PB: predicated region body
PF: predicated region fallthrough
CT: control target
= control target key end

     0   :  { %9 = vsyncpa [#allocation5], 0  ;;  %s8592_s0 = inlined_call_operand.hbm [shape: f32[64,8], index: 0, kind: input, shape index: {}]   ;;  %s8593_s1 = inlined_call_operand.hbm [shape: f32[1,1024], index: 1, kind: input, shape index: {}]   ;;  %s8594_s2 = inlined_call_operand.hbm [shape: f32[64,1024], index: 2, kind: output, shape index: {0}]   ;;  %s8595_s3 = inlined_call_operand.hbm [shape: f32[64,1024], index: 3, kind: output, shape index: {1}]  }
   0x1   :  { %11 = vsyncpa [#allocation5 + $0x1], 0 }
   0x2   :  { %12 = vsyncpa [#allocation8], 0 }
   0x3   :  { %13 = vsyncpa [#allocation6], 0 }
   0x4   :  { %15 = vsyncpa [#allocation6 + $0x1], 0 }
   0x5   :  { %16 = vsyncpa [#allocation11], 0 }
   0x6   :  { %18 = vsyncpa [#allocation11 + $0x1], 0  ;;  %s5156_s12 = smov 0   ;;  %s5158_s13 = smov 0  }
   0x7   :  { %s5160_s14 = smov 0   ;;  %s5162_s15 = smov 0  }
   0x8 LB: > { %s5177_s16 = sadd.s32 4294967295, %s5115_s15   ;;  %s4473_s17 = sadd.s32 4294967294, %s5115_s15   ;;  %s5115_s15 = sphi %s5162_s15, %s9167_s15   ;;  %s5111_s14 = sphi %s5160_s14, %s9166_s14   ;;  %s5107_s13 = sphi %s5158_s13, %s9165_s13   ;;  %s5103_s12 = sphi %s5156_s12, %s9164_s12  }
   0x9   : > { %s5181_s18 = sadd.s32 1, %s5115_s15   ;;  %s31_s19 = sadd.s32 1, %s5111_s14 }
   0xa   : > { %s28_s20 = ssub.s32 %s5115_s15, %s5181_s18  ;;  %p38_p0 = scmp.ne.s32.totalorder %s5111_s14, %s5107_s13 }
   0xb   : > { %p29_p1 = scmp.eq.s32.totalorder %s28_s20, 0  ;;  %p39_p2 = scmp.eq.s32.totalorder %s5115_s15, 0 }
   0xc   : > { %p44_p3 = scmp.ne.s32.totalorder %s5107_s13, %s5103_s12  ;;  %p8596_p4 = scmp.eq.s32.totalorder %s5177_s16, 0 }
   0xd   : > { %s5193_s21 = scalar_select %p29_p1, %s5111_s14, %s31_s19  }
   0xe   : > { %p5195_p5 = por %p39_p2, %p38_p0  ;;  %p5201_p6 = por %p8596_p4, %p44_p3 }
   0xf   : > { %p89_p7 = scmp.eq.s32.totalorder %s5177_s16, 1  ;;  %p95_p8 = scmp.eq.s32.totalorder %s4473_s17, 1 }
  0x10   : > { %s8754_s23 = scalar_select %p5201_p6, 1, 0 }
  0x11   : > { %p4474_p9 = scmp.ge.s32.totalorder %s5115_s15, 1  ;;  %p128_p10 = scmp.lt.s32.totalorder %s5115_s15, 3 }
  0x12   : > { %p5208_p11 = por %p89_p7, %p38_p0  ;;  %p5212_p12 = por %p95_p8, %p44_p3 }
  0x13   : > { %p5216_p13 = pnand %p4474_p9, %p128_p10  ;;  %s5117_s27 = smov [#allocation7]  }
  0x14   : > { %s8755_s24 = scalar_select %p5208_p11, 1, 0 }
  0x15   : > { %s8756_s25 = scalar_select %p5212_p12, 1, 0 }
  0x16   : > { %s8757_s26 = scalar_select %p5216_p13, 1, 0 }
  0x17   : > { %p4734_p2 = pneg %p5216_p13  ;;  %s141_s28 = sshll.u32 %s5117_s27, 4  ;;  %s142_s28 = int_to_ptr.vmem [resolvable:$true] %s141_s28 }
  0x18   : > { %p4750_p4 = scmp.lt.s32.totalorder %s5115_s15, 2  ;;  %p8758_p0 = scmp.eq.s32.totalorder %s5177_s16, 0 }
  0x19   : > { %s152_s30 = sand.u32 1, %s5111_s14   ;;  %s4955_s8 = scalar_lea.hbm %s8593_s1, 128 }
  0x1a   : > { %p5226_p7 = pnand %p4734_p2, %p8758_p0  ;;  %p5233_p3 = pnand %p4750_p4, %p5195_p5 }
  0x1b   : > { %s4477_s5 = sshll.u32 %s152_s30, 5  ;;  %p4956_p8 = scmp.ne.s32.totalorder %s8593_s1, %s4955_s8 }
  0x1c   : > { %s8760_s4 = scalar_select %p5233_p3, 1, 0 }
  0x1d   : > { %p4957_p9 = pneg %p5226_p7  ;;  %p4962_p4 = scmp.lt.u32.totalorder %s4955_s8, %s8593_s1 }
  0x1f   : > { %p4958_p10 = pnand %p4957_p9, %p4956_p8 }
  0x21   : > { %p4959_p2 = pneg %p4958_p10 }
  0x23   : > { %p4964_p5 = pnand %p4962_p4, %p4959_p2 }
  0x25   : > { %4967 = shalt.err (!%p4964_p5)
}
  0x26   : > { %s4968_s19 = scalar_lea.vmem %s142_s28, 128  ;;  %p4976_p11 = scmp.lt.s32.totalorder %s142_s28, %s142_s28 }
  0x27   : > { %p4969_p0 = scmp.ne.s32.totalorder %s142_s28, %s4968_s19  ;;  %p4977_p6 = scmp.lt.s32.totalorder %s4968_s19, %s4968_s19 }
  0x29   : > { %p4971_p1 = pnand %p4969_p0, %p4957_p9  ;;  %p4978_p13 = por %p4977_p6, %p4976_p11 }
  0x2b   : > { %p4972_p12 = pneg %p4971_p1 }
  0x2d   : > { %p4979_p3 = pnand %p4978_p13, %p4972_p12 }
  0x2f   : > { %4982 = shalt.err (!%p4979_p3)
}
  0x30   : > { %4737 = dma.hbm_to_vmem [thread:$0]  (!%p5226_p7), %s8593_s1, 128, %s142_s28, [#allocation8]  }
  0x31   : > { %s4655_s27 = sshll.u32 %s5115_s15, 9  ;;  %s156_s6 = scalar_lea.vmem [#allocation4], %s4477_s5 }
  0x32   : > { %s163_s7 = sshll.u32 %s156_s6, 4  ;;  %s5257_s10 = scalar_lea.hbm %s8592_s0, %s4655_s27  ;;  %s5259_s7 = int_to_ptr.vmem [resolvable:$true] %s163_s7 }
  0x33   : > { %s5261_s29 = scalar_lea.sflag [#allocation5], %s152_s30  ;;  %s4983_s11 = scalar_lea.hbm %s5257_s10, 512 }
  0x34   : > { %p4984_p6 = scmp.ne.s32.totalorder %s5257_s10, %s4983_s11  ;;  %p8761_p11 = scmp.ne.s32.totalorder %s8760_s4, 0 }
  0x35   : > { %s4988_s17 = scalar_lea.hbm %s8592_s0, 1024  ;;  %p4989_p7 = scmp.lt.u32.totalorder %s5257_s10, %s8592_s0 }
  0x36   : > { %p4985_p12 = pneg %p8761_p11  ;;  %p4990_p3 = scmp.lt.u32.totalorder %s4988_s17, %s4983_s11 }
  0x37   : > { %p4992_p9 = scmp.lt.u32.totalorder %s4983_s11, %s5257_s10 }
  0x38   : > { %p4986_p13 = pnand %p4985_p12, %p4984_p6  ;;  %p4991_p8 = por %p4990_p3, %p4989_p7 }
  0x3a   : > { %p4987_p1 = pneg %p4986_p13  ;;  %p4993_p10 = por %p4992_p9, %p4991_p8 }
  0x3c   : > { %p4994_p2 = pnand %p4993_p10, %p4987_p1 }
  0x3e   : > { %4997 = shalt.err (!%p4994_p2)
}
  0x3f   : > { %s4998_s30 = scalar_lea.vmem %s5259_s7, 512  ;;  %s5118_s22 = smov [#allocation4]  }
  0x40   : > { %p4999_p4 = scmp.ne.s32.totalorder %s5259_s7, %s4998_s30  ;;  %s5003_s27 = sshll.u32 %s5118_s22, 4  ;;  %s5004_s27 = int_to_ptr.vmem [resolvable:$false] %s5003_s27 }
  0x41   : > { %s5005_s6 = scalar_lea.vmem %s5004_s27, 1024  ;;  %p5006_p6 = scmp.lt.s32.totalorder %s5259_s7, %s5004_s27 }
  0x42   : > { %p5001_p5 = pnand %p4999_p4, %p4985_p12  ;;  %p5007_p13 = scmp.lt.s32.totalorder %s5005_s6, %s4998_s30 }
  0x44   : > { %p5002_p0 = pneg %p5001_p5  ;;  %p5008_p7 = por %p5007_p13, %p5006_p6 }
  0x46   : > { %p5009_p3 = pnand %p5008_p7, %p5002_p0 }
  0x48   : > { %5012 = shalt.err (!%p5009_p3)
}
  0x49   : > { %s5119_s8 = smov 128   ;;  %s5120_s9 = smov 8  }
  0x4a   : > { %4741 = dma.hbm_to_vmem [thread:$0]  (!%p8761_p11), %s5257_s10, 512, %s5259_s7, %s5261_s29, %s5119_s8, %s5119_s8, %s5120_s9  }
  0x4b   : > { %p8762_p12 = scmp.ne.s32.totalorder %s8757_s26, 0 }
  0x4d   : > { %175 = sbr.rel (%p8762_p12) target bundleno = 830 (0x33e), region = 28 }
  0x54   : > { %s5292_s11 = sand.u32 1, %s5107_s13   ;;  %p8763_p1 = scmp.ne.s32.totalorder %s8754_s23, 0 }
  0x55   : > { %s4481_s28 = sshll.u32 %s5292_s11, 5  ;;  %s178_s5 = scalar_lea.sflag [#allocation5], %s5292_s11 }
  0x56   : > { %s5296_s17 = scalar_lea.vmem [#allocation4], %s4481_s28 }
  0x57   : > { %5086 = dma.done.wait (%p8763_p1), %s178_s5, 512  }
  0x58   : > { %5088 = vsyncadd (%p8763_p1), %s178_s5, 4294966784  ;;  %p8764_p11 = scmp.eq.s32.totalorder %s5177_s16, 0 }
  0x5a   : > { %5090 = dma.done.wait (%p8764_p11), [#allocation8], 128   ;;  %p8765_p8 = pmov %p8764_p11 }
  0x5b   : > { %v8603_v0 = vmov 0   ;;  %v218_v1 = vld [vmem:[%s5296_s17 + $0x10] sm:$0xff]  ;;  %v216_v2 = vld [vmem:[%s5296_s17] sm:$0xff]  ;;  %s5122_s26 = smov 127   ;;  %v219_v3 = vld [vmem:[%s5296_s17 + $0x18] sm:$0xff]  ;;  %v5123_v9 = vmov 3   ;;  %v274_v18 = vlaneseq }
  0x5c   : > { %5092 = vsyncadd (%p8765_p8), [#allocation8], 4294967168  ;;  %4802 = vset.pattern.permute.xlu1 %v8603_v0  ;;  %4801 = vset.pattern.permute.xlu0 %v8603_v0  ;;  %v217_v4 = vld [vmem:[%s5296_s17 + $0x8] sm:$0xff]  ;;  %v5318_v6 = vmul.f32 6.2831855, %v216_v2  ;;  %v3970_v10 = vmul.f32 0.0, %v216_v2 }
  0x5d   : > { %232 = vrot.lane.b32.xlu1 %v218_v1, %s5122_s26  ;;  %228 = vrot.lane.b32.xlu0 %v216_v2, %s5122_s26  ;;  %v5316_v5 = vmul.f32 6.2831855, %v217_v4  ;;  %v5322_v7 = vmul.f32 6.2831855, %v218_v1  ;;  %v5324_v8 = vmul.f32 6.2831855, %v219_v3 }
  0x5e   : > { %8767 = vst [vmem:[#allocation17_spill] sm:$0xff] %v5318_v6  ;;  %v5329_v11 = vmul.f32 0.0, %v218_v1  ;;  %v8601_v12 = vmov 4   ;;  %v5334_v13 = vmul.f32 0.0, %v217_v4  ;;  %v5338_v14 = vmul.f32 0.0, %v219_v3  ;;  %s4483_s23 = sshll.u32 %s5292_s11, 8 }
  0x5f   : > { %8766 = vst [vmem:[#allocation16_spill] sm:$0xff] %v5316_v5  ;;  %8768 = vst [vmem:[#allocation18_spill] sm:$0xff] %v5322_v7  ;;  %v275_v20 = vshrl.u32 %v274_v18, 7  ;;  %v252_v27 = vld [vmem:[#allocation7] sm:$0xf]  ;;  %s8267_s4 = scalar_lea.vmem [#allocation9], %s4483_s23 }
  0x60   : > { %8769 = vst [vmem:[#allocation19_spill] sm:$0xff] %v5324_v8  ;;  %v8629_v54 = vmov 920167782   ;;  %v8608_v56 = vmov 1326507024   ;;  %s8277_s7 = scalar_lea.vmem [#allocation10], %s4483_s23 }
  0x61   : > { %234 = vrot.lane.b32.xlu1 %v219_v3, %s5122_s26  ;;  %230 = vrot.lane.b32.xlu0 %v217_v4, %s5122_s26  ;;  %v5352_v22 = vsub.s32 0, %v275_v20  ;;  %v5354_v23 = vsub.s32 1, %v275_v20  ;;  %v5356_v24 = vsub.s32 2, %v275_v20  ;;  %v5358_v25 = vsub.s32 3, %v275_v20  ;;  %s4657_s10 = sshll.u32 %s5177_s16, 12  ;;  %s4341_s29 = sshll.u32 %s8267_s4, 4  ;;  %s8501_s29 = int_to_ptr.vmem [resolvable:$true] %s4341_s29 }
  0x62   : > { %v8612_v60 = vmov 2102212464   ;;  %v8617_v62 = vmov 2475754826   ;;  %s8486_s30 = scalar_lea.hbm %s8594_s2, %s4657_s10  ;;  %s4358_s22 = sshll.u32 %s8277_s7, 4  ;;  %s8510_s22 = int_to_ptr.vmem [resolvable:$true] %s4358_s22 }
  0x63   : > { %v5365_v29 = vrot.slane %v252_v27, %v5352_v22  ;;  %v5368_v30 = vrot.slane %v252_v27, %v5354_v23  ;;  %v5371_v31 = vrot.slane %v252_v27, %v5356_v24  ;;  %v5374_v32 = vrot.slane %v252_v27, %v5358_v25  ;;  %s8508_s8 = scalar_lea.hbm %s8595_s3, %s4657_s10  ;;  %s4322_s9 = scalar_lea.sflag [#allocation6], %s5292_s11 }
  0x64   : > { %s5013_s28 = scalar_lea.vmem %s8501_s29, 4096  ;;  %p9161_p10 = scmp.ne.s32.totalorder %s8755_s24, 0 }
  0x65   : > { %260 = vperm.xlu1 %4802, %v5316_v5   ;;  %255 = vperm.xlu0 %4801, %v5318_v6   ;;  %8770 = vst [vmem:[#allocation20_spill] sm:$0xff] %v5374_v32  ;;  %v8781_v6 = vmov 2475754826   ;;  %p5014_p9 = scmp.ne.s32.totalorder %s8501_s29, %s5013_s28  ;;  %s5132_s16 = smov [#allocation9]  }
  0x66   : > { %s5017_s5 = sshll.u32 %s5132_s16, 4  ;;  %s5018_s5 = int_to_ptr.vmem [resolvable:$false] %s5017_s5 }
  0x67   : > { %p5015_p2 = pnand %p5014_p9, %p9161_p10  ;;  %p5020_p5 = scmp.lt.s32.totalorder %s8501_s29, %s5018_s5 }
  0x69   : > { %265 = vperm.xlu1 %4802, %v5322_v7   ;;  %270 = vperm.xlu0 %4801, %v5324_v8   ;;  %p5016_p4 = pneg %p5015_p2 }
  0x6d   : > { %4803 = vset.pattern.permute.xlu1 %v5123_v9  ;;  %4804 = vset.pattern.permute.xlu0 %v5123_v9 }
  0x6e   : > { %311 = vperm.xlu1 %4803, %v216_v2   ;;  %315 = vperm.xlu0 %4804, %v217_v4  }
  0x72   : > { %319 = vperm.xlu1 %4803, %v218_v1   ;;  %3978 = vrot.lane.b32.xlu0 %v3970_v10, %s5122_s26  ;;  %v8621_v1 = vmov 2131351028  }
  0x73   : > { %4805 = vset.pattern.permute.xlu0 %v8601_v12 }
  0x76   : > { %323 = vperm.xlu1 %4803, %v219_v3   ;;  %3982 = vrot.lane.b32.xlu0 %v5329_v11, %s5122_s26 }
  0x7a   : > { %3980 = vrot.lane.b32.xlu1 %v5334_v13, %s5122_s26 }
  0x7b   : > { %4806 = vset.pattern.permute.xlu1 %v8601_v12 }
  0x7e   : > { %3984 = vrot.lane.b32.xlu1 %v5338_v14, %s5122_s26 }
  0xcf   : > { %v5343_v15 = vpop.permute.xlu0 %228  ;;  %v5346_v17 = vpop.permute.xlu1 %232 }
  0xd0   : > { %v3994_v16 = vadd.f32 %v3970_v10, %v5343_v15  ;;  %v8615_v10 = vmov 683565275   ;;  %4814 = vrcp.f32 %v5346_v17 }
  0xd1   : > { %4816 = vrcp.f32 %v5343_v15 }
  0xd2   : > { %4157 = vperm.xlu0 %4805, %v3994_v16  }
  0xd3   : > { %v5348_v19 = vpop.permute.xlu1 %234  ;;  %v5360_v26 = vpop.permute.xlu0 %230 }
  0xd4   : > { %4818 = vrcp.f32 %v5348_v19 }
  0xd5   : > { %4820 = vrcp.f32 %v5360_v26 }
  0xe4   : > { %v5350_v21 = vpop.permute.xlu1 %260  ;;  %v256_v33 = vpop.permute.xlu0 %255 }
  0xe5   : > { %v294_v34 = vmul.f32 %v5365_v29, %v256_v33  ;;  %v295_v35 = vmul.f32 %v5368_v30, %v256_v33  ;;  %v296_v36 = vmul.f32 %v5371_v31, %v256_v33  ;;  %v297_v37 = vmul.f32 %v5374_v32, %v256_v33 }
  0xe8   : > { %v5362_v28 = vpop.permute.xlu1 %265 }
  0xed   : > { %v312_v38 = vpop.permute.xlu1 %311 }
  0xee   : > { %v5380_v39 = vadd.f32 %v312_v38, %v294_v34  ;;  %v5382_v40 = vadd.f32 %v312_v38, %v295_v35  ;;  %v5384_v41 = vadd.f32 %v312_v38, %v296_v36  ;;  %v5386_v42 = vadd.f32 %v312_v38, %v297_v37 }
  0xf0   : > { %8771 = vst [vmem:[#allocation21_spill] sm:$0xff] %v5380_v39  ;;  %8772 = vst [vmem:[#allocation22_spill] sm:$0xff] %v5382_v40  ;;  %v345_v43 = vand.u32 2139095040, %v5380_v39  ;;  %v448_v47 = vand.u32 2139095040, %v5382_v40  ;;  %v8607_v58 = vand.u32 2147483647, %v5380_v39 }
  0xf1   : > { %8773 = vst [vmem:[#allocation23_spill] sm:$0xff] %v5384_v41  ;;  %8774 = vst [vmem:[#allocation24_spill] sm:$0xff] %v5386_v42 }
  0xf2   : > { %v346_v44 = vshrl.u32 %v345_v43, 23  ;;  %v449_v49 = vshrl.u32 %v448_v47, 23  ;;  %v349_v33 = vand.u32 8388607, %v8607_v58 }
  0xf4   : > { %v4485_v45 = vadd.s32 4294967169, %v346_v44  ;;  %v4489_v51 = vadd.s32 4294967169, %v449_v49 }
  0xf6   : > { %v352_v46 = vadd.s32 1, %v4485_v45  ;;  %v455_v53 = vadd.s32 1, %v4489_v51  ;;  %v350_v45 = vor.u32 8388608, %v349_v33  ;;  %v551_v51 = vand.u32 2139095040, %v5384_v41 }
  0xf8   : > { %vm353_vm0 = vcmp.gt.s32.totalorder %v352_v46, 0  ;;  %vm456_vm1 = vcmp.gt.s32.totalorder %v455_v53, 0 }
  0xf9   : > { %v354_v48 = vsel %vm353_vm0, %v352_v46, 0  ;;  %v457_v34 = vsel %vm456_vm1, %v455_v53, 0 }
  0xfa   : > { %v356_v50 = vand.u32 31, %v354_v48  ;;  %v5393_v59 = vshrl.u32 %v354_v48, 5  ;;  %v459_v44 = vand.u32 31, %v457_v34 }
  0xfc   : > { %v357_v52 = vsub.s32 32, %v356_v50  ;;  %v368_v61 = vshll.u32 %v8612_v60, %v356_v50  ;;  %v371_v4 = vshll.u32 %v8629_v54, %v356_v50  ;;  %v359_v16 = vshll.u32 %v8615_v10, %v356_v50 }
  0xfd   : > { %v362_v18 = vshll.u32 %v8617_v62, %v356_v50  ;;  %v365_v20 = vshll.u32 %v8621_v1, %v356_v50  ;;  %vm377_vm2 = vcmp.lt.s32.totalorder %v5393_v59, 4  ;;  %vm374_vm3 = vcmp.lt.s32.totalorder %v5393_v59, 1 }
  0xfe   : > { %v369_v55 = vshrl.u32 %v8629_v54, %v357_v52  ;;  %v372_v57 = vshrl.u32 %v8608_v56, %v357_v52  ;;  %v360_v63 = vshrl.u32 %v8617_v62, %v357_v52  ;;  %v363_v2 = vshrl.u32 %v8621_v1, %v357_v52 }
  0xff   : > { %v366_v3 = vshrl.u32 %v8612_v60, %v357_v52  ;;  %vm376_vm4 = vcmp.lt.s32.totalorder %v5393_v59, 3  ;;  %vm375_vm5 = vcmp.lt.s32.totalorder %v5393_v59, 2  ;;  %v5421_v50 = vsub.s32 32, %v459_v44 }
 0x100   : > { %v370_v9 = vor.u32 %v369_v55, %v368_v61  ;;  %v373_v27 = vor.u32 %v372_v57, %v371_v4  ;;  %v361_v35 = vor.u32 %v360_v63, %v359_v16  ;;  %v364_v36 = vor.u32 %v363_v2, %v362_v18 }
 0x101   : > { %v367_v37 = vor.u32 %v366_v3, %v365_v20  ;;  %v390_v57 = vshll.u32 %v350_v45, 8  ;;  %v472_v2 = vshrl.u32 %v8629_v54, %v5421_v50  ;;  %v552_v3 = vshrl.u32 %v551_v51, 23 }
 0x102   : > { %v383_v38 = vsel %vm377_vm2, %v370_v9, 920167782  ;;  %v387_v43 = vsel %vm377_vm2, %v373_v27, 1326507024  ;;  %v382_v46 = vsel %vm374_vm3, %v361_v35, %v364_v36  ;;  %v475_v16 = vshrl.u32 %v8608_v56, %v5421_v50 }
 0x103   : > { %v384_v47 = vsel %vm376_vm4, %v367_v37, %v383_v38  ;;  %v386_v48 = vsel %vm374_vm3, %v364_v36, %v367_v37  ;;  %v388_v49 = vsel %vm376_vm4, %v370_v9, %v387_v43  ;;  %v379_v18 = vsel %vm377_vm2, %v367_v37, 2102212464 }
 0x104   : > { %v385_v53 = vsel %vm375_vm5, %v382_v46, %v384_v47  ;;  %v389_v55 = vsel %vm375_vm5, %v386_v48, %v388_v49  ;;  %v8606_v20 = vand.u32 2147483647, %v5382_v40  ;;  %v5442_v27 = vshrl.u32 %v457_v34, 5 }
 0x105   : > { %v5428_v61 = vmul.u32.u64.low %v390_v57, %v385_v53  ;;  %v5429_v63 = vmul.u32.u64.high %v390_v57, %v385_v53, %v5428_v61  ;;  %v5434_v4 = vmul.u32.u64.low %v390_v57, %v389_v55  ;;  %v5435_v9 = vmul.u32.u64.high %v390_v57, %v389_v55, %v5434_v4 }
 0x106   : > { %v471_v33 = vshll.u32 %v8612_v60, %v459_v44  ;;  %v463_v38 = vshrl.u32 %v8617_v62, %v5421_v50  ;;  %v466_v43 = vshrl.u32 %v8621_v1, %v5421_v50  ;;  %v469_v45 = vshrl.u32 %v8612_v60, %v5421_v50 }
 0x107   : > { %v474_v46 = vshll.u32 %v8629_v54, %v459_v44  ;;  %v358_v47 = vshrl.u32 %v8615_v10, %v357_v52  ;;  %v4493_v48 = vadd.s32 4294967169, %v552_v3  ;;  %v654_v34 = vand.u32 2139095040, %v5386_v42 }
 0x108   : > { %v473_v37 = vor.u32 %v472_v2, %v471_v33  ;;  %v462_v49 = vshll.u32 %v8615_v10, %v459_v44  ;;  %v465_v51 = vshll.u32 %v8617_v62, %v459_v44  ;;  %v468_v53 = vshll.u32 %v8621_v1, %v459_v44 }
 0x109   : > { %v476_v55 = vor.u32 %v475_v16, %v474_v46  ;;  %v378_v4 = vsel %vm374_vm3, %v358_v47, %v361_v35  ;;  %v380_v12 = vsel %vm376_vm4, %v364_v36, %v379_v18  ;;  %v452_v52 = vand.u32 8388607, %v8606_v20 }
 0x10a   : > { %v464_v2 = vor.u32 %v463_v38, %v462_v49  ;;  %v467_v3 = vor.u32 %v466_v43, %v465_v51  ;;  %v470_v33 = vor.u32 %v469_v45, %v468_v53  ;;  %vm480_vm6 = vcmp.lt.s32.totalorder %v5442_v27, 4 }
 0x10b   : > { %v400_v0 = vadd.s32 1, %v5429_v63  ;;  %v486_v44 = vsel %vm480_vm6, %v473_v37, 920167782  ;;  %v655_v16 = vshrl.u32 %v654_v34, 23  ;;  %vm399_vm7 = vc.u32 %v5435_v9, %v5428_v61 }
 0x10c   : > { %v490_v35 = vsel %vm480_vm6, %v476_v55, 1326507024  ;;  %v558_v36 = vadd.s32 1, %v4493_v48  ;;  %v381_v18 = vsel %vm375_vm5, %v378_v4, %v380_v12  ;;  %vm477_vm8 = vcmp.lt.s32.totalorder %v5442_v27, 1 }
 0x10d   : > { %vm479_vm9 = vcmp.lt.s32.totalorder %v5442_v27, 3  ;;  %v453_v38 = vor.u32 8388608, %v452_v52  ;;  %v485_v43 = vsel %vm477_vm8, %v464_v2, %v467_v3  ;;  %v401_v46 = vsel %vm399_vm7, %v400_v0, %v5429_v63 }
 0x10e   : > { %v487_v45 = vsel %vm479_vm9, %v470_v33, %v486_v44  ;;  %v489_v47 = vsel %vm477_vm8, %v467_v3, %v470_v33  ;;  %v491_v59 = vsel %vm479_vm9, %v473_v37, %v490_v35  ;;  %v4497_v12 = vadd.s32 4294967169, %v655_v16 }
 0x10f   : > { %v397_v48 = vmul.u32 %v390_v57, %v381_v18  ;;  %vm478_vm10 = vcmp.lt.s32.totalorder %v5442_v27, 2  ;;  %vm559_vm11 = vcmp.gt.s32.totalorder %v558_v36, 0  ;;  %v493_v53 = vshll.u32 %v453_v38, 8  ;;  %v5496_v57 = vpop.permute.xlu0 %270 }
 0x110   : > { %v488_v34 = vsel %vm478_vm10, %v485_v43, %v487_v45  ;;  %v492_v51 = vsel %vm478_vm10, %v489_v47, %v491_v59  ;;  %v560_v0 = vsel %vm559_vm11, %v558_v36, 0  ;;  %v661_v63 = vadd.s32 1, %v4497_v12  ;;  %8775 = vst [vmem:[#allocation25_spill] sm:$0xff] %v5496_v57 }
 0x111   : > { %v402_v49 = vadd.s32 %v401_v46, %v397_v48  ;;  %v5489_v55 = vmul.u32.u64.low %v493_v53, %v488_v34  ;;  %v5490_v4 = vmul.u32.u64.high %v493_v53, %v488_v34, %v5489_v55  ;;  %v562_v16 = vand.u32 31, %v560_v0 }
 0x112   : > { %v5493_v37 = vmul.u32.u64.low %v493_v53, %v492_v51  ;;  %v5494_v52 = vmul.u32.u64.high %v493_v53, %v492_v51, %v5493_v37  ;;  %v8605_v35 = vand.u32 2147483647, %v5384_v41  ;;  %vm662_vm12 = vcmp.gt.s32.totalorder %v661_v63, 0 }
 0x113   : > { %v403_v44 = vadd.s32 536870912, %v402_v49  ;;  %v482_v18 = vsel %vm480_vm6, %v470_v33, 2102212464  ;;  %v461_v36 = vshrl.u32 %v8615_v10, %v5421_v50  ;;  %v5505_v43 = vsub.s32 32, %v562_v16  ;;  %v5516_v12 = vpop.permute.xlu0 %315 }
 0x114   : > { %v663_v45 = vsel %vm662_vm12, %v661_v63, 0  ;;  %v5509_v46 = vand.u32 8388607, %v8605_v35  ;;  %v483_v59 = vsel %vm479_vm9, %v467_v3, %v482_v18  ;;  %v503_v33 = vadd.s32 1, %v5490_v4 }
 0x115   : > { %v5501_v38 = vshrl.u32 %v403_v44, 30  ;;  %v481_v47 = vsel %vm477_vm8, %v461_v36, %v464_v2  ;;  %v298_v50 = vmul.f32 %v5365_v29, %v5350_v21  ;;  %vm502_vm13 = vc.u32 %v5494_v52, %v5489_v55 }
 0x116   : > { %v665_v48 = vand.u32 31, %v663_v45  ;;  %v575_v51 = vshrl.u32 %v8629_v54, %v5505_v43  ;;  %v8614_v2 = vand.u32 2147483647, %v5386_v42  ;;  %v484_v3 = vsel %vm478_vm10, %v481_v47, %v483_v59 }
 0x117   : > { %8776 = vst [vmem:[#allocation26_spill] sm:$0xff] %v5501_v38  ;;  %v405_v34 = vshll.u32 %v5501_v38, 30  ;;  %v556_v63 = vor.u32 8388608, %v5509_v46  ;;  %v578_v37 = vshrl.u32 %v8608_v56, %v5505_v43  ;;  %v5532_v44 = vadd.f32 %v5516_v12, %v298_v50 }
 0x118   : > { %v504_v18 = vsel %vm502_vm13, %v503_v33, %v5490_v4  ;;  %v5535_v36 = vshrl.u32 %v560_v0, 5  ;;  %v566_v35 = vshrl.u32 %v8617_v62, %v5505_v43  ;;  %v574_v20 = vshll.u32 %v8612_v60, %v562_v16 }
 0x119   : > { %8777 = vst [vmem:[#allocation27_spill] sm:$0xff] %v5532_v44  ;;  %v569_v27 = vshrl.u32 %v8621_v1, %v5505_v43  ;;  %v572_v46 = vshrl.u32 %v8612_v60, %v5505_v43  ;;  %v577_v47 = vshll.u32 %v8629_v54, %v562_v16  ;;  %v5545_v59 = vsub.s32 32, %v665_v48 }
 0x11a   : > { %v5547_v50 = vsub.s32 %v402_v49, %v405_v34  ;;  %v500_v4 = vmul.u32 %v493_v53, %v484_v3  ;;  %v576_v0 = vor.u32 %v575_v51, %v574_v20  ;;  %v5551_v33 = vand.u32 8388607, %v8614_v2 }
 0x11b   : > { %v565_v58 = vshll.u32 %v8615_v10, %v562_v16  ;;  %v568_v56 = vshll.u32 %v8617_v62, %v562_v16  ;;  %v571_v7 = vshll.u32 %v8621_v1, %v562_v16  ;;  %v579_v8 = vor.u32 %v578_v37, %v577_v47 }
 0x11c   : > { %v5556_v60 = vadd.s32 %v504_v18, %v500_v4  ;;  %vm580_vm14 = vcmp.lt.s32.totalorder %v5535_v36, 1  ;;  %vm581_vm15 = vcmp.lt.s32.totalorder %v5535_v36, 2  ;;  %vm583_vm0 = vcmp.lt.s32.totalorder %v5535_v36, 4 }
 0x11d   : > { %v5561_v20 = vor.u32 %v566_v35, %v565_v58  ;;  %v5563_v49 = vor.u32 %v569_v27, %v568_v56  ;;  %v573_v53 = vor.u32 %v572_v46, %v571_v7  ;;  %v678_v34 = vshrl.u32 %v8629_v54, %v5545_v59 }
 0x11e   : > { %v408_v51 = vsub.s32 0, %v5547_v50  ;;  %vm582_vm1 = vcmp.lt.s32.totalorder %v5535_v36, 3  ;;  %v589_v16 = vsel %vm583_vm0, %v576_v0, 920167782  ;;  %v8778_v3 = vmov 1326507024  }
 0x11f   : > { %v681_v37 = vshrl.u32 %v8778_v3, %v5545_v59  ;;  %v593_v58 = vsel %vm583_vm0, %v579_v8, 1326507024  ;;  %v5575_v35 = vshrl.u32 %v663_v45, 5  ;;  %v8779_v56 = vmov 2102212464  }
 0x120   : > { %v677_v7 = vshll.u32 %v8779_v56, %v665_v48  ;;  %v757_v18 = vand.u32 2139095040, %v5532_v44  ;;  %v669_v27 = vshrl.u32 %v8617_v62, %v5545_v59  ;;  %v672_v46 = vshrl.u32 %v8621_v1, %v5545_v59 }
 0x121   : > { %v675_v47 = vshrl.u32 %v8779_v56, %v5545_v59  ;;  %v680_v4 = vshll.u32 %v8629_v54, %v665_v48  ;;  %v506_v2 = vadd.s32 536870912, %v5556_v60  ;;  %v588_v8 = vsel %vm580_vm14, %v5561_v20, %v5563_v49 }
 0x122   : > { %v590_v45 = vsel %vm582_vm1, %v573_v53, %v589_v16  ;;  %v679_v10 = vor.u32 %v678_v34, %v677_v7  ;;  %v8780_v62 = vmov 683565275   ;;  %v671_v1 = vshll.u32 %v8781_v6, %v665_v48 }
 0x123   : > { %v668_v5 = vshll.u32 %v8780_v62, %v665_v48  ;;  %v8782_v42 = vmov 2131351028   ;;  %v682_v40 = vor.u32 %v681_v37, %v680_v4  ;;  %v4486_v54 = vmin.u32 %v408_v51, %v5547_v50 }
 0x124   : > { %v674_v41 = vshll.u32 %v8782_v42, %v665_v48  ;;  %v592_v38 = vsel %vm580_vm14, %v5563_v49, %v573_v53  ;;  %v594_v39 = vsel %vm582_vm1, %v576_v0, %v593_v58  ;;  %v758_v57 = vshrl.u32 %v757_v18, 23 }
 0x125   : > { %v670_v32 = vor.u32 %v669_v27, %v668_v5  ;;  %v673_v16 = vor.u32 %v672_v46, %v671_v1  ;;  %vm686_vm2 = vcmp.lt.s32.totalorder %v5575_v35, 4  ;;  %v591_v7 = vsel %vm581_vm15, %v588_v8, %v590_v45 }
 0x126   : > { %v676_v34 = vor.u32 %v675_v47, %v674_v41  ;;  %v5605_v48 = vshll.u32 %v556_v63, 8  ;;  %v692_v51 = vsel %vm686_vm2, %v679_v10, 920167782  ;;  %v5609_v37 = vshrl.u32 %v506_v2, 30 }
 0x127   : > { %v595_v4 = vsel %vm581_vm15, %v592_v38, %v594_v39  ;;  %v659_v0 = vor.u32 8388608, %v5551_v33  ;;  %v696_v5 = vsel %vm686_vm2, %v682_v40, 1326507024  ;;  %v410_v41 = vclz %v4486_v54 }
 0x128   : > { %vm683_vm3 = vcmp.lt.s32.totalorder %v5575_v35, 1  ;;  %vm685_vm4 = vcmp.lt.s32.totalorder %v5575_v35, 3  ;;  %v4501_v1 = vadd.s32 4294967169, %v758_v57  ;;  %v508_v33 = vshll.u32 %v5609_v37, 30 }
 0x129   : > { %v5619_v63 = vmul.u32.u64.low %v5605_v48, %v591_v7  ;;  %v5620_v58 = vmul.u32.u64.high %v5605_v48, %v591_v7, %v5619_v63  ;;  %v691_v2 = vsel %vm683_vm3, %v670_v32, %v673_v16  ;;  %v693_v39 = vsel %vm685_vm4, %v676_v34, %v692_v51  ;;  %v5645_v7 = vpop.permute.xlu1 %319 }
 0x12a   : > { %v5628_v38 = vmul.u32.u64.low %v5605_v48, %v595_v4  ;;  %v5629_v40 = vmul.u32.u64.high %v5605_v48, %v595_v4, %v5628_v38  ;;  %v695_v54 = vsel %vm683_vm3, %v673_v16, %v676_v34  ;;  %v697_v57 = vsel %vm685_vm4, %v679_v10, %v696_v5  ;;  %v3686_v10 = vld [vmem:[#allocation7] sm:$0xf] }
 0x12b   : > { %vm684_vm5 = vcmp.lt.s32.totalorder %v5575_v35, 2  ;;  %v564_v18 = vshrl.u32 %v8780_v62, %v5505_v43  ;;  %v585_v27 = vsel %vm583_vm0, %v573_v53, 2102212464  ;;  %v764_v47 = vadd.s32 1, %v4501_v1 }
 0x12c   : > { %v694_v46 = vsel %vm684_vm5, %v691_v2, %v693_v39  ;;  %v698_v8 = vsel %vm684_vm5, %v695_v54, %v697_v57  ;;  %v699_v45 = vshll.u32 %v659_v0, 8  ;;  %v299_v51 = vmul.f32 %v5368_v30, %v5350_v21 }
 0x12d   : > { %v302_v43 = vmul.f32 %v5365_v29, %v5362_v28  ;;  %v4487_v4 = vadd.s32 4294967294, %v410_v41  ;;  %v584_v53 = vsel %vm580_vm14, %v564_v18, %v5561_v20  ;;  %v5655_v5 = vsub.s32 %v5556_v60, %v508_v33  ;;  %v3999_v20 = vld [vmem:[#allocation7 + $0x4] sm:$0xf] }
 0x12e   : > { %v586_v0 = vsel %vm582_vm1, %v5563_v49, %v585_v27  ;;  %v5660_v1 = vmul.u32.u64.low %v699_v45, %v694_v46  ;;  %v5661_v2 = vmul.u32.u64.high %v699_v45, %v694_v46, %v5660_v1  ;;  %vm765_vm6 = vcmp.gt.s32.totalorder %v764_v47, 0 }
 0x12f   : > { %v5664_v39 = vmul.u32.u64.low %v699_v45, %v698_v8  ;;  %v5665_v38 = vmul.u32.u64.high %v699_v45, %v698_v8, %v5664_v39  ;;  %v5668_v41 = vadd.f32 %v5645_v7, %v302_v43  ;;  %v3687_v54 = vmul.f32 %v3686_v10, %v3686_v10 }
 0x130   : > { %v606_v60 = vadd.s32 1, %v5620_v58  ;;  %v587_v57 = vsel %vm581_vm15, %v584_v53, %v586_v0  ;;  %vm605_vm7 = vc.u32 %v5629_v40, %v5619_v63  ;;  %v5676_v49 = vadd.f32 %v5516_v12, %v299_v51 }
 0x131   : > { %8783 = vst [vmem:[#allocation28_spill] sm:$0xff] %v5668_v41  ;;  %v511_v33 = vsub.s32 0, %v5655_v5  ;;  %v688_v18 = vsel %vm686_vm2, %v676_v34, 2102212464  ;;  %v766_v27 = vsel %vm765_vm6, %v764_v47, 0  ;;  %v4000_v46 = vmul.f32 %v3999_v20, %v3999_v20 }
 0x132   : > { %vm4488_vm8 = vcmp.lt.s32.totalorder %v4487_v4, 0  ;;  %v667_v8 = vshrl.u32 %v8780_v62, %v5545_v59  ;;  %v3688_v10 = vsub.f32 0.0, %v3687_v54  ;;  %v603_v36 = vmul.u32 %v5605_v48, %v587_v57 }
 0x133   : > { %v607_v43 = vsel %vm605_vm7, %v606_v60, %v5620_v58  ;;  %v689_v53 = vsel %vm685_vm4, %v673_v16, %v688_v18  ;;  %v768_v0 = vand.u32 31, %v766_v27  ;;  %v860_v34 = vand.u32 2139095040, %v5676_v49 }
 0x134   : > { %v687_v51 = vsel %vm683_vm3, %v667_v8, %v670_v32  ;;  %v5690_v47 = vsel %vm4488_vm8, 0, %v4487_v4  ;;  %v4490_v39 = vmin.u32 %v511_v33, %v5655_v5  ;;  %v709_v59 = vadd.s32 1, %v5661_v2 }
 0x135   : > { %v4001_v54 = vsub.f32 0.0, %v4000_v46  ;;  %v5694_v20 = vadd.s32 %v607_v43, %v603_v36  ;;  %vm708_vm9 = vc.u32 %v5665_v38, %v5660_v1  ;;  %v690_v32 = vsel %vm684_vm5, %v687_v51, %v689_v53 }
 0x136   : > { %v5701_v16 = vrot.slane %v3688_v10, %v5352_v22  ;;  %v418_v48 = vsub.s32 4294967266, %v5690_v47  ;;  %v5704_v58 = vsub.s32 32, %v768_v0  ;;  %v861_v4 = vshrl.u32 %v860_v34, 23 }
 0x137   : > { %v5707_v60 = vrot.slane %v3688_v10, %v5354_v23  ;;  %v5710_v57 = vrot.slane %v3688_v10, %v5356_v24  ;;  %v513_v33 = vclz %v4490_v39  ;;  %v710_v18 = vsel %vm708_vm9, %v709_v59, %v5661_v2 }
 0x138   : > { %8784 = vst [vmem:[#allocation29_spill] sm:$0xff] %v5701_v16  ;;  %v5714_v35 = vrot.slane %v3688_v10, %v5358_v25  ;;  %v5717_v46 = vrot.slane %v4001_v54, %v5352_v22  ;;  %v609_v8 = vadd.s32 536870912, %v5694_v20  ;;  %v706_v36 = vmul.u32 %v699_v45, %v690_v32 }
 0x139   : > { %8785 = vst [vmem:[#allocation30_spill] sm:$0xff] %v5707_v60  ;;  %8786 = vst [vmem:[#allocation31_spill] sm:$0xff] %v5710_v57  ;;  %v5722_v43 = vrot.slane %v4001_v54, %v5354_v23  ;;  %v5725_v51 = vrot.slane %v4001_v54, %v5356_v24  ;;  %v5728_v53 = vrot.slane %v4001_v54, %v5358_v25  ;;  %v419_v2 = vadd.s32 127, %v418_v48 }
 0x13a   : > { %8787 = vst [vmem:[#allocation32_spill] sm:$0xff] %v5714_v35  ;;  %8788 = vst [vmem:[#allocation33_spill] sm:$0xff] %v5717_v46  ;;  %v5730_v10 = vadd.s32 %v710_v18, %v706_v36  ;;  %v8792_v22 = vmov 920167782   ;;  %v4505_v39 = vadd.s32 4294967169, %v861_v4  ;;  %v398_v45 = vadd.s32 %v5428_v61, %v5435_v9 }
 0x13b   : > { %8789 = vst [vmem:[#allocation34_spill] sm:$0xff] %v5722_v43  ;;  %8790 = vst [vmem:[#allocation35_spill] sm:$0xff] %v5725_v51  ;;  %v781_v34 = vshrl.u32 %v8792_v22, %v5704_v58  ;;  %v414_v59 = vsub.s32 32, %v5690_v47  ;;  %v4491_v23 = vadd.s32 4294967294, %v513_v33  ;;  %v784_v24 = vshrl.u32 %v8778_v3, %v5704_v58 }
 0x13c   : > { %8791 = vst [vmem:[#allocation36_spill] sm:$0xff] %v5728_v53  ;;  %v5739_v32 = vshrl.u32 %v609_v8, 30  ;;  %v5742_v54 = vshrl.u32 %v766_v27, 5  ;;  %v780_v48 = vshll.u32 %v8779_v56, %v768_v0  ;;  %v772_v4 = vshrl.u32 %v8781_v6, %v5704_v58 }
 0x13d   : > { %v775_v61 = vshrl.u32 %v8782_v42, %v5704_v58  ;;  %v778_v9 = vshrl.u32 %v8779_v56, %v5704_v58  ;;  %v783_v33 = vshll.u32 %v8792_v22, %v768_v0  ;;  %v420_v18 = vshll.u32 %v419_v2, 23 }
 0x13e   : > { %v712_v8 = vadd.s32 536870912, %v5730_v10  ;;  %v782_v36 = vor.u32 %v781_v34, %v780_v48  ;;  %v867_v25 = vadd.s32 1, %v4505_v39  ;;  %v771_v27 = vshll.u32 %v8780_v62, %v768_v0 }
 0x13f   : > { %v774_v53 = vshll.u32 %v8781_v6, %v768_v0  ;;  %v777_v51 = vshll.u32 %v8782_v42, %v768_v0  ;;  %v785_v43 = vor.u32 %v784_v24, %v783_v33  ;;  %v416_v46 = vshrl.u32 %v398_v45, %v414_v59  ;;  %v5770_v59 = vpop.eup %4814 }
 0x140   : > { %vm4492_vm10 = vcmp.lt.s32.totalorder %v4491_v23, 0  ;;  %v611_v35 = vshll.u32 %v5739_v32, 30  ;;  %v8793_v57 = vand.u32 2147483647, %v5532_v44  ;;  %v773_v16 = vor.u32 %v772_v4, %v771_v27  ;;  %8795 = vst [vmem:[#allocation38_spill] sm:$0xff] %v5770_v59 }
 0x141   : > { %v776_v2 = vor.u32 %v775_v61, %v774_v53  ;;  %v779_v41 = vor.u32 %v778_v9, %v777_v51  ;;  %vm789_vm11 = vcmp.lt.s32.totalorder %v5742_v54, 4  ;;  %v5762_v34 = vadd.f32 %v5329_v11, %v5346_v17 }
 0x142   : > { %v761_v60 = vand.u32 8388607, %v8793_v57  ;;  %v415_v0 = vshll.u32 %v5547_v50, %v5690_v47  ;;  %v5766_v39 = vshrl.u32 %v712_v8, 30  ;;  %v795_v45 = vsel %vm789_vm11, %v782_v36, 920167782 }
 0x143   : > { %8794 = vst [vmem:[#allocation37_spill] sm:$0xff] %v5762_v34  ;;  %v421_v57 = vor.u32 4788187, %v420_v18  ;;  %v799_v51 = vsel %vm789_vm11, %v785_v43, 1326507024  ;;  %vm868_vm12 = vcmp.gt.s32.totalorder %v867_v25, 0  ;;  %v5779_v17 = vsub.s32 %v5694_v20, %v611_v35 }
 0x144   : > { %v417_v53 = vor.u32 %v416_v46, %v415_v0  ;;  %v516_v11 = vsel %vm4492_vm10, 0, %v4491_v23  ;;  %vm786_vm13 = vcmp.lt.s32.totalorder %v5742_v54, 1  ;;  %vm788_vm14 = vcmp.lt.s32.totalorder %v5742_v54, 3 }
 0x145   : > { %v762_v50 = vor.u32 8388608, %v761_v60  ;;  %v794_v47 = vsel %vm786_vm13, %v773_v16, %v776_v2  ;;  %v796_v15 = vsel %vm788_vm14, %v779_v41, %v795_v45  ;;  %v714_v43 = vshll.u32 %v5766_v39, 30 }
 0x146   : > { %v798_v46 = vsel %vm786_vm13, %v776_v2, %v779_v41  ;;  %v800_v23 = vsel %vm788_vm14, %v782_v36, %v799_v51  ;;  %v869_v24 = vsel %vm868_vm12, %v867_v25, 0  ;;  %v5793_v20 = vadd.f32 %v5338_v14, %v5348_v19 }
 0x147   : > { %v422_v60 = vand.u32 2147483647, %v421_v57  ;;  %vm787_vm15 = vcmp.lt.s32.totalorder %v5742_v54, 2  ;;  %v424_v35 = vcvt.s32.f32 %v417_v53  ;;  %v517_v48 = vsub.s32 32, %v516_v11 }
 0x148   : > { %8796 = vst [vmem:[#allocation39_spill] sm:$0xff] %v5793_v20  ;;  %v521_v4 = vsub.s32 4294967266, %v516_v11  ;;  %v797_v61 = vsel %vm787_vm15, %v794_v47, %v796_v15  ;;  %v614_v9 = vsub.s32 0, %v5779_v17  ;;  %v801_v25 = vsel %vm787_vm15, %v798_v46, %v800_v23  ;;  %v8800_v47 = vld [vmem:[#allocation20_spill] sm:$0xff] }
 0x149   : > { %v5801_v33 = vshll.u32 %v762_v50, 8  ;;  %v871_v18 = vand.u32 31, %v869_v24  ;;  %v5806_v14 = vadd.f32 %v5334_v13, %v5360_v26  ;;  %v501_v19 = vadd.s32 %v5489_v55, %v5494_v52  ;;  %v5826_v55 = vpop.eup %4816 }
 0x14a   : > { %v5811_v8 = vsub.s32 %v5730_v10, %v714_v43  ;;  %v300_v36 = vmul.f32 %v5371_v31, %v5350_v21  ;;  %v425_v27 = vmul.f32 %v424_v35, %v422_v60  ;;  %v791_v13 = vsel %vm789_vm11, %v779_v41, 2102212464  ;;  %8799 = vst [vmem:[#allocation42_spill] sm:$0xff] %v5826_v55  ;;  %v8801_v35 = vld [vmem:[#allocation25_spill] sm:$0xff] }
 0x14b   : > { %8797 = vst [vmem:[#allocation40_spill] sm:$0xff] %v5806_v14  ;;  %v5816_v0 = vmul.u32.u64.low %v5801_v33, %v797_v61  ;;  %v5817_v45 = vmul.u32.u64.high %v5801_v33, %v797_v61, %v5816_v0  ;;  %v519_v57 = vshrl.u32 %v501_v19, %v517_v48  ;;  %v522_v52 = vadd.s32 127, %v521_v4  ;;  %v8803_v4 = vld [vmem:[#allocation21_spill] sm:$0xff] }
 0x14c   : > { %v5823_v26 = vmul.u32.u64.low %v5801_v33, %v801_v25  ;;  %v5824_v51 = vmul.u32.u64.high %v5801_v33, %v801_v25, %v5823_v26  ;;  %v4494_v10 = vmin.u32 %v614_v9, %v5779_v17  ;;  %v770_v53 = vshrl.u32 %v8780_v62, %v5704_v58 }
 0x14d   : > { %8798 = vst [vmem:[#allocation41_spill] sm:$0xff] %v5816_v0  ;;  %v5831_v50 = vsub.s32 32, %v871_v18  ;;  %v5835_v15 = vmul.f32 %v8800_v47, %v5350_v21  ;;  %v5839_v41 = vmul.f32 %v5368_v30, %v5362_v28  ;;  %v5843_v43 = vmul.f32 %v5371_v31, %v5362_v28 }
 0x14e   : > { %v717_v46 = vsub.s32 0, %v5811_v8  ;;  %v5848_v23 = vmul.f32 %v8800_v47, %v5362_v28  ;;  %v518_v58 = vshll.u32 %v5655_v5, %v516_v11  ;;  %v790_v21 = vsel %vm786_vm13, %v770_v53, %v773_v16  ;;  %v5863_v28 = vpop.eup %4818 }
 0x14f   : > { %v792_v60 = vsel %vm788_vm14, %v776_v2, %v791_v13  ;;  %v5857_v48 = vmul.f32 %v5365_v29, %v8801_v35  ;;  %vm344_vm0 = vcmp.lt.s32.totalorder %v8803_v4, 0  ;;  %v426_v61 = vxor.u32 2147483648, %v425_v27  ;;  %8805 = vst [vmem:[#allocation21_spill] sm:$0xff] %v5863_v28 }
 0x150   : > { %v5861_v9 = vadd.f32 %v5516_v12, %v300_v36  ;;  %v8806_v5 = vand.u32 2147483647, %v8803_v4  ;;  %v520_v16 = vor.u32 %v519_v57, %v518_v58  ;;  %v523_v2 = vshll.u32 %v522_v52, 23 }
 0x151   : > { %8802 = vst [vmem:[#allocation20_spill] sm:$0xff] %v5857_v48  ;;  %v616_v25 = vclz %v4494_v10  ;;  %v884_v29 = vshrl.u32 %v8792_v22, %v5831_v50  ;;  %v4498_v19 = vmin.u32 %v717_v46, %v5811_v8  ;;  %v793_v36 = vsel %vm787_vm15, %v790_v21, %v792_v60  ;;  %v5884_v10 = vpop.eup %4820 }
 0x152   : > { %8804 = vst [vmem:[#allocation25_spill] sm:$0xff] %v5861_v9  ;;  %vm5867_vm1 = vcmp.le.f32.partialorder %v8806_v5, 0.7853982  ;;  %v887_v26 = vshrl.u32 %v8778_v3, %v5831_v50  ;;  %v812_v53 = vadd.s32 1, %v5817_v45  ;;  %v5880_v5 = vshrl.u32 %v869_v24, 5  ;;  %8809 = vst [vmem:[#allocation43_spill] sm:$0xff] %v5884_v10 }
 0x153   : > { %v883_v57 = vshll.u32 %v8779_v56, %v871_v18  ;;  %v886_v52 = vshll.u32 %v8792_v22, %v871_v18  ;;  %vm811_vm2 = vc.u32 %v5824_v51, %v5816_v0  ;;  %v875_v54 = vshrl.u32 %v8781_v6, %v5831_v50 }
 0x154   : > { %v878_v46 = vshrl.u32 %v8782_v42, %v5831_v50  ;;  %v881_v58 = vshrl.u32 %v8779_v56, %v5831_v50  ;;  %v427_v24 = vsel %vm344_vm0, %v426_v61, %v425_v27  ;;  %v524_v21 = vor.u32 4788187, %v523_v2 }
 0x155   : > { %v4495_v60 = vadd.s32 4294967294, %v616_v25  ;;  %v885_v13 = vor.u32 %v884_v29, %v883_v57  ;;  %v874_v20 = vshll.u32 %v8780_v62, %v871_v18  ;;  %v877_v14 = vshll.u32 %v8781_v6, %v871_v18 }
 0x156   : > { %v880_v34 = vshll.u32 %v8782_v42, %v871_v18  ;;  %v888_v59 = vor.u32 %v887_v26, %v886_v52  ;;  %v719_v28 = vclz %v4498_v19  ;;  %v809_v10 = vmul.u32 %v5801_v33, %v793_v36  ;;  %v8811_v18 = vld [vmem:[#allocation26_spill] sm:$0xff] }
 0x157   : > { %v813_v55 = vsel %vm811_vm2, %v812_v53, %v5817_v45  ;;  %v8810_v48 = vand.u32 2147483647, %v5676_v49  ;;  %v5903_v0 = vor.u32 %v875_v54, %v874_v20  ;;  %v5905_v27 = vor.u32 %v878_v46, %v877_v14 }
 0x158   : > { %v882_v61 = vor.u32 %v881_v58, %v880_v34  ;;  %vm892_vm3 = vcmp.lt.s32.totalorder %v5880_v5, 4  ;;  %v5910_v2 = vmul.f32 %v5368_v30, %v8801_v35  ;;  %v428_v25 = vsub.s32 4, %v8811_v18 }
 0x159   : > { %v864_v44 = vand.u32 8388607, %v8810_v48  ;;  %v525_v29 = vand.u32 2147483647, %v524_v21  ;;  %v898_v33 = vsel %vm892_vm3, %v885_v13, 920167782  ;;  %v430_v20 = vsel %vm5867_vm1, %v8803_v4, %v427_v24 }
 0x15a   : > { %v527_v45 = vcvt.s32.f32 %v520_v16  ;;  %v5918_v14 = vadd.s32 %v813_v55, %v809_v10  ;;  %v902_v34 = vsel %vm892_vm3, %v888_v59, 1326507024  ;;  %vm4496_vm4 = vcmp.lt.s32.totalorder %v4495_v60, 0 }
 0x15b   : > { %v4499_v48 = vadd.s32 4294967294, %v719_v28  ;;  %vm889_vm5 = vcmp.lt.s32.totalorder %v5880_v5, 1  ;;  %vm891_vm6 = vcmp.lt.s32.totalorder %v5880_v5, 3  ;;  %v865_v30 = vor.u32 8388608, %v864_v44 }
 0x15c   : > { %v897_v19 = vsel %vm889_vm5, %v5903_v0, %v5905_v27  ;;  %v899_v16 = vsel %vm891_vm6, %v882_v61, %v898_v33  ;;  %v963_v55 = vand.u32 2139095040, %v5861_v9  ;;  %v5933_v59 = vmul.f32 %v5371_v31, %v8801_v35 }
 0x15d   : > { %v528_v28 = vmul.f32 %v527_v45, %v525_v29  ;;  %v901_v36 = vsel %vm889_vm5, %v5905_v27, %v882_v61  ;;  %v903_v44 = vsel %vm891_vm6, %v885_v13, %v902_v34  ;;  %v429_v26 = vsel %vm344_vm0, %v428_v25, %v8811_v18  ;;  %v8815_v45 = vld [vmem:[#allocation22_spill] sm:$0xff] }
 0x15e   : > { %v5943_v53 = vsel %vm4496_vm4, 0, %v4495_v60  ;;  %v815_v57 = vadd.s32 536870912, %v5918_v14  ;;  %vm890_vm7 = vcmp.lt.s32.totalorder %v5880_v5, 2  ;;  %v5949_v31 = vmul.f32 %v8800_v47, %v8801_v35 }
 0x15f   : > { %4822 = vcosq.f32 %v430_v20  ;;  %vm4500_vm8 = vcmp.lt.s32.totalorder %v4499_v48, 0  ;;  %v900_v52 = vsel %vm890_vm7, %v897_v19, %v899_v16  ;;  %v904_v13 = vsel %vm890_vm7, %v901_v36, %v903_v44  ;;  %v8817_v16 = vld [vmem:[#allocation23_spill] sm:$0xff] }
 0x160   : > { %8812 = vst [vmem:[#allocation26_spill] sm:$0xff] %v5949_v31  ;;  %4824 = vsinq.f32 %v430_v20  ;;  %v5955_v10 = vshll.u32 %v865_v30, 8  ;;  %v964_v54 = vshrl.u32 %v963_v55, 23  ;;  %v431_v46 = vsel %vm5867_vm1, 0, %v429_v26 }
 0x161   : > { %v529_v58 = vxor.u32 2147483648, %v528_v28  ;;  %v531_v24 = vsub.s32 4, %v5609_v37  ;;  %v624_v47 = vsub.s32 4294967266, %v5943_v53  ;;  %v5961_v35 = vsel %vm4500_vm8, 0, %v4499_v48 }
 0x162   : > { %v5963_v21 = vshrl.u32 %v815_v57, 30  ;;  %v5966_v60 = vmul.u32.u64.low %v5955_v10, %v900_v52  ;;  %v5967_v18 = vmul.u32.u64.high %v5955_v10, %v900_v52, %v5966_v60  ;;  %v5976_v11 = vadd.f32 %v5645_v7, %v5839_v41 }
 0x163   : > { %v5971_v25 = vmul.u32.u64.low %v5955_v10, %v904_v13  ;;  %v5972_v29 = vmul.u32.u64.high %v5955_v10, %v904_v13, %v5971_v25  ;;  %v5980_v33 = vadd.f32 %v5645_v7, %v5843_v43  ;;  %v5982_v20 = vand.u32 3, %v431_v46 }
 0x164   : > { %8813 = vst [vmem:[#allocation44_spill] sm:$0xff] %v5976_v11  ;;  %vm447_vm9 = vcmp.lt.s32.totalorder %v8815_v45, 0  ;;  %v4509_v34 = vadd.s32 4294967169, %v964_v54  ;;  %v5987_v48 = vadd.f32 %v5645_v7, %v5848_v23  ;;  %vm550_vm10 = vcmp.lt.s32.totalorder %v8817_v16, 0 }
 0x165   : > { %8814 = vst [vmem:[#allocation45_spill] sm:$0xff] %v5980_v33  ;;  %v530_v30 = vsel %vm447_vm9, %v529_v58, %v528_v28  ;;  %v532_v19 = vsel %vm447_vm9, %v531_v24, %v5609_v37  ;;  %v5993_v41 = vadd.f32 %v5516_v12, %v5835_v15  ;;  %v625_v43 = vadd.s32 127, %v624_v47 }
 0x166   : > { %8816 = vst [vmem:[#allocation22_spill] sm:$0xff] %v5987_v48  ;;  %v634_v55 = vsub.s32 4, %v5739_v32  ;;  %v727_v36 = vsub.s32 4294967266, %v5961_v35  ;;  %v894_v44 = vsel %vm892_vm3, %v882_v61, 2102212464  ;;  %v817_v12 = vshll.u32 %v5963_v21, 30 }
 0x167   : > { %8818 = vst [vmem:[#allocation23_spill] sm:$0xff] %v5993_v41  ;;  %v8819_v7 = vand.u32 2147483647, %v8815_v45  ;;  %v8820_v23 = vand.u32 2147483647, %v8817_v16  ;;  %v873_v15 = vshrl.u32 %v8780_v62, %v5831_v50  ;;  %vm437_vm13 = vcmp.eq.s32.totalorder %v5982_v20, 0 }
 0x168   : > { %v620_v61 = vsub.s32 32, %v5943_v53  ;;  %v970_v57 = vadd.s32 1, %v4509_v34  ;;  %v604_v13 = vadd.s32 %v5619_v63, %v5629_v40  ;;  %v2099_v54 = vadd.s32 3, %v431_v46 }
 0x169   : > { %vm446_vm11 = vcmp.le.f32.partialorder %v8819_v7, 0.7853982  ;;  %vm6003_vm12 = vcmp.le.f32.partialorder %v8820_v23, 0.7853982  ;;  %v4823_v52 = vpop.eup %4822  ;;  %v893_v58 = vsel %vm889_vm5, %v873_v15, %v5903_v0  ;;  %v895_v50 = vsel %vm891_vm6, %v5905_v27, %v894_v44 }
 0x16a   : > { %v533_v28 = vsel %vm446_vm11, %v8815_v45, %v530_v30  ;;  %v534_v26 = vsel %vm446_vm11, 0, %v532_v19  ;;  %v4825_v24 = vpop.eup %4824  ;;  %v626_v47 = vshll.u32 %v625_v43, 23  ;;  %v635_v25 = vsel %vm550_vm10, %v634_v55, %v5739_v32 }
 0x16b   : > { %v728_v34 = vadd.s32 127, %v727_v36  ;;  %v915_v30 = vadd.s32 1, %v5967_v18  ;;  %4826 = vcosq.f32 %v533_v28  ;;  %v6026_v63 = vsub.s32 %v5918_v14, %v817_v12 }
 0x16c   : > { %vm914_vm14 = vc.u32 %v5972_v29, %v5966_v60  ;;  %v1066_v40 = vand.u32 2139095040, %v5993_v41  ;;  %4828 = vsinq.f32 %v533_v28  ;;  %v622_v0 = vshrl.u32 %v604_v13, %v620_v61 }
 0x16d   : > { %v896_v27 = vsel %vm890_vm7, %v893_v58, %v895_v50  ;;  %vm971_vm15 = vcmp.gt.s32.totalorder %v970_v57, 0  ;;  %v438_v46 = vxor.u32 2147483648, %v4825_v24  ;;  %v441_v32 = vxor.u32 2147483648, %v4823_v52 }
 0x16e   : > { %v621_v19 = vshll.u32 %v5779_v17, %v5943_v53  ;;  %v723_v43 = vsub.s32 32, %v5961_v35  ;;  %v627_v14 = vor.u32 4788187, %v626_v47  ;;  %v707_v55 = vadd.s32 %v5660_v1, %v5665_v38 }
 0x16f   : > { %v729_v36 = vshll.u32 %v728_v34, 23  ;;  %v916_v44 = vsel %vm914_vm14, %v915_v30, %v5967_v18  ;;  %vm434_vm0 = vweird.f32 %v8803_v4  ;;  %v820_v5 = vsub.s32 0, %v6026_v63 }
 0x170   : > { %v912_v7 = vmul.u32 %v5955_v10, %v896_v27  ;;  %v972_v23 = vsel %vm971_vm15, %v970_v57, 0  ;;  %v1067_v12 = vshrl.u32 %v1066_v40, 23  ;;  %vm440_vm1 = vcmp.eq.s32.totalorder %v5982_v20, 2 }
 0x171   : > { %v623_v17 = vor.u32 %v622_v0, %v621_v19  ;;  %v637_v53 = vsel %vm6003_vm12, 0, %v635_v25  ;;  %v2100_v15 = vand.u32 3, %v2099_v54  ;;  %v439_v1 = vsel %vm437_vm13, %v4823_v52, %v438_v46 }
 0x172   : > { %v442_v38 = vsel %vm440_vm1, %v441_v32, %v4825_v24  ;;  %v725_v18 = vshrl.u32 %v707_v55, %v723_v43  ;;  %v6047_v28 = vadd.s32 %v916_v44, %v912_v7  ;;  %vm436_vm2 = vcmp.lt.s32.totalorder %v5982_v20, 2 }
 0x173   : > { %v6050_v61 = vand.u32 3, %v534_v26  ;;  %v628_v10 = vand.u32 2147483647, %v627_v14  ;;  %v974_v57 = vand.u32 31, %v972_v23  ;;  %v724_v13 = vshll.u32 %v5811_v8, %v5961_v35 }
 0x174   : > { %v730_v58 = vor.u32 4788187, %v729_v36  ;;  %v4502_v50 = vmin.u32 %v820_v5, %v6026_v63  ;;  %v4513_v54 = vadd.s32 4294967169, %v1067_v12  ;;  %v443_v47 = vsel %vm436_vm2, %v439_v1, %v442_v38 }
 0x175   : > { %v630_v25 = vcvt.s32.f32 %v623_v17  ;;  %v2203_v34 = vadd.s32 3, %v534_v26  ;;  %v2307_v30 = vadd.s32 3, %v637_v53  ;;  %v6055_v40 = vpop.eup %4826  ;;  %v726_v0 = vor.u32 %v725_v18, %v724_v13 }
 0x176   : > { %vm2102_vm3 = vcmp.eq.s32.totalorder %v2100_v15, 0  ;;  %vm2105_vm4 = vcmp.eq.s32.totalorder %v2100_v15, 2  ;;  %v918_v20 = vadd.s32 536870912, %v6047_v28  ;;  %v6058_v27 = vpop.eup %4828  ;;  %v6060_v35 = vsub.s32 32, %v974_v57 }
 0x177   : > { %v631_v19 = vmul.f32 %v630_v25, %v628_v10  ;;  %v2104_v43 = vsel %vm2102_vm3, %v4823_v52, %v438_v46  ;;  %v2107_v8 = vsel %vm2105_vm4, %v441_v32, %v4825_v24  ;;  %v6062_v14 = vand.u32 3, %v637_v53  ;;  %v8824_v53 = vld [vmem:[#allocation24_spill] sm:$0xff] }
 0x178   : > { %v731_v55 = vand.u32 2147483647, %v730_v58  ;;  %v822_v36 = vclz %v4502_v50  ;;  %v1073_v26 = vadd.s32 1, %v4513_v54  ;;  %v6066_v44 = vsel %vm434_vm0, nan, %v443_v47 }
 0x179   : > { %8823 = vst [vmem:[#allocation46_spill] sm:$0xff] %v6066_v44  ;;  %vm2101_vm5 = vcmp.lt.s32.totalorder %v2100_v15, 2  ;;  %v6068_v5 = vand.u32 3, %v2203_v34  ;;  %v6070_v7 = vand.u32 3, %v2307_v30  ;;  %vm543_vm6 = vcmp.eq.s32.totalorder %v6050_v61, 2 }
 0x17a   : > { %v544_v52 = vxor.u32 2147483648, %v6055_v40  ;;  %v733_v24 = vcvt.s32.f32 %v726_v0  ;;  %v2108_v46 = vsel %vm2101_vm5, %v2104_v43, %v2107_v8  ;;  %v6074_v32 = vshrl.u32 %v918_v20, 30 }
 0x17b   : > { %v541_v12 = vxor.u32 2147483648, %v6058_v27  ;;  %v632_v17 = vxor.u32 2147483648, %v631_v19  ;;  %vm653_vm7 = vcmp.lt.s32.totalorder %v8824_v53, 0  ;;  %v737_v1 = vsub.s32 4, %v5766_v39 }
 0x17c   : > { %v987_v15 = vshrl.u32 %v8792_v22, %v6060_v35  ;;  %v734_v38 = vmul.f32 %v733_v24, %v731_v55  ;;  %v4503_v18 = vadd.s32 4294967294, %v822_v36  ;;  %v8652_v10 = vand.u32 2147483647, %v5861_v9 }
 0x17d   : > { %vm1074_vm8 = vcmp.gt.s32.totalorder %v1073_v26, 0  ;;  %v978_v13 = vshrl.u32 %v8781_v6, %v6060_v35  ;;  %v981_v58 = vshrl.u32 %v8782_v42, %v6060_v35  ;;  %v986_v50 = vshll.u32 %v8779_v56, %v974_v57 }
 0x17e   : > { %v990_v54 = vshrl.u32 %v8778_v3, %v6060_v35  ;;  %vm540_vm9 = vcmp.eq.s32.totalorder %v6050_v61, 0  ;;  %v920_v47 = vshll.u32 %v6074_v32, 30  ;;  %v6091_v25 = vshrl.u32 %v972_v23, 5 }
 0x17f   : > { %v977_v34 = vshll.u32 %v8780_v62, %v974_v57  ;;  %v984_v30 = vshrl.u32 %v8779_v56, %v6060_v35  ;;  %v980_v0 = vshll.u32 %v8781_v6, %v974_v57  ;;  %v988_v20 = vor.u32 %v987_v15, %v986_v50 }
 0x180   : > { %v989_v43 = vshll.u32 %v8792_v22, %v974_v57  ;;  %v1075_v8 = vsel %vm1074_vm8, %v1073_v26, 0  ;;  %v633_v55 = vsel %vm550_vm10, %v632_v17, %v631_v19  ;;  %v8825_v36 = vand.u32 2147483647, %v8824_v53 }
 0x181   : > { %v735_v23 = vxor.u32 2147483648, %v734_v38  ;;  %v967_v48 = vand.u32 8388607, %v8652_v10  ;;  %v983_v31 = vshll.u32 %v8782_v42, %v974_v57  ;;  %vm4504_vm13 = vcmp.lt.s32.totalorder %v4503_v18, 0 }
 0x182   : > { %vm6102_vm11 = vcmp.le.f32.partialorder %v8825_v36, 0.7853982  ;;  %v6109_v15 = vor.u32 %v978_v13, %v977_v34  ;;  %v6111_v50 = vor.u32 %v981_v58, %v980_v0  ;;  %v991_v26 = vor.u32 %v990_v54, %v989_v43 }
 0x183   : > { %v6114_v19 = vsub.s32 %v6047_v28, %v920_v47  ;;  %v985_v17 = vor.u32 %v984_v30, %v983_v31  ;;  %vm995_vm10 = vcmp.lt.s32.totalorder %v6091_v25, 4  ;;  %v1077_v36 = vand.u32 31, %v1075_v8 }
 0x184   : > { %v6120_v33 = vsel %vm543_vm6, %v544_v52, %v6058_v27  ;;  %v6124_v57 = vsel %vm434_vm0, nan, %v2108_v46  ;;  %vm2206_vm14 = vcmp.eq.s32.totalorder %v6068_v5, 0  ;;  %v1001_v13 = vsel %vm995_vm10, %v988_v20, 920167782 }
 0x185   : > { %8828 = vst [vmem:[#allocation24_spill] sm:$0xff] %v6124_v57  ;;  %v636_v31 = vsel %vm6003_vm12, %v8817_v16, %v633_v55  ;;  %v736_v28 = vsel %vm653_vm7, %v735_v23, %v734_v38  ;;  %v738_v58 = vsel %vm653_vm7, %v737_v1, %v5766_v39  ;;  %v6137_v54 = vsel %vm4504_vm13, 0, %v4503_v18 }
 0x186   : > { %v968_v4 = vor.u32 8388608, %v967_v48  ;;  %vm992_vm15 = vcmp.lt.s32.totalorder %v6091_v25, 1  ;;  %vm994_vm0 = vcmp.lt.s32.totalorder %v6091_v25, 3  ;;  %v1005_v46 = vsel %vm995_vm10, %v991_v26, 1326507024 }
 0x187   : > { %v923_v37 = vsub.s32 0, %v6114_v19  ;;  %v1000_v38 = vsel %vm992_vm15, %v6109_v15, %v6111_v50  ;;  %v1002_v39 = vsel %vm994_vm0, %v985_v17, %v1001_v13  ;;  %v6150_v1 = vsub.s32 32, %v1077_v36 }
 0x188   : > { %v6155_v48 = vsel %vm540_vm9, %v6055_v40, %v541_v12  ;;  %v6158_v18 = vsel %vm2206_vm14, %v6055_v40, %v541_v12  ;;  %vm2209_vm12 = vcmp.eq.s32.totalorder %v6068_v5, 2  ;;  %v830_v47 = vsub.s32 4294967266, %v6137_v54 }
 0x189   : > { %v6163_v34 = vsel %vm2209_vm12, %v544_v52, %v6058_v27  ;;  %vm993_vm1 = vcmp.lt.s32.totalorder %v6091_v25, 2  ;;  %v1004_v30 = vsel %vm992_vm15, %v6111_v50, %v985_v17  ;;  %v1006_v0 = vsel %vm994_vm0, %v988_v20, %v1005_v46 }
 0x18a   : > { %4830 = vcosq.f32 %v636_v31  ;;  %v739_v40 = vsel %vm6102_vm11, %v8824_v53, %v736_v28  ;;  %v6176_v12 = vsel %vm6102_vm11, 0, %v738_v58  ;;  %v1003_v27 = vsel %vm993_vm1, %v1000_v38, %v1002_v39 }
 0x18b   : > { %v4506_v52 = vmin.u32 %v923_v37, %v6114_v19  ;;  %v6181_v43 = vshll.u32 %v968_v4, 8  ;;  %v1090_v20 = vshrl.u32 %v8792_v22, %v6150_v1  ;;  %v826_v23 = vsub.s32 32, %v6137_v54 }
 0x18c   : > { %v831_v26 = vadd.s32 127, %v830_v47  ;;  %v1007_v24 = vsel %vm993_vm1, %v1004_v30, %v1006_v0  ;;  %v1093_v13 = vshrl.u32 %v8778_v3, %v6150_v1  ;;  %v6196_v4 = vshrl.u32 %v1075_v8, 5 }
 0x18d   : > { %v6192_v28 = vmul.u32.u64.low %v6181_v43, %v1003_v27  ;;  %v6193_v58 = vmul.u32.u64.high %v6181_v43, %v1003_v27, %v6192_v28  ;;  %v1089_v46 = vshll.u32 %v8779_v56, %v1077_v36  ;;  %v1081_v37 = vshrl.u32 %v8781_v6, %v6150_v1 }
 0x18e   : > { %v1084_v38 = vshrl.u32 %v8782_v42, %v6150_v1  ;;  %v1087_v39 = vshrl.u32 %v8779_v56, %v6150_v1  ;;  %v1092_v47 = vshll.u32 %v8792_v22, %v1077_v36  ;;  %v925_v30 = vclz %v4506_v52  ;;  %v8829_v56 = vld [vmem:[#allocation41_spill] sm:$0xff] }
 0x18f   : > { %v6207_v0 = vmul.u32.u64.low %v6181_v43, %v1007_v24  ;;  %v6208_v27 = vmul.u32.u64.high %v6181_v43, %v1007_v24, %v6207_v0  ;;  %v1091_v8 = vor.u32 %v1090_v20, %v1089_v46  ;;  %vm539_vm2 = vcmp.lt.s32.totalorder %v6050_v61, 2 }
 0x190   : > { %vm2205_vm3 = vcmp.lt.s32.totalorder %v6068_v5, 2  ;;  %v1080_v10 = vshll.u32 %v8780_v62, %v1077_v36  ;;  %v1083_v55 = vshll.u32 %v8781_v6, %v1077_v36  ;;  %v1086_v9 = vshll.u32 %v8782_v42, %v1077_v36 }
 0x191   : > { %v1094_v3 = vor.u32 %v1093_v13, %v1092_v47  ;;  %4832 = vsinq.f32 %v636_v31  ;;  %v810_v52 = vadd.s32 %v8829_v56, %v5824_v51  ;;  %v997_v24 = vsel %vm995_vm10, %v985_v17, 2102212464 }
 0x192   : > { %v8830_v20 = vand.u32 2147483647, %v5993_v41  ;;  %v6221_v0 = vor.u32 %v1081_v37, %v1080_v10  ;;  %v6223_v22 = vor.u32 %v1084_v38, %v1083_v55  ;;  %v1088_v11 = vor.u32 %v1087_v39, %v1086_v9 }
 0x193   : > { %vm1098_vm4 = vcmp.lt.s32.totalorder %v6196_v4, 4  ;;  %vm537_vm5 = vweird.f32 %v8815_v45  ;;  %4834 = vcosq.f32 %v739_v40  ;;  %v832_v36 = vshll.u32 %v831_v26, 23 }
 0x194   : > { %v1070_v46 = vand.u32 8388607, %v8830_v20  ;;  %v976_v56 = vshrl.u32 %v8780_v62, %v6060_v35  ;;  %v1104_v51 = vsel %vm1098_vm4, %v1091_v8, 920167782  ;;  %v6231_v17 = vpop.eup %4830  ;;  %v827_v10 = vshll.u32 %v6026_v63, %v6137_v54 }
 0x195   : > { %v828_v31 = vshrl.u32 %v810_v52, %v826_v23  ;;  %v4507_v55 = vadd.s32 4294967294, %v925_v30  ;;  %v1108_v9 = vsel %vm1098_vm4, %v1094_v3, 1326507024  ;;  %v998_v35 = vsel %vm994_vm0, %v6111_v50, %v997_v24 }
 0x196   : > { %v996_v26 = vsel %vm992_vm15, %v976_v56, %v6109_v15  ;;  %vm1095_vm6 = vcmp.lt.s32.totalorder %v6196_v4, 1  ;;  %vm1097_vm7 = vcmp.lt.s32.totalorder %v6196_v4, 3  ;;  %v1018_v13 = vadd.s32 1, %v6193_v58 }
 0x197   : > { %v1071_v63 = vor.u32 8388608, %v1070_v46  ;;  %v1103_v3 = vsel %vm1095_vm6, %v6221_v0, %v6223_v22  ;;  %v1105_v54 = vsel %vm1097_vm7, %v1088_v11, %v1104_v51  ;;  %v833_v15 = vor.u32 4788187, %v832_v36 }
 0x198   : > { %vm1017_vm8 = vc.u32 %v6208_v27, %v6192_v28  ;;  %v1107_v50 = vsel %vm1095_vm6, %v6223_v22, %v1088_v11  ;;  %v1109_v23 = vsel %vm1097_vm7, %v1091_v8, %v1108_v9  ;;  %4836 = vsinq.f32 %v739_v40 }
 0x199   : > { %vm4508_vm9 = vcmp.lt.s32.totalorder %v4507_v55, 0  ;;  %v999_v37 = vsel %vm993_vm1, %v996_v26, %v998_v35  ;;  %vm1096_vm11 = vcmp.lt.s32.totalorder %v6196_v4, 2  ;;  %v546_v38 = vsel %vm539_vm2, %v6155_v48, %v6120_v33 }
 0x19a   : > { %v2212_v39 = vsel %vm2205_vm3, %v6158_v18, %v6163_v34  ;;  %v829_v47 = vor.u32 %v828_v31, %v827_v10  ;;  %v1106_v40 = vsel %vm1096_vm11, %v1103_v3, %v1105_v54  ;;  %v2411_v30 = vadd.s32 3, %v6176_v12  ;;  %v8831_v18 = vld [vmem:[#allocation28_spill] sm:$0xff]  ;;  %v8836_v3 = vld [vmem:[#allocation27_spill] sm:$0xff] }
 0x19b   : > { %v1019_v25 = vsel %vm1017_vm8, %v1018_v13, %v6193_v58  ;;  %v1110_v8 = vsel %vm1096_vm11, %v1107_v50, %v1109_v23  ;;  %v6276_v52 = vshll.u32 %v1071_v63, 8  ;;  %v6278_v61 = vpop.eup %4832  ;;  %v834_v33 = vand.u32 2147483647, %v833_v15 }
 0x19c   : > { %v6280_v48 = vsel %vm4508_vm9, 0, %v4507_v55  ;;  %v1015_v5 = vmul.u32 %v6181_v43, %v999_v37  ;;  %v1169_v34 = vand.u32 2139095040, %v8831_v18  ;;  %v6285_v24 = vand.u32 3, %v6176_v12 }
 0x19d   : > { %v6289_v58 = vsel %vm537_vm5, nan, %v2212_v39  ;;  %v6292_v20 = vmul.u32.u64.low %v6276_v52, %v1106_v40  ;;  %v6293_v46 = vmul.u32.u64.high %v6276_v52, %v1106_v40, %v6292_v20  ;;  %v4835_v36 = vpop.eup %4834  ;;  %vm646_vm13 = vcmp.eq.s32.totalorder %v6062_v14, 2 }
 0x19e   : > { %8832 = vst [vmem:[#allocation41_spill] sm:$0xff] %v6289_v58  ;;  %v836_v56 = vcvt.s32.f32 %v829_v47  ;;  %v6297_v51 = vadd.s32 %v1019_v25, %v1015_v5  ;;  %v6300_v43 = vmul.u32.u64.low %v6276_v52, %v1110_v8  ;;  %v6301_v10 = vmul.u32.u64.high %v6276_v52, %v1110_v8, %v6300_v43 }
 0x19f   : > { %v6305_v12 = vsel %vm537_vm5, nan, %v546_v38  ;;  %vm643_vm10 = vcmp.eq.s32.totalorder %v6062_v14, 0  ;;  %v6308_v31 = vand.u32 3, %v2411_v30  ;;  %v6311_v55 = vmul.f32 0.0, %v6066_v44 }
 0x1a0   : > { %8833 = vst [vmem:[#allocation47_spill] sm:$0xff] %v6305_v12  ;;  %v933_v9 = vsub.s32 4294967266, %v6280_v48  ;;  %vm2310_vm14 = vcmp.eq.s32.totalorder %v6070_v7, 0  ;;  %vm2313_vm15 = vcmp.eq.s32.totalorder %v6070_v7, 2  ;;  %v837_v26 = vmul.f32 %v836_v56, %v834_v33 }
 0x1a1   : > { %v1170_v35 = vshrl.u32 %v1169_v34, 23  ;;  %vm746_vm0 = vcmp.eq.s32.totalorder %v6285_v24, 0  ;;  %v6318_v45 = vmul.f32 0.0, %v6124_v57  ;;  %v6321_v13 = vmul.f32 0.0, %v6289_v58 }
 0x1a2   : > { %v1100_v63 = vsel %vm1098_vm4, %v1088_v11, 2102212464  ;;  %vm749_vm12 = vcmp.eq.s32.totalorder %v6285_v24, 2  ;;  %vm756_vm1 = vcmp.lt.s32.totalorder %v8836_v3, 0  ;;  %v1021_v54 = vadd.s32 536870912, %v6297_v51  ;;  %v4837_v50 = vpop.eup %4836 }
 0x1a3   : > { %8834 = vst [vmem:[#allocation48_spill] sm:$0xff] %v6318_v45  ;;  %8835 = vst [vmem:[#allocation49_spill] sm:$0xff] %v6321_v13  ;;  %v1079_v15 = vshrl.u32 %v8780_v62, %v6150_v1  ;;  %v644_v23 = vxor.u32 2147483648, %v6278_v61  ;;  %v647_v37 = vxor.u32 2147483648, %v6231_v17  ;;  %vm2414_vm2 = vcmp.eq.s32.totalorder %v6308_v31, 0 }
 0x1a4   : > { %v934_v38 = vadd.s32 127, %v933_v9  ;;  %vm642_vm3 = vcmp.lt.s32.totalorder %v6062_v14, 2  ;;  %vm2309_vm4 = vcmp.lt.s32.totalorder %v6070_v7, 2  ;;  %v838_v11 = vxor.u32 2147483648, %v837_v26 }
 0x1a5   : > { %v1099_v39 = vsel %vm1095_vm6, %v1079_v15, %v6221_v0  ;;  %v1101_v1 = vsel %vm1097_vm7, %v6223_v22, %v1100_v63  ;;  %v4517_v47 = vadd.s32 4294967169, %v1170_v35  ;;  %v750_v40 = vxor.u32 2147483648, %v4835_v36 }
 0x1a6   : > { %vm2417_vm5 = vcmp.eq.s32.totalorder %v6308_v31, 2  ;;  %v929_v30 = vsub.s32 32, %v6280_v48  ;;  %v1121_v25 = vadd.s32 1, %v6293_v46  ;;  %v747_v8 = vxor.u32 2147483648, %v4837_v50 }
 0x1a7   : > { %v8837_v33 = vand.u32 2147483647, %v8836_v3  ;;  %v6350_v0 = vshrl.u32 %v1021_v54, 30  ;;  %vm1120_vm6 = vc.u32 %v6301_v10, %v6292_v20  ;;  %vm640_vm7 = vweird.f32 %v8817_v16 }
 0x1a8   : > { %v648_v22 = vsel %vm646_vm13, %v647_v37, %v6278_v61  ;;  %v913_v34 = vadd.s32 %v5966_v60, %v5972_v29  ;;  %v935_v56 = vshll.u32 %v934_v38, 23  ;;  %v1102_v43 = vsel %vm1096_vm11, %v1099_v39, %v1101_v1 }
 0x1a9   : > { %vm6346_vm8 = vcmp.le.f32.partialorder %v8837_v33, 0.7853982  ;;  %v645_v9 = vsel %vm643_vm10, %v6231_v17, %v644_v23  ;;  %vm743_vm9 = vweird.f32 %v8824_v53  ;;  %v2315_v35 = vsel %vm2313_vm15, %v647_v37, %v6278_v61 }
 0x1aa   : > { %v839_v63 = vsel %vm756_vm1, %v838_v11, %v837_v26  ;;  %v1176_v54 = vadd.s32 1, %v4517_v47  ;;  %v751_v60 = vsel %vm749_vm12, %v750_v40, %v4837_v50  ;;  %v2312_v29 = vsel %vm2310_vm14, %v6231_v17, %v644_v23 }
 0x1ab   : > { %v931_v4 = vshrl.u32 %v913_v34, %v929_v30  ;;  %v1122_v15 = vsel %vm1120_vm6, %v1121_v25, %v6293_v46  ;;  %v748_v38 = vsel %vm746_vm0, %v4835_v36, %v747_v8  ;;  %v2419_v61 = vsel %vm2417_vm5, %v750_v40, %v4837_v50  ;;  %v3979_v30 = vpop.permute.xlu0 %3978  ;;  %v6404_v25 = vpop.permute.xlu1 %323 }
 0x1ac   : > { %v1023_v37 = vshll.u32 %v6350_v0, 30  ;;  %v1118_v26 = vmul.u32 %v6276_v52, %v1102_v43  ;;  %v2416_v11 = vsel %vm2414_vm2, %v4835_v36, %v747_v8  ;;  %v842_v17 = vsel %vm6346_vm8, %v8836_v3, %v839_v63  ;;  %v8844_v63 = vld [vmem:[#allocation20_spill] sm:$0xff] }
 0x1ad   : > { %v930_v46 = vshll.u32 %v6114_v19, %v6280_v48  ;;  %v936_v23 = vor.u32 4788187, %v935_v56  ;;  %vm745_vm11 = vcmp.lt.s32.totalorder %v6285_v24, 2  ;;  %v840_v39 = vsub.s32 4, %v5963_v21 }
 0x1ae   : > { %v6392_v50 = vadd.s32 %v1122_v15, %v1118_v26  ;;  %vm1177_vm13 = vcmp.gt.s32.totalorder %v1176_v54, 0  ;;  %v649_v52 = vsel %vm642_vm3, %v645_v9, %v648_v22  ;;  %v2316_v36 = vsel %vm2309_vm4, %v2312_v29, %v2315_v35  ;;  %v4950_v9 = vld [vmem:[%s5296_s17] sm:$0xff] }
 0x1af   : > { %vm2413_vm10 = vcmp.lt.s32.totalorder %v6308_v31, 2  ;;  %v932_v1 = vor.u32 %v931_v4, %v930_v46  ;;  %v752_v47 = vsel %vm745_vm11, %v748_v38, %v751_v60  ;;  %4838 = vcosq.f32 %v842_v17 }
 0x1b0   : > { %v2420_v40 = vsel %vm2413_vm10, %v2416_v11, %v2419_v61  ;;  %v6400_v19 = vsub.s32 %v6297_v51, %v1023_v37  ;;  %v3875_v48 = vmul.f32 0.0, %v6305_v12  ;;  %vm859_vm14 = vcmp.lt.s32.totalorder %v5676_v49, 0 }
 0x1b1   : > { %v937_v24 = vand.u32 2147483647, %v936_v23  ;;  %v1178_v14 = vsel %vm1177_vm13, %v1176_v54, 0  ;;  %v6408_v7 = vsel %vm640_vm7, nan, %v2316_v36  ;;  %v841_v31 = vsel %vm756_vm1, %v840_v39, %v5963_v21 }
 0x1b2   : > { %8840 = vst [vmem:[#allocation27_spill] sm:$0xff] %v6408_v7  ;;  %v943_v51 = vsub.s32 4, %v6074_v32  ;;  %v1124_v8 = vadd.s32 536870912, %v6392_v50  ;;  %v6417_v33 = vsel %vm640_vm7, nan, %v649_v52  ;;  %v6421_v22 = vsel %vm743_vm9, nan, %v752_v47 }
 0x1b3   : > { %8841 = vst [vmem:[#allocation50_spill] sm:$0xff] %v6417_v33  ;;  %8842 = vst [vmem:[#allocation51_spill] sm:$0xff] %v6421_v22  ;;  %v6425_v34 = vsel %vm743_vm9, nan, %v2420_v40  ;;  %v939_v56 = vcvt.s32.f32 %v932_v1  ;;  %v1026_v43 = vsub.s32 0, %v6400_v19  ;;  %v1180_v21 = vand.u32 31, %v1178_v14 }
 0x1b4   : > { %8843 = vst [vmem:[#allocation52_spill] sm:$0xff] %v6425_v34  ;;  %v3990_v35 = vsub.f32 %v4950_v9, %v3979_v30  ;;  %v6431_v54 = vadd.f32 %v6404_v25, %v8844_v63  ;;  %v6434_v16 = vmul.f32 0.0, %v6408_v7  ;;  %v843_v60 = vsel %vm6346_vm8, 0, %v841_v31  ;;  %v8862_v63 = vld [vmem:[#allocation45_spill] sm:$0xff] }
 0x1b5   : > { %v8847_v53 = vand.u32 2147483647, %v5676_v49  ;;  %v940_v4 = vmul.f32 %v939_v56, %v937_v24  ;;  %v944_v15 = vsel %vm859_vm14, %v943_v51, %v6074_v32  ;;  %v6447_v38 = vshrl.u32 %v1124_v8, 30 }
 0x1b6   : > { %8845 = vst [vmem:[#allocation20_spill] sm:$0xff] %v6431_v54  ;;  %8846 = vst [vmem:[#allocation53_spill] sm:$0xff] %v6434_v16  ;;  %4121 = vperm.xlu1 %4806, %v3990_v35   ;;  %v6451_v61 = vadd.f32 %v6404_v25, %v5910_v2  ;;  %v6455_v5 = vadd.f32 %v6404_v25, %v5933_v59  ;;  %v6458_v37 = vmul.f32 0.0, %v6425_v34  ;;  %v3876_v26 = vmul.f32 0.0, %v6417_v33  ;;  %v8853_v2 = vld [vmem:[#allocation44_spill] sm:$0xff] }
 0x1b7   : > { %vm6440_vm15 = vcmp.le.f32.partialorder %v8847_v53, 0.7853982  ;;  %v3877_v11 = vmul.f32 0.0, %v6421_v22  ;;  %4840 = vsinq.f32 %v842_v17  ;;  %v6462_v32 = vand.u32 3, %v843_v60 }
 0x1b8   : > { %8850 = vst [vmem:[#allocation54_spill] sm:$0xff] %v6451_v61  ;;  %8851 = vst [vmem:[#allocation55_spill] sm:$0xff] %v6455_v5  ;;  %v4510_v46 = vmin.u32 %v1026_v43, %v6400_v19  ;;  %v6465_v23 = vsub.s32 32, %v1180_v21  ;;  %v1272_v39 = vand.u32 2139095040, %v8853_v2  ;;  %v941_v52 = vxor.u32 2147483648, %v940_v4 }
 0x1b9   : > { %8852 = vst [vmem:[#allocation56_spill] sm:$0xff] %v6458_v37  ;;  %v6472_v36 = vsel %vm6440_vm15, 0, %v944_v15  ;;  %v2515_v1 = vadd.s32 3, %v843_v60  ;;  %v6474_v47 = vpop.eup %4838  ;;  %v6480_v40 = vadd.f32 %v6311_v55, %v6124_v57  ;;  %v6483_v24 = vadd.f32 %v3875_v48, %v6289_v58 }
 0x1ba   : > { %v1126_v30 = vshll.u32 %v6447_v38, 30  ;;  %v6491_v8 = vadd.f32 %v3876_v26, %v6408_v7  ;;  %v6494_v56 = vadd.f32 %v3877_v11, %v6425_v34  ;;  %vm852_vm0 = vcmp.eq.s32.totalorder %v6462_v32, 2 }
 0x1bb   : > { %8854 = vst [vmem:[#allocation57_spill] sm:$0xff] %v6480_v40  ;;  %8855 = vst [vmem:[#allocation58_spill] sm:$0xff] %v6483_v24  ;;  %v6498_v55 = vand.u32 3, %v6472_v36  ;;  %v1028_v48 = vclz %v4510_v46  ;;  %v8858_v43 = vmov 920167782   ;;  %v1273_v35 = vshrl.u32 %v1272_v39, 23 }
 0x1bc   : > { %8856 = vst [vmem:[#allocation59_spill] sm:$0xff] %v6491_v8  ;;  %8857 = vst [vmem:[#allocation60_spill] sm:$0xff] %v6494_v56  ;;  %v1193_v9 = vshrl.u32 %v8858_v43, %v6465_v23  ;;  %v942_v60 = vsel %vm859_vm14, %v941_v52, %v940_v4  ;;  %v6505_v53 = vand.u32 3, %v2515_v1  ;;  %v8859_v15 = vmov 1326507024  }
 0x1bd   : > { %v1196_v26 = vshrl.u32 %v8859_v15, %v6465_v23  ;;  %v6510_v11 = vsub.s32 %v6392_v50, %v1126_v30  ;;  %v6513_v46 = vshrl.u32 %v1178_v14, 5  ;;  %v8860_v31 = vmov 2102212464   ;;  %v8861_v50 = vld [vmem:[#allocation25_spill] sm:$0xff] }
 0x1be   : > { %v1192_v17 = vshll.u32 %v8860_v31, %v1180_v21  ;;  %v1184_v39 = vshrl.u32 %v8781_v6, %v6465_v23  ;;  %v1187_v4 = vshrl.u32 %v8782_v42, %v6465_v23  ;;  %v1190_v52 = vshrl.u32 %v8860_v31, %v6465_v23 }
 0x1bf   : > { %v1195_v1 = vshll.u32 %v8858_v43, %v1180_v21  ;;  %vm849_vm12 = vcmp.eq.s32.totalorder %v6462_v32, 0  ;;  %vm962_vm1 = vcmp.lt.s32.totalorder %v8861_v50, 0  ;;  %v4511_v30 = vadd.s32 4294967294, %v1028_v48 }
 0x1c0   : > { %v1194_v14 = vor.u32 %v1193_v9, %v1192_v17  ;;  %v4521_v59 = vadd.s32 4294967169, %v1273_v35  ;;  %v1375_v51 = vand.u32 2139095040, %v8862_v63  ;;  %v1183_v8 = vshll.u32 %v8780_v62, %v1180_v21 }
 0x1c1   : > { %v4841_v56 = vpop.eup %4840  ;;  %v1186_v37 = vshll.u32 %v8781_v6, %v1180_v21  ;;  %v1189_v24 = vshll.u32 %v8782_v42, %v1180_v21  ;;  %v1197_v40 = vor.u32 %v1196_v26, %v1195_v1  ;;  %v945_v16 = vsel %vm6440_vm15, %v5676_v49, %v942_v60 }
 0x1c2   : > { %v6534_v13 = vadd.s32 %v6192_v28, %v6208_v27  ;;  %v1129_v17 = vsub.s32 0, %v6510_v11  ;;  %v8863_v48 = vand.u32 2147483647, %v8831_v18  ;;  %vm848_vm2 = vcmp.lt.s32.totalorder %v6462_v32, 2 }
 0x1c3   : > { %v8864_v35 = vand.u32 2147483647, %v8861_v50  ;;  %vm2518_vm4 = vcmp.eq.s32.totalorder %v6505_v53, 0  ;;  %v6547_v29 = vor.u32 %v1184_v39, %v1183_v8  ;;  %v6549_v60 = vor.u32 %v1187_v4, %v1186_v37 }
 0x1c4   : > { %v1173_v9 = vand.u32 8388607, %v8863_v48  ;;  %v1191_v28 = vor.u32 %v1190_v52, %v1189_v24  ;;  %vm1201_vm5 = vcmp.lt.s32.totalorder %v6513_v46, 4  ;;  %v850_v27 = vxor.u32 2147483648, %v4841_v56 }
 0x1c5   : > { %vm6542_vm3 = vcmp.le.f32.partialorder %v8864_v35, 0.7853982  ;;  %v1046_v26 = vsub.s32 4, %v6350_v0  ;;  %v1207_v1 = vsel %vm1201_vm5, %v1194_v14, 920167782  ;;  %v1279_v48 = vadd.s32 1, %v4521_v59 }
 0x1c6   : > { %v8867_v35 = vxor.u32 2147483648, %v6474_v47  ;;  %vm4512_vm8 = vcmp.lt.s32.totalorder %v4511_v30, 0  ;;  %v1211_v37 = vsel %vm1201_vm5, %v1197_v40, 1326507024  ;;  %v1376_v8 = vshrl.u32 %v1375_v51, 23 }
 0x1c7   : > { %4842 = vcosq.f32 %v945_v16  ;;  %v4514_v24 = vmin.u32 %v1129_v17, %v6510_v11  ;;  %vm1198_vm6 = vcmp.lt.s32.totalorder %v6513_v46, 1  ;;  %vm1200_vm7 = vcmp.lt.s32.totalorder %v6513_v46, 3 }
 0x1c8   : > { %v854_v45 = vsel %vm852_vm0, %v8867_v35, %v4841_v56  ;;  %vm846_vm9 = vweird.f32 %v8836_v3  ;;  %4844 = vsinq.f32 %v945_v16  ;;  %v1174_v59 = vor.u32 8388608, %v1173_v9 }
 0x1c9   : > { %v1206_v39 = vsel %vm1198_vm6, %v6547_v29, %v6549_v60  ;;  %v1208_v40 = vsel %vm1200_vm7, %v1191_v28, %v1207_v1  ;;  %v1031_v51 = vsel %vm4512_vm8, 0, %v4511_v30  ;;  %v1210_v4 = vsel %vm1198_vm6, %v6549_v60, %v1191_v28 }
 0x1ca   : > { %v1212_v52 = vsel %vm1200_vm7, %v1194_v14, %v1211_v37  ;;  %vm1280_vm11 = vcmp.gt.s32.totalorder %v1279_v48, 0  ;;  %v851_v16 = vsel %vm849_vm12, %v6474_v47, %v850_v27  ;;  %v1047_v17 = vsel %vm962_vm1, %v1046_v26, %v6350_v0 }
 0x1cb   : > { %vm1199_vm13 = vcmp.lt.s32.totalorder %v6513_v46, 2  ;;  %v4525_v9 = vadd.s32 4294967169, %v1376_v8  ;;  %v1131_v30 = vclz %v4514_v24  ;;  %vm2521_vm10 = vcmp.eq.s32.totalorder %v6505_v53, 2 }
 0x1cc   : > { %v2619_v1 = vadd.s32 3, %v6472_v36  ;;  %v1209_v14 = vsel %vm1199_vm13, %v1206_v39, %v1208_v40  ;;  %v1036_v35 = vsub.s32 4294967266, %v1031_v51  ;;  %v1213_v37 = vsel %vm1199_vm13, %v1210_v4, %v1212_v52 }
 0x1cd   : > { %v6589_v22 = vshll.u32 %v1174_v59, 8  ;;  %v1281_v33 = vsel %vm1280_vm11, %v1279_v48, 0  ;;  %v855_v0 = vsel %vm848_vm2, %v851_v16, %v854_v45  ;;  %v1032_v26 = vsub.s32 32, %v1031_v51 }
 0x1ce   : > { %v1049_v8 = vsel %vm6542_vm3, 0, %v1047_v17  ;;  %v2520_v36 = vsel %vm2518_vm4, %v6474_v47, %v850_v27  ;;  %v8868_v24 = vxor.u32 2147483648, %v6474_v47  ;;  %v1382_v48 = vadd.s32 1, %v4525_v9 }
 0x1cf   : > { %v6601_v40 = vmul.u32.u64.low %v6589_v22, %v1209_v14  ;;  %v6602_v4 = vmul.u32.u64.high %v6589_v22, %v1209_v14, %v6601_v40  ;;  %v4515_v59 = vadd.s32 4294967294, %v1131_v30  ;;  %v1283_v52 = vand.u32 31, %v1281_v33  ;;  %v8872_v14 = vld [vmem:[#allocation26_spill] sm:$0xff] }
 0x1d0   : > { %v2523_v39 = vsel %vm2521_vm10, %v8868_v24, %v4841_v56  ;;  %v6606_v45 = vmul.u32.u64.low %v6589_v22, %v1213_v37  ;;  %v6607_v32 = vmul.u32.u64.high %v6589_v22, %v1213_v37, %v6606_v45  ;;  %v1037_v16 = vadd.s32 127, %v1036_v35 }
 0x1d1   : > { %8869 = vst [vmem:[#allocation25_spill] sm:$0xff] %v6601_v40  ;;  %v6609_v17 = vand.u32 3, %v1049_v8  ;;  %vm2517_vm14 = vcmp.lt.s32.totalorder %v6505_v53, 2  ;;  %v8669_v47 = vand.u32 2147483647, %v8853_v2  ;;  %v6613_v56 = vpop.eup %4842  ;;  %v6617_v27 = vsel %vm846_vm9, nan, %v855_v0 }
 0x1d2   : > { %8871 = vst [vmem:[#allocation62_spill] sm:$0xff] %v6617_v27  ;;  %v1033_v9 = vshll.u32 %v6400_v19, %v1031_v51  ;;  %v6620_v30 = vsel %vm2517_vm14, %v2520_v36, %v2523_v39  ;;  %v6624_v37 = vadd.f32 %v6404_v25, %v8872_v14  ;;  %v6626_v35 = vpop.eup %4844  ;;  %v1034_v53 = vshrl.u32 %v6534_v13, %v1032_v26  ;;  %v8874_v0 = vld [vmem:[#allocation22_spill] sm:$0xff] }
 0x1d3   : > { %8870 = vst [vmem:[#allocation61_spill] sm:$0xff] %v6609_v17  ;;  %v6629_v24 = vand.u32 3, %v2619_v1  ;;  %v1203_v45 = vsel %vm1201_vm5, %v1191_v28, 2102212464  ;;  %vm1383_vm15 = vcmp.gt.s32.totalorder %v1382_v48, 0  ;;  %vm4516_vm0 = vcmp.lt.s32.totalorder %v4515_v59, 0 }
 0x1d4   : > { %8873 = vst [vmem:[#allocation26_spill] sm:$0xff] %v6624_v37  ;;  %v1182_v19 = vshrl.u32 %v8780_v62, %v6465_v23  ;;  %v6635_v51 = vsub.s32 32, %v1283_v52  ;;  %v1478_v36 = vand.u32 2139095040, %v8874_v0  ;;  %v1038_v25 = vshll.u32 %v1037_v16, 23 }
 0x1d5   : > { %v6638_v39 = vadd.s32 3, %v1049_v8  ;;  %v6641_v14 = vmul.f32 0.0, %v6617_v27  ;;  %v1276_v13 = vand.u32 8388607, %v8669_v47  ;;  %v1204_v23 = vsel %vm1200_vm7, %v6549_v60, %v1203_v45 }
 0x1d6   : > { %v1202_v1 = vsel %vm1198_vm6, %v1182_v19, %v6547_v29  ;;  %v1384_v26 = vsel %vm1383_vm15, %v1382_v48, 0  ;;  %v6655_v16 = vadd.s32 %v6292_v20, %v6301_v10  ;;  %v6657_v12 = vsel %vm4516_vm0, 0, %v4515_v59 }
 0x1d7   : > { %8875 = vst [vmem:[#allocation63_spill] sm:$0xff] %v6641_v14  ;;  %v1224_v47 = vadd.s32 1, %v6602_v4  ;;  %v6660_v28 = vor.u32 %v1034_v53, %v1033_v9  ;;  %vm1223_vm12 = vc.u32 %v6607_v32, %v6601_v40  ;;  %v1296_v29 = vshrl.u32 %v8858_v43, %v6635_v51 }
 0x1d8   : > { %v1479_v60 = vshrl.u32 %v1478_v36, 23  ;;  %v6666_v48 = vor.u32 4788187, %v1038_v25  ;;  %v1205_v45 = vsel %vm1199_vm13, %v1202_v1, %v1204_v23  ;;  %v1277_v20 = vor.u32 8388608, %v1276_v13 }
 0x1d9   : > { %v1386_v10 = vand.u32 31, %v1384_v26  ;;  %v1139_v59 = vsub.s32 4294967266, %v6657_v12  ;;  %v6671_v19 = vshrl.u32 %v1281_v33, 5  ;;  %v1295_v9 = vshll.u32 %v8860_v31, %v1283_v52 }
 0x1da   : > { %v1299_v53 = vshrl.u32 %v8859_v15, %v6635_v51  ;;  %v1225_v8 = vsel %vm1223_vm12, %v1224_v47, %v6602_v4  ;;  %v1287_v36 = vshrl.u32 %v8781_v6, %v6635_v51  ;;  %v1290_v46 = vshrl.u32 %v8782_v42, %v6635_v51 }
 0x1db   : > { %v1293_v25 = vshrl.u32 %v8860_v31, %v6635_v51  ;;  %v1221_v13 = vmul.u32 %v6589_v22, %v1205_v45  ;;  %v1297_v33 = vor.u32 %v1296_v29, %v1295_v9  ;;  %v1298_v1 = vshll.u32 %v8858_v43, %v1283_v52 }
 0x1dc   : > { %v4529_v23 = vadd.s32 4294967169, %v1479_v60  ;;  %v1286_v44 = vshll.u32 %v8780_v62, %v1283_v52  ;;  %v1289_v34 = vshll.u32 %v8781_v6, %v1283_v52  ;;  %v1292_v4 = vshll.u32 %v8782_v42, %v1283_v52 }
 0x1dd   : > { %v6688_v47 = vsub.s32 32, %v1386_v10  ;;  %v6692_v57 = vadd.s32 %v1225_v8, %v1221_v13  ;;  %v1300_v2 = vor.u32 %v1299_v53, %v1298_v1  ;;  %vm1304_vm2 = vcmp.lt.s32.totalorder %v6671_v19, 4 }
 0x1de   : > { %v6694_v22 = vor.u32 %v1287_v36, %v1286_v44  ;;  %v6696_v29 = vor.u32 %v1290_v46, %v1289_v34  ;;  %v1294_v60 = vor.u32 %v1293_v25, %v1292_v4  ;;  %v1135_v45 = vsub.s32 32, %v6657_v12 }
 0x1df   : > { %v1310_v52 = vsel %vm1304_vm2, %v1297_v33, 920167782  ;;  %v1485_v7 = vadd.s32 1, %v4529_v23  ;;  %v1140_v18 = vadd.s32 127, %v1139_v59  ;;  %vm1301_vm4 = vcmp.lt.s32.totalorder %v6671_v19, 1 }
 0x1e0   : > { %v6704_v8 = vshll.u32 %v1277_v20, 8  ;;  %v1402_v44 = vshrl.u32 %v8859_v15, %v6688_v47  ;;  %v1227_v34 = vadd.s32 536870912, %v6692_v57  ;;  %vm1303_vm5 = vcmp.lt.s32.totalorder %v6671_v19, 3 }
 0x1e1   : > { %v1314_v53 = vsel %vm1304_vm2, %v1300_v2, 1326507024  ;;  %v1399_v36 = vshrl.u32 %v8858_v43, %v6688_v47  ;;  %v1309_v59 = vsel %vm1301_vm4, %v6694_v22, %v6696_v29  ;;  %v1311_v20 = vsel %vm1303_vm5, %v1294_v60, %v1310_v52 }
 0x1e2   : > { %v6720_v46 = vshrl.u32 %v1384_v26, 5  ;;  %v1401_v25 = vshll.u32 %v8858_v43, %v1386_v10  ;;  %v1393_v13 = vshrl.u32 %v8782_v42, %v6688_v47  ;;  %v1396_v2 = vshrl.u32 %v8860_v31, %v6688_v47 }
 0x1e3   : > { %v1398_v1 = vshll.u32 %v8860_v31, %v1386_v10  ;;  %vm1486_vm8 = vcmp.gt.s32.totalorder %v1485_v7, 0  ;;  %vm955_vm6 = vcmp.eq.s32.totalorder %v6498_v55, 2  ;;  %v1313_v23 = vsel %vm1301_vm4, %v6696_v29, %v1294_v60 }
 0x1e4   : > { %v1315_v26 = vsel %vm1303_vm5, %v1297_v33, %v1314_v53  ;;  %v1390_v4 = vshrl.u32 %v8781_v6, %v6688_v47  ;;  %v1403_v52 = vor.u32 %v1402_v44, %v1401_v25  ;;  %vm1302_vm7 = vcmp.lt.s32.totalorder %v6671_v19, 2 }
 0x1e5   : > { %v1392_v58 = vshll.u32 %v8781_v6, %v1386_v10  ;;  %v1395_v9 = vshll.u32 %v8782_v42, %v1386_v10  ;;  %v1400_v14 = vor.u32 %v1399_v36, %v1398_v1  ;;  %v1312_v27 = vsel %vm1302_vm7, %v1309_v59, %v1311_v20 }
 0x1e6   : > { %v8876_v17 = vand.u32 2147483647, %v8862_v63  ;;  %v1389_v40 = vshll.u32 %v8780_v62, %v1386_v10  ;;  %v1487_v33 = vsel %vm1486_vm8, %v1485_v7, 0  ;;  %v1316_v53 = vsel %vm1302_vm7, %v1313_v23, %v1315_v26 }
 0x1e7   : > { %v6746_v44 = vor.u32 %v1393_v13, %v1392_v58  ;;  %v6748_v25 = vor.u32 %v1396_v2, %v1395_v9  ;;  %vm1407_vm11 = vcmp.lt.s32.totalorder %v6720_v46, 4  ;;  %v1137_v36 = vshrl.u32 %v6655_v16, %v1135_v45 }
 0x1e8   : > { %v1379_v37 = vand.u32 8388607, %v8876_v17  ;;  %v6752_v1 = vshrl.u32 %v1227_v34, 30  ;;  %v6754_v59 = vor.u32 %v1390_v4, %v1389_v40  ;;  %v1417_v17 = vsel %vm1407_vm11, %v1403_v52, 1326507024 }
 0x1e9   : > { %v6759_v7 = vmul.u32.u64.low %v6704_v8, %v1312_v27  ;;  %v6760_v10 = vmul.u32.u64.high %v6704_v8, %v1312_v27, %v6759_v7  ;;  %v1413_v58 = vsel %vm1407_vm11, %v1400_v14, 920167782  ;;  %v1489_v9 = vand.u32 31, %v1487_v33 }
 0x1ea   : > { %8877 = vst [vmem:[#allocation64_spill] sm:$0xff] %v6752_v1  ;;  %v6766_v20 = vmul.u32.u64.low %v6704_v8, %v1316_v53  ;;  %v6767_v13 = vmul.u32.u64.high %v6704_v8, %v1316_v53, %v6766_v20  ;;  %vm1404_vm13 = vcmp.lt.s32.totalorder %v6720_v46, 1  ;;  %vm1406_vm10 = vcmp.lt.s32.totalorder %v6720_v46, 3 }
 0x1eb   : > { %8878 = vst [vmem:[#allocation65_spill] sm:$0xff] %v6759_v7  ;;  %v1141_v40 = vshll.u32 %v1140_v18, 23  ;;  %v1380_v16 = vor.u32 8388608, %v1379_v37  ;;  %v1416_v27 = vsel %vm1404_vm13, %v6746_v44, %v6748_v25  ;;  %v1418_v45 = vsel %vm1406_vm10, %v1400_v14, %v1417_v17 }
 0x1ec   : > { %8879 = vst [vmem:[#allocation66_spill] sm:$0xff] %v6767_v13  ;;  %v1136_v34 = vshll.u32 %v6510_v11, %v6657_v12  ;;  %v1229_v2 = vshll.u32 %v6752_v1, 30  ;;  %v1412_v23 = vsel %vm1404_vm13, %v6754_v59, %v6746_v44  ;;  %v1414_v18 = vsel %vm1406_vm10, %v6748_v25, %v1413_v58 }
 0x1ed   : > { %v8880_v37 = vxor.u32 2147483648, %v6613_v56  ;;  %v1306_v12 = vsel %vm1304_vm2, %v1294_v60, 2102212464  ;;  %vm1405_vm14 = vcmp.lt.s32.totalorder %v6720_v46, 2  ;;  %v6797_v11 = vsub.s32 32, %v1489_v9 }
 0x1ee   : > { %v8881_v26 = vand.u32 2147483647, %v6666_v48  ;;  %v8882_v4 = vcvt.s32.f32 %v6660_v28  ;;  %v6805_v53 = vor.u32 %v1137_v36, %v1136_v34  ;;  %v1285_v17 = vshrl.u32 %v8780_v62, %v6635_v51 }
 0x1ef   : > { %v6792_v14 = vsel %vm955_vm6, %v8880_v37, %v6626_v35  ;;  %v1419_v58 = vsel %vm1405_vm14, %v1416_v27, %v1418_v45  ;;  %v6811_v20 = vor.u32 4788187, %v1141_v40  ;;  %v1415_v60 = vsel %vm1405_vm14, %v1412_v23, %v1414_v18 }
 0x1f0   : > { %v6803_v52 = vmul.f32 %v8882_v4, %v8881_v26  ;;  %v6815_v37 = vshll.u32 %v1380_v16, 8  ;;  %v1581_v48 = vand.u32 2139095040, %v6431_v54  ;;  %v6819_v28 = vsub.s32 %v6692_v57, %v1229_v2 }
 0x1f1   : > { %v1305_v36 = vsel %vm1301_vm4, %v1285_v17, %v6694_v22  ;;  %v1307_v51 = vsel %vm1303_vm5, %v6696_v29, %v1306_v12  ;;  %v8692_v40 = vand.u32 2147483647, %v8874_v0  ;;  %v1327_v27 = vadd.s32 1, %v6760_v10 }
 0x1f2   : > { %v6830_v16 = vmul.u32.u64.low %v6815_v37, %v1419_v58  ;;  %v6831_v45 = vmul.u32.u64.high %v6815_v37, %v1419_v58, %v6830_v16  ;;  %v1502_v57 = vshrl.u32 %v8858_v43, %v6797_v11  ;;  %vm1326_vm15 = vc.u32 %v6767_v13, %v6759_v7 }
 0x1f3   : > { %v6838_v22 = vmul.u32.u64.low %v6815_v37, %v1415_v60  ;;  %v6839_v34 = vmul.u32.u64.high %v6815_v37, %v1415_v60, %v6838_v22  ;;  %v1505_v29 = vshrl.u32 %v8859_v15, %v6797_v11  ;;  %v1308_v2 = vsel %vm1302_vm7, %v1305_v36, %v1307_v51 }
 0x1f4   : > { %8883 = vst [vmem:[#allocation67_spill] sm:$0xff] %v6831_v45  ;;  %v6846_v23 = vshrl.u32 %v1487_v33, 5  ;;  %v1501_v18 = vshll.u32 %v8860_v31, %v1489_v9  ;;  %v1582_v12 = vshrl.u32 %v1581_v48, 23  ;;  %v1493_v26 = vshrl.u32 %v8781_v6, %v6797_v11 }
 0x1f5   : > { %8884 = vst [vmem:[#allocation68_spill] sm:$0xff] %v6838_v22  ;;  %v1496_v4 = vshrl.u32 %v8782_v42, %v6797_v11  ;;  %v1499_v17 = vshrl.u32 %v8860_v31, %v6797_v11  ;;  %v1504_v58 = vshll.u32 %v8858_v43, %v1489_v9  ;;  %vm952_vm0 = vcmp.eq.s32.totalorder %v6498_v55, 0 }
 0x1f6   : > { %v1232_v19 = vsub.s32 0, %v6819_v28  ;;  %v1328_v33 = vsel %vm1326_vm15, %v1327_v27, %v6760_v10  ;;  %v1482_v60 = vand.u32 8388607, %v8692_v40  ;;  %v1503_v48 = vor.u32 %v1502_v57, %v1501_v18 }
 0x1f7   : > { %v1492_v36 = vshll.u32 %v8780_v62, %v1489_v9  ;;  %v1495_v51 = vshll.u32 %v8781_v6, %v1489_v9  ;;  %v1498_v16 = vshll.u32 %v8782_v42, %v1489_v9  ;;  %v1506_v63 = vor.u32 %v1505_v29, %v1504_v58 }
 0x1f8   : > { %v1324_v1 = vmul.u32 %v6704_v8, %v1308_v2  ;;  %v1388_v7 = vshrl.u32 %v8780_v62, %v6688_v47  ;;  %v1409_v10 = vsel %vm1407_vm11, %v6748_v25, 2102212464  ;;  %v4533_v27 = vadd.s32 4294967169, %v1582_v12 }
 0x1f9   : > { %vm2622_vm12 = vcmp.eq.s32.totalorder %v6629_v24, 0  ;;  %vm2625_vm2 = vcmp.eq.s32.totalorder %v6629_v24, 2  ;;  %v6872_v57 = vor.u32 %v1493_v26, %v1492_v36  ;;  %v6874_v18 = vor.u32 %v1496_v4, %v1495_v51 }
 0x1fa   : > { %v1500_v9 = vor.u32 %v1499_v17, %v1498_v16  ;;  %vm1510_vm4 = vcmp.lt.s32.totalorder %v6846_v23, 4  ;;  %v1143_v8 = vand.u32 2147483647, %v6811_v20  ;;  %v4518_v47 = vmin.u32 %v1232_v19, %v6819_v28 }
 0x1fb   : > { %v6879_v29 = vadd.s32 %v1328_v33, %v1324_v1  ;;  %v1516_v25 = vsel %vm1510_vm4, %v1503_v48, 920167782  ;;  %v1408_v2 = vsel %vm1404_vm13, %v1388_v7, %v6754_v59  ;;  %v1410_v12 = vsel %vm1406_vm10, %v6746_v44, %v1409_v10 }
 0x1fc   : > { %v1483_v26 = vor.u32 8388608, %v1482_v60  ;;  %v1520_v4 = vsel %vm1510_vm4, %v1506_v63, 1326507024  ;;  %vm951_vm5 = vcmp.lt.s32.totalorder %v6498_v55, 2  ;;  %v1430_v1 = vadd.s32 1, %v6839_v34 }
 0x1fd   : > { %vm1507_vm8 = vcmp.lt.s32.totalorder %v6846_v23, 1  ;;  %vm1509_vm6 = vcmp.lt.s32.totalorder %v6846_v23, 3  ;;  %v1588_v20 = vadd.s32 1, %v4533_v27  ;;  %vm1429_vm7 = vc.u32 %v6831_v45, %v6838_v22 }
 0x1fe   : > { %v1515_v44 = vsel %vm1507_vm8, %v6872_v57, %v6874_v18  ;;  %v1517_v63 = vsel %vm1509_vm6, %v1500_v9, %v1516_v25  ;;  %v1684_v59 = vand.u32 2139095040, %v6451_v61  ;;  %v1330_v7 = vadd.s32 536870912, %v6879_v29 }
 0x1ff   : > { %v1411_v17 = vsel %vm1405_vm14, %v1408_v2, %v1410_v12  ;;  %v1519_v58 = vsel %vm1507_vm8, %v6874_v18, %v1500_v9  ;;  %v1521_v19 = vsel %vm1509_vm6, %v1503_v48, %v1520_v4  ;;  %vm949_vm11 = vweird.f32 %v5676_v49 }
 0x200   : > { %v8885_v33 = vxor.u32 2147483648, %v6626_v35  ;;  %v1044_v36 = vxor.u32 2147483648, %v6803_v52  ;;  %v1145_v46 = vcvt.s32.f32 %v6805_v53  ;;  %vm1508_vm13 = vcmp.lt.s32.totalorder %v6846_v23, 2 }
 0x201   : > { %v1234_v51 = vclz %v4518_v47  ;;  %v1431_v16 = vsel %vm1429_vm7, %v1430_v1, %v6839_v34  ;;  %v1518_v48 = vsel %vm1508_vm13, %v1515_v44, %v1517_v63  ;;  %vm1589_vm10 = vcmp.gt.s32.totalorder %v1588_v20, 0 }
 0x202   : > { %v954_v60 = vsel %vm952_vm0, %v6613_v56, %v8885_v33  ;;  %vm1065_vm14 = vcmp.lt.s32.totalorder %v5993_v41, 0  ;;  %v1427_v10 = vmul.u32 %v6815_v37, %v1411_v17  ;;  %v1522_v27 = vsel %vm1508_vm13, %v1519_v58, %v1521_v19 }
 0x203   : > { %v6928_v25 = vshll.u32 %v1483_v26, 8  ;;  %v1685_v2 = vshrl.u32 %v1684_v59, 23  ;;  %v1146_v53 = vmul.f32 %v1145_v46, %v1143_v8  ;;  %v8886_v12 = vmov %v8885_v33 }
 0x204   : > { %v2624_v34 = vsel %vm2622_vm12, %v6613_v56, %v8886_v12  ;;  %v8887_v47 = vxor.u32 2147483648, %v6613_v56  ;;  %v6940_v37 = vshrl.u32 %v1330_v7, 30  ;;  %v6942_v1 = vadd.s32 %v1431_v16, %v1427_v10 }
 0x205   : > { %v6945_v26 = vmul.u32.u64.low %v6928_v25, %v1518_v48  ;;  %v6946_v44 = vmul.u32.u64.high %v6928_v25, %v1518_v48, %v6945_v26  ;;  %v1590_v8 = vsel %vm1589_vm10, %v1588_v20, 0  ;;  %vm2621_vm15 = vcmp.lt.s32.totalorder %v6629_v24, 2 }
 0x206   : > { %v2627_v4 = vsel %vm2625_vm2, %v8887_v47, %v6626_v35  ;;  %8888 = vst [vmem:[#allocation69_spill] sm:$0xff] %v6940_v37  ;;  %v4519_v63 = vadd.s32 4294967294, %v1234_v51  ;;  %v6951_v59 = vmul.u32.u64.low %v6928_v25, %v1522_v27  ;;  %v6952_v17 = vmul.u32.u64.high %v6928_v25, %v1522_v27, %v6951_v59 }
 0x207   : > { %8889 = vst [vmem:[#allocation70_spill] sm:$0xff] %v6945_v26  ;;  %v958_v56 = vsel %vm951_vm5, %v954_v60, %v6792_v14  ;;  %v1045_v35 = vsel %vm962_vm1, %v1044_v36, %v6803_v52  ;;  %v8891_v7 = vand.u32 2147483647, %v5993_v41  ;;  %v2628_v24 = vsel %vm2621_vm15, %v2624_v34, %v2627_v4 }
 0x208   : > { %8890 = vst [vmem:[#allocation71_spill] sm:$0xff] %v6952_v17  ;;  %v4537_v20 = vadd.s32 4294967169, %v1685_v2  ;;  %v1147_v19 = vxor.u32 2147483648, %v1146_v53  ;;  %v1332_v33 = vshll.u32 %v6940_v37, 30  ;;  %v1512_v46 = vsel %vm1510_vm4, %v1500_v9, 2102212464 }
 0x209   : > { %vm6962_vm0 = vcmp.le.f32.partialorder %v8891_v7, 0.7853982  ;;  %v1592_v55 = vand.u32 31, %v1590_v8  ;;  %v6972_v14 = vsel %vm846_vm9, nan, %v6620_v30  ;;  %v6975_v52 = vand.u32 3, %v6638_v39  ;;  %v7101_v37 = vld [vmem:[%s5296_s17 + $0x10] sm:$0xff] }
 0x20a   : > { %v1433_v60 = vadd.s32 536870912, %v6942_v1  ;;  %v1491_v36 = vshrl.u32 %v8780_v62, %v6797_v11  ;;  %v6982_v51 = vsel %vm949_vm11, nan, %v958_v56  ;;  %v1149_v9 = vsub.s32 4, %v6447_v38 }
 0x20b   : > { %v6987_v16 = vsel %vm949_vm11, nan, %v2628_v24  ;;  %vm4520_vm1 = vcmp.lt.s32.totalorder %v4519_v63, 0  ;;  %v1048_v3 = vsel %vm6542_vm3, %v8861_v50, %v1045_v35  ;;  %v1513_v39 = vsel %vm1509_vm6, %v6874_v18, %v1512_v46 }
 0x20c   : > { %8894 = vst [vmem:[#allocation72_spill] sm:$0xff] %v6987_v16  ;;  %v1511_v30 = vsel %vm1507_vm8, %v1491_v36, %v6872_v57  ;;  %v1691_v11 = vadd.s32 1, %v4537_v20  ;;  %v1148_v48 = vsel %vm1065_vm14, %v1147_v19, %v1146_v53  ;;  %v7001_v49 = vmul.f32 0.0, %v6972_v14 }
 0x20d   : > { %v7004_v10 = vsub.s32 %v6879_v29, %v1332_v33  ;;  %v1593_v21 = vsub.s32 32, %v1592_v55  ;;  %v7006_v27 = vsel %vm4520_vm1, 0, %v4519_v63  ;;  %v7008_v2 = vshrl.u32 %v1433_v60, 30 }
 0x20e   : > { %8895 = vst [vmem:[#allocation73_spill] sm:$0xff] %v7001_v49  ;;  %v1533_v57 = vadd.s32 1, %v6946_v44  ;;  %v8691_v12 = vand.u32 2147483647, %v6431_v54  ;;  %4846 = vcosq.f32 %v1048_v3  ;;  %v7013_v18 = vmul.f32 0.0, %v6987_v16 }
 0x20f   : > { %8896 = vst [vmem:[#allocation74_spill] sm:$0xff] %v7004_v10  ;;  %8897 = vst [vmem:[#allocation75_spill] sm:$0xff] %v7008_v2  ;;  %v1514_v53 = vsel %vm1508_vm13, %v1511_v30, %v1513_v39  ;;  %vm1532_vm3 = vc.u32 %v6952_v17, %v6945_v26  ;;  %4848 = vsinq.f32 %v1048_v3  ;;  %v7022_v29 = vsel %vm1065_vm14, %v1149_v9, %v6447_v38 }
 0x210   : > { %8898 = vst [vmem:[#allocation76_spill] sm:$0xff] %v7013_v18  ;;  %vm1692_vm9 = vcmp.gt.s32.totalorder %v1691_v11, 0  ;;  %v1787_v34 = vand.u32 2139095040, %v6455_v5  ;;  %v7028_v47 = vsel %vm6962_vm0, %v5993_v41, %v1148_v48  ;;  %v1242_v23 = vsub.s32 4294967266, %v7006_v27 }
 0x211   : > { %v1335_v4 = vsub.s32 0, %v7004_v10  ;;  %v1605_v63 = vshrl.u32 %v8858_v43, %v1593_v21  ;;  %v1435_v59 = vshll.u32 %v7008_v2, 30  ;;  %v1530_v56 = vmul.u32 %v6928_v25, %v1514_v53 }
 0x212   : > { %v1534_v38 = vsel %vm1532_vm3, %v1533_v57, %v6946_v44  ;;  %v1585_v35 = vand.u32 8388607, %v8691_v12  ;;  %v1596_v7 = vshrl.u32 %v8781_v6, %v1593_v21  ;;  %v1602_v24 = vshrl.u32 %v8860_v31, %v1593_v21 }
 0x213   : > { %v1604_v20 = vshll.u32 %v8860_v31, %v1592_v55  ;;  %v1693_v19 = vsel %vm1692_vm9, %v1691_v11, 0  ;;  %v7041_v33 = vshrl.u32 %v1590_v8, 5  ;;  %v1599_v46 = vshrl.u32 %v8782_v42, %v1593_v21  ;;  %v8899_v8 = vld [vmem:[#allocation25_spill] sm:$0xff] }
 0x214   : > { %v1608_v60 = vshrl.u32 %v8859_v15, %v1593_v21  ;;  %v1788_v36 = vshrl.u32 %v1787_v34, 23  ;;  %v7045_v25 = vadd.s32 %v1534_v38, %v1530_v56  ;;  %v1595_v44 = vshll.u32 %v8780_v62, %v1592_v55  ;;  %8901 = vst [vmem:[#allocation25_spill] sm:$0xff] %v7101_v37 }
 0x215   : > { %v1601_v9 = vshll.u32 %v8782_v42, %v1592_v55  ;;  %v1606_v3 = vor.u32 %v1605_v63, %v1604_v20  ;;  %v1586_v30 = vor.u32 8388608, %v1585_v35  ;;  %v1598_v39 = vshll.u32 %v8781_v6, %v1592_v55 }
 0x216   : > { %v1607_v48 = vshll.u32 %v8858_v43, %v1592_v55  ;;  %v1695_v11 = vand.u32 31, %v1693_v19  ;;  %v7053_v57 = vadd.s32 %v8899_v8, %v6607_v32  ;;  %v1597_v34 = vor.u32 %v1596_v7, %v1595_v44 }
 0x217   : > { %v1603_v56 = vor.u32 %v1602_v24, %v1601_v9  ;;  %v1600_v38 = vor.u32 %v1599_v46, %v1598_v39  ;;  %vm1613_vm12 = vcmp.lt.s32.totalorder %v7041_v33, 4  ;;  %v4541_v40 = vadd.s32 4294967169, %v1788_v36 }
 0x218   : > { %v1609_v12 = vor.u32 %v1608_v60, %v1607_v48  ;;  %v7057_v63 = vpop.eup %4846  ;;  %v7061_v55 = vadd.s32 127, %v1242_v23  ;;  %v7064_v20 = vmin.u32 %v1335_v4, %v7004_v10  ;;  %v1619_v32 = vsel %vm1613_vm12, %v1606_v3, 920167782  ;;  %v8900_v48 = vld [vmem:[#allocation26_spill] sm:$0xff]  ;;  %v7105_v10 = vld [vmem:[%s5296_s17 + $0x8] sm:$0xff] }
 0x219   : > { %v7068_v7 = vpop.eup %4848  ;;  %v7071_v24 = vsub.s32 %v6942_v1, %v1435_v59  ;;  %v1536_v46 = vadd.s32 536870912, %v7045_v25  ;;  %v7074_v60 = vshll.u32 %v1586_v30, 8  ;;  %v1696_v36 = vsub.s32 32, %v1695_v11  ;;  %8902 = vst [vmem:[#allocation77_spill] sm:$0xff] %v7105_v10 }
 0x21a   : > { %v1594_v44 = vshrl.u32 %v8780_v62, %v1593_v21  ;;  %vm1610_vm2 = vcmp.lt.s32.totalorder %v7041_v33, 1  ;;  %vm1612_vm4 = vcmp.lt.s32.totalorder %v7041_v33, 3  ;;  %v1615_v23 = vsel %vm1613_vm12, %v1603_v56, 2102212464 }
 0x21b   : > { %v1618_v4 = vsel %vm1610_vm2, %v1597_v34, %v1600_v38  ;;  %v1620_v9 = vsel %vm1612_vm4, %v1603_v56, %v1619_v32  ;;  %v1623_v1 = vsel %vm1613_vm12, %v1609_v12, 1326507024  ;;  %v1794_v59 = vadd.s32 1, %v4541_v40 }
 0x21c   : > { %vm1611_vm5 = vcmp.lt.s32.totalorder %v7041_v33, 2  ;;  %v1614_v30 = vsel %vm1610_vm2, %v1594_v44, %v1597_v34  ;;  %v1890_v21 = vand.u32 2139095040, %v8900_v48  ;;  %v1616_v8 = vsel %vm1612_vm4, %v1600_v38, %v1615_v23  ;;  %v3983_v34 = vpop.permute.xlu0 %3982 }
 0x21d   : > { %v1622_v35 = vsel %vm1610_vm2, %v1600_v38, %v1603_v56  ;;  %v1705_v53 = vshrl.u32 %v8860_v31, %v1696_v36  ;;  %v1708_v54 = vshrl.u32 %v8858_v43, %v1696_v36  ;;  %v1621_v32 = vsel %vm1611_vm5, %v1618_v4, %v1620_v9  ;;  %v3981_v38 = vpop.permute.xlu1 %3980 }
 0x21e   : > { %v1624_v0 = vsel %vm1612_vm4, %v1606_v3, %v1623_v1  ;;  %v7090_v12 = vshrl.u32 %v1693_v19, 5  ;;  %v1711_v40 = vshrl.u32 %v8859_v15, %v1696_v36  ;;  %v1698_v44 = vshll.u32 %v8780_v62, %v1695_v11 }
 0x21f   : > { %v1704_v39 = vshll.u32 %v8782_v42, %v1695_v11  ;;  %v1707_v56 = vshll.u32 %v8860_v31, %v1695_v11  ;;  %vm1795_vm8 = vcmp.gt.s32.totalorder %v1794_v59, 0  ;;  %v1699_v23 = vshrl.u32 %v8781_v6, %v1696_v36 }
 0x220   : > { %v1702_v4 = vshrl.u32 %v8782_v42, %v1696_v36  ;;  %v1710_v3 = vshll.u32 %v8858_v43, %v1695_v11  ;;  %v1891_v19 = vshrl.u32 %v1890_v21, 23  ;;  %v1701_v9 = vshll.u32 %v8781_v6, %v1695_v11 }
 0x221   : > { %v1706_v1 = vor.u32 %v1705_v53, %v1704_v39  ;;  %v1709_v2 = vor.u32 %v1708_v54, %v1707_v56  ;;  %v3992_v26 = vsub.f32 %v7101_v37, %v3983_v34  ;;  %v1796_v22 = vsel %vm1795_vm8, %v1794_v59, 0 }
 0x222   : > { %v1712_v17 = vor.u32 %v1711_v40, %v1710_v3  ;;  %v4545_v45 = vadd.s32 4294967169, %v1891_v19  ;;  %v3991_v41 = vsub.f32 %v7105_v10, %v3981_v38  ;;  %v7108_v13 = vshrl.u32 %v1536_v46, 30 }
 0x223   : > { %v7111_v16 = vmul.u32.u64.low %v7074_v60, %v1621_v32  ;;  %v7112_v21 = vmul.u32.u64.high %v7074_v60, %v1621_v32, %v7111_v16  ;;  %v8903_v54 = vand.u32 2147483647, %v6451_v61  ;;  %4131 = vperm.xlu1 %4806, %v3992_v26   ;;  %v1700_v53 = vor.u32 %v1699_v23, %v1698_v44 }
 0x224   : > { %v1703_v39 = vor.u32 %v1702_v4, %v1701_v9  ;;  %vm1716_vm6 = vcmp.lt.s32.totalorder %v7090_v12, 4  ;;  %v1897_v59 = vadd.s32 1, %v4545_v45  ;;  %4126 = vperm.xlu0 %4805, %v3991_v41   ;;  %v7120_v40 = vsel %vm1611_vm5, %v1614_v30, %v1616_v8 }
 0x225   : > { %v1688_v11 = vand.u32 8388607, %v8903_v54  ;;  %v1625_v46 = vsel %vm1611_vm5, %v1622_v35, %v1624_v0  ;;  %v1722_v32 = vsel %vm1716_vm6, %v1709_v2, 920167782  ;;  %v1798_v34 = vand.u32 31, %v1796_v22 }
 0x226   : > { %v1697_v56 = vshrl.u32 %v8780_v62, %v1696_v36  ;;  %v1718_v38 = vsel %vm1716_vm6, %v1706_v1, 2102212464  ;;  %v1726_v3 = vsel %vm1716_vm6, %v1712_v17, 1326507024  ;;  %vm1898_vm7 = vcmp.gt.s32.totalorder %v1897_v59, 0 }
 0x227   : > { %v1689_v26 = vor.u32 8388608, %v1688_v11  ;;  %vm1713_vm11 = vcmp.lt.s32.totalorder %v7090_v12, 1  ;;  %vm1715_vm13 = vcmp.lt.s32.totalorder %v7090_v12, 3  ;;  %v1899_v41 = vsel %vm1898_vm7, %v1897_v59, 0 }
 0x228   : > { %v1717_v45 = vsel %vm1713_vm11, %v1697_v56, %v1700_v53  ;;  %v1721_v44 = vsel %vm1713_vm11, %v1700_v53, %v1703_v39  ;;  %v1723_v30 = vsel %vm1715_vm13, %v1706_v1, %v1722_v32  ;;  %v8710_v8 = vand.u32 2147483647, %v6455_v5 }
 0x229   : > { %v8904_v33 = vmov 0   ;;  %v1719_v0 = vsel %vm1715_vm13, %v1703_v39, %v1718_v38  ;;  %v1725_v35 = vsel %vm1713_vm11, %v1703_v39, %v1706_v1  ;;  %v1727_v23 = vsel %vm1715_vm13, %v1709_v2, %v1726_v3 }
 0x22a   : > { %4807 = vset.pattern.permute.xlu0 %v8904_v33  ;;  %v7129_v36 = vsub.s32 32, %v1798_v34  ;;  %v7132_v17 = vmul.u32.u64.low %v7074_v60, %v1625_v46  ;;  %v7133_v4 = vmul.u32.u64.high %v7074_v60, %v1625_v46, %v7132_v17  ;;  %vm1714_vm10 = vcmp.lt.s32.totalorder %v7090_v12, 2 }
 0x22b   : > { %v1901_v19 = vand.u32 31, %v1899_v41  ;;  %v1724_v54 = vsel %vm1714_vm10, %v1721_v44, %v1723_v30  ;;  %v7138_v11 = vshll.u32 %v1689_v26, 8  ;;  %v7142_v1 = vadd.s32 1, %v7112_v21 }
 0x22c   : > { %v7144_v2 = vsel %vm1714_vm10, %v1717_v45, %v1719_v0  ;;  %v1728_v39 = vsel %vm1714_vm10, %v1725_v35, %v1727_v23  ;;  %v7148_v59 = vand.u32 8388607, %v8710_v8  ;;  %v1802_v12 = vshrl.u32 %v8781_v6, %v7129_v36 }
 0x22d   : > { %v1805_v46 = vshrl.u32 %v8782_v42, %v7129_v36  ;;  %v1808_v32 = vshrl.u32 %v8860_v31, %v7129_v36  ;;  %v1811_v56 = vshrl.u32 %v8858_v43, %v7129_v36  ;;  %v1814_v26 = vshrl.u32 %v8859_v15, %v7129_v36 }
 0x22e   : > { %v7159_v38 = vmul.u32.u64.low %v7138_v11, %v1724_v54  ;;  %v7160_v3 = vmul.u32.u64.high %v7138_v11, %v1724_v54, %v7159_v38  ;;  %v7165_v45 = vsub.s32 32, %v1901_v19  ;;  %v1801_v44 = vshll.u32 %v8780_v62, %v1798_v34 }
 0x22f   : > { %v1804_v30 = vshll.u32 %v8781_v6, %v1798_v34  ;;  %v1807_v0 = vshll.u32 %v8782_v42, %v1798_v34  ;;  %v1810_v35 = vshll.u32 %v8860_v31, %v1798_v34  ;;  %v7175_v54 = vshrl.u32 %v1796_v22, 5 }
 0x230   : > { %v7172_v23 = vmul.u32.u64.low %v7138_v11, %v1728_v39  ;;  %v7173_v17 = vmul.u32.u64.high %v7138_v11, %v1728_v39, %v7172_v23  ;;  %v1813_v8 = vshll.u32 %v8858_v43, %v1798_v34  ;;  %v7178_v9 = vor.u32 %v1802_v12, %v1801_v44 }
 0x231   : > { %v7180_v53 = vor.u32 %v1805_v46, %v1804_v30  ;;  %v7182_v5 = vor.u32 %v1808_v32, %v1807_v0  ;;  %v1812_v61 = vor.u32 %v1811_v56, %v1810_v35  ;;  %vm1635_vm14 = vc.u32 %v7133_v4, %v7111_v16 }
 0x232   : > { %v1815_v37 = vor.u32 %v1814_v26, %v1813_v8  ;;  %v7186_v10 = vshrl.u32 %v1899_v41, 5  ;;  %v1913_v39 = vshll.u32 %v8860_v31, %v1901_v19  ;;  %v1914_v22 = vshrl.u32 %v8858_v43, %v7165_v45 }
 0x233   : > { %v1905_v34 = vshrl.u32 %v8781_v6, %v7165_v45  ;;  %v1908_v12 = vshrl.u32 %v8782_v42, %v7165_v45  ;;  %v1911_v46 = vshrl.u32 %v8860_v31, %v7165_v45  ;;  %v1917_v32 = vshrl.u32 %v8859_v15, %v7165_v45 }
 0x234   : > { %vm1816_vm15 = vcmp.lt.s32.totalorder %v7175_v54, 1  ;;  %vm1819_vm1 = vcmp.lt.s32.totalorder %v7175_v54, 4  ;;  %v1915_v41 = vor.u32 %v1914_v22, %v1913_v39  ;;  %v1916_v8 = vshll.u32 %v8858_v43, %v1901_v19 }
 0x235   : > { %v1825_v56 = vsel %vm1819_vm1, %v1812_v61, 920167782  ;;  %v1904_v26 = vshll.u32 %v8780_v62, %v1901_v19  ;;  %v1907_v44 = vshll.u32 %v8781_v6, %v1901_v19  ;;  %v1910_v30 = vshll.u32 %v8782_v42, %v1901_v19 }
 0x236   : > { %vm1818_vm3 = vcmp.lt.s32.totalorder %v7175_v54, 3  ;;  %v1829_v31 = vsel %vm1819_vm1, %v1815_v37, 1326507024  ;;  %v8905_v15 = vand.u32 2147483647, %v8900_v48  ;;  %v1918_v35 = vor.u32 %v1917_v32, %v1916_v8 }
 0x237   : > { %v7212_v23 = vor.u32 %v1905_v34, %v1904_v26  ;;  %v7214_v43 = vor.u32 %v1908_v12, %v1907_v44  ;;  %v1912_v39 = vor.u32 %v1911_v46, %v1910_v30  ;;  %vm1922_vm9 = vcmp.lt.s32.totalorder %v7186_v10, 4  ;;  %v3985_v34 = vpop.permute.xlu1 %3984 }
 0x238   : > { %v1894_v0 = vand.u32 8388607, %v8905_v15  ;;  %v1792_v6 = vor.u32 8388608, %v7148_v59  ;;  %v1824_v42 = vsel %vm1816_vm15, %v7178_v9, %v7180_v53  ;;  %v1826_v37 = vsel %vm1818_vm3, %v7182_v5, %v1825_v56 }
 0x239   : > { %v1928_v19 = vsel %vm1922_vm9, %v1915_v41, 920167782  ;;  %vm1738_vm12 = vc.u32 %v7173_v17, %v7159_v38  ;;  %v1739_v22 = vadd.s32 1, %v7160_v3  ;;  %vm1817_vm2 = vcmp.lt.s32.totalorder %v7175_v54, 2  ;;  %v8918_v54 = vld [vmem:[#allocation61_spill] sm:$0xff] }
 0x23a   : > { %v1828_v59 = vsel %vm1816_vm15, %v7180_v53, %v7182_v5  ;;  %v1830_v12 = vsel %vm1818_vm3, %v1812_v61, %v1829_v31  ;;  %vm1919_vm4 = vcmp.lt.s32.totalorder %v7186_v10, 1  ;;  %vm1921_vm5 = vcmp.lt.s32.totalorder %v7186_v10, 3  ;;  %v7257_v31 = vld [vmem:[%s5296_s17 + $0x18] sm:$0xff] }
 0x23b   : > { %v1932_v46 = vsel %vm1922_vm9, %v1918_v35, 1326507024  ;;  %v1827_v32 = vsel %vm1817_vm2, %v1824_v42, %v1826_v37  ;;  %v1895_v8 = vor.u32 8388608, %v1894_v0  ;;  %v1927_v56 = vsel %vm1919_vm4, %v7212_v23, %v7214_v43 }
 0x23c   : > { %v1929_v26 = vsel %vm1921_vm5, %v1912_v39, %v1928_v19  ;;  %v7249_v61 = vshll.u32 %v1792_v6, 8  ;;  %v1931_v44 = vsel %vm1919_vm4, %v7214_v43, %v1912_v39  ;;  %v1933_v30 = vsel %vm1921_vm5, %v1915_v41, %v1932_v46 }
 0x23d   : > { %v3993_v15 = vsub.f32 %v7257_v31, %v3985_v34  ;;  %v1637_v0 = vsel %vm1635_vm14, %v7142_v1, %v7112_v21  ;;  %v1740_v35 = vsel %vm1738_vm12, %v1739_v22, %v7160_v3  ;;  %v1831_v6 = vsel %vm1817_vm2, %v1828_v59, %v1830_v12  ;;  %v8906_v21 = vld [vmem:[#allocation17_spill] sm:$0xff]  ;;  %v8907_v1 = vld [vmem:[#allocation42_spill] sm:$0xff]  ;;  %v8908_v34 = vld [vmem:[#allocation16_spill] sm:$0xff] }
 0x23e   : > { %vm1920_vm8 = vcmp.lt.s32.totalorder %v7186_v10, 2  ;;  %v7273_v41 = vmul.u32.u64.low %v7249_v61, %v1827_v32  ;;  %v7274_v42 = vmul.u32.u64.high %v7249_v61, %v1827_v32, %v7273_v41  ;;  %v241_v19 = vmul.f32 %v8907_v1, %v8906_v21  ;;  %v8909_v12 = vld [vmem:[#allocation43_spill] sm:$0xff] }
 0x23f   : > { %v1930_v37 = vsel %vm1920_vm8, %v1927_v56, %v1929_v26  ;;  %4136 = vperm.xlu1 %4806, %v3993_v15   ;;  %v1736_v3 = vmul.u32 %v7138_v11, %v7144_v2  ;;  %v1934_v22 = vsel %vm1920_vm8, %v1931_v44, %v1933_v30  ;;  %v7285_v59 = vshll.u32 %v1895_v8, 8 }
 0x240   : > { %v243_v46 = vmul.f32 %v8909_v12, %v8908_v34  ;;  %v8910_v32 = vmul.u32 %v7074_v60, %v7120_v40  ;;  %v7295_v56 = vmul.u32.u64.low %v7249_v61, %v1831_v6  ;;  %v7296_v26 = vmul.u32.u64.high %v7249_v61, %v1831_v6, %v7295_v56  ;;  %v8911_v40 = vld [vmem:[#allocation19_spill] sm:$0xff]  ;;  %v8914_v12 = vld [vmem:[#allocation18_spill] sm:$0xff] }
 0x241   : > { %v248_v15 = vmul.f32 %v241_v19, %v241_v19  ;;  %v1538_v11 = vshll.u32 %v7108_v13, 30  ;;  %v7299_v2 = vadd.s32 %v1740_v35, %v1736_v3  ;;  %v8913_v1 = vsub.s32 32, %v7006_v27 }
 0x242   : > { %v7292_v48 = vadd.s32 %v1637_v0, %v8910_v32  ;;  %v7302_v8 = vmul.u32.u64.low %v7285_v59, %v1930_v37  ;;  %v7303_v44 = vmul.u32.u64.high %v7285_v59, %v1930_v37, %v7302_v8  ;;  %v249_v60 = vmul.f32 %v243_v46, %v243_v46  ;;  %v8912_v0 = vld [vmem:[#allocation21_spill] sm:$0xff]  ;;  %v8915_v46 = vld [vmem:[#allocation38_spill] sm:$0xff] }
 0x243   : > { %v7307_v30 = vmul.u32.u64.low %v7285_v59, %v1934_v22  ;;  %v7308_v21 = vmul.u32.u64.high %v7285_v59, %v1934_v22, %v7307_v30  ;;  %3712 = vperm.xlu0 %4807, %v248_v15   ;;  %4808 = vset.pattern.permute.xlu1 %v8904_v33  ;;  %v247_v6 = vmul.f32 %v8912_v0, %v8911_v40  ;;  %v1240_v35 = vshrl.u32 %v7053_v57, %v8913_v1 }
 0x244   : > { %v1244_v19 = vshll.u32 %v7061_v55, 23  ;;  %v1337_v37 = vclz %v7064_v20  ;;  %v1821_v3 = vsel %vm1819_vm1, %v7182_v5, 2102212464  ;;  %v1639_v22 = vadd.s32 536870912, %v7292_v48  ;;  %3717 = vperm.xlu1 %4808, %v249_v60  }
 0x245   : > { %v1800_v33 = vshrl.u32 %v8780_v62, %v7129_v36  ;;  %v251_v34 = vmul.f32 %v247_v6, %v247_v6  ;;  %v245_v32 = vmul.f32 %v8915_v46, %v8914_v12  ;;  %v1438_v57 = vsub.s32 0, %v7071_v24 }
 0x246   : > { %v7328_v55 = vsub.s32 %v7045_v25, %v1538_v11  ;;  %v1742_v20 = vadd.s32 536870912, %v7299_v2  ;;  %v1924_v5 = vsel %vm1922_vm9, %v1912_v39, 2102212464  ;;  %v1822_v36 = vsel %vm1818_vm3, %v7180_v53, %v1821_v3 }
 0x247   : > { %v1820_v56 = vsel %vm1816_vm15, %v1800_v33, %v7178_v9  ;;  %v1903_v15 = vshrl.u32 %v8780_v62, %v7165_v45  ;;  %3727 = vperm.xlu0 %4807, %v251_v34   ;;  %v250_v30 = vmul.f32 %v245_v32, %v245_v32  ;;  %v8916_v25 = vshll.u32 %v6819_v28, %v7006_v27 }
 0x248   : > { %v1245_v60 = vor.u32 4788187, %v1244_v19  ;;  %v4523_v40 = vadd.s32 4294967294, %v1337_v37  ;;  %v1842_v39 = vadd.s32 1, %v7274_v42  ;;  %v7345_v0 = vshrl.u32 %v1639_v22, 30 }
 0x249   : > { %v1241_v11 = vor.u32 %v1240_v35, %v8916_v25  ;;  %vm1841_vm6 = vc.u32 %v7296_v26, %v7273_v41  ;;  %v1923_v9 = vsel %vm1919_vm4, %v1903_v15, %v7212_v23  ;;  %v1925_v62 = vsel %vm1921_vm5, %v7214_v43, %v1924_v5  ;;  %3722 = vperm.xlu1 %4808, %v250_v30   ;;  %v8919_v35 = vld [vmem:[#allocation37_spill] sm:$0xff]  ;;  %v8921_v5 = vld [vmem:[#allocation62_spill] sm:$0xff]  ;;  %v4954_v30 = vld [vmem:[%s5296_s17] sm:$0xff]  ;;  %s5019_s17 = scalar_lea.vmem %s5018_s5, 8192 }
 0x24a   : > { %v4526_v28 = vmin.u32 %v1438_v57, %v7071_v24  ;;  %v1541_v27 = vsub.s32 0, %v7328_v55  ;;  %v1823_v53 = vsel %vm1817_vm2, %v1820_v56, %v1822_v36  ;;  %v1945_v45 = vadd.s32 1, %v7303_v44  ;;  %p5021_p0 = scmp.lt.s32.totalorder %s5019_s17, %s5013_s28 }
 0x24b   : > { %v1152_v6 = vsel %vm6962_vm0, 0, %v7022_v29  ;;  %4850 = vcosq.f32 %v7028_v47  ;;  %vm2726_vm7 = vcmp.eq.s32.totalorder %v6975_v52, 0  ;;  %vm2729_vm11 = vcmp.eq.s32.totalorder %v6975_v52, 2 }
 0x24c   : > { %v7366_v23 = vshrl.u32 %v1742_v20, 30  ;;  %vm1944_vm13 = vc.u32 %v7308_v21, %v7302_v8  ;;  %v8917_v43 = vmov 4   ;;  %vm1055_vm10 = vcmp.eq.s32.totalorder %v8918_v54, 0  ;;  %p5022_p6 = por %p5021_p0, %p5020_p5 }
 0x24d   : > { %4810 = vset.pattern.permute.xlu0 %v8917_v43  ;;  %vm1058_vm14 = vcmp.eq.s32.totalorder %v8918_v54, 2  ;;  %4852 = vsinq.f32 %v7028_v47  ;;  %v1246_v58 = vand.u32 2147483647, %v1245_v60  ;;  %v1843_v29 = vsel %vm1841_vm6, %v1842_v39, %v7274_v42  ;;  %4809 = vset.pattern.permute.xlu1 %v8917_v43  ;;  %v8920_v42 = vld [vmem:[#allocation40_spill] sm:$0xff] }
 0x24e   : > { %v1926_v1 = vsel %vm1920_vm8, %v1923_v9, %v1925_v62  ;;  %4167 = vperm.xlu0 %4810, %v8919_v35   ;;  %vm4524_vm0 = vcmp.lt.s32.totalorder %v4523_v40, 0  ;;  %v1641_v19 = vshll.u32 %v7345_v0, 30  ;;  %v1839_v37 = vmul.u32 %v7249_v61, %v1823_v53  ;;  %4162 = vperm.xlu1 %4809, %v8920_v42   ;;  %v8924_v9 = vld [vmem:[#allocation39_spill] sm:$0xff]  ;;  %p5023_p13 = pnand %p5022_p6, %p5016_p4 }
 0x24f   : > { %vm2725_vm15 = vcmp.lt.s32.totalorder %v6975_v52, 2  ;;  %v1248_v47 = vcvt.s32.f32 %v1241_v11  ;;  %v1440_v3 = vclz %v4526_v28  ;;  %v4530_v22 = vmin.u32 %v1541_v27, %v7328_v55  ;;  %v8922_v11 = vld [vmem:[#allocation63_spill] sm:$0xff] }
 0x250   : > { %v1946_v10 = vsel %vm1944_vm13, %v1945_v45, %v7303_v44  ;;  %vm1054_vm1 = vcmp.lt.s32.totalorder %v8918_v54, 2  ;;  %v2827_v33 = vadd.s32 3, %v1152_v6  ;;  %v1744_v61 = vshll.u32 %v7366_v23, 30 }
 0x251   : > { %v7393_v34 = vadd.s32 %v1843_v29, %v1839_v37  ;;  %v1942_v12 = vmul.u32 %v7285_v59, %v1926_v1  ;;  %v1056_v46 = vxor.u32 2147483648, %v7068_v7  ;;  %v1059_v32 = vxor.u32 2147483648, %v7057_v63 }
 0x252   : > { %v1249_v57 = vmul.f32 %v1248_v47, %v1246_v58  ;;  %v7399_v20 = vsel %vm4524_vm0, 0, %v4523_v40  ;;  %v5131_v44 = vmov 2   ;;  %vm1052_vm3 = vweird.f32 %v8861_v50  ;;  %4172 = vperm.xlu1 %4809, %v8924_v9   ;;  %v8925_v47 = vld [vmem:[#allocation72_spill] sm:$0xff]  ;;  %v8933_v9 = vld [vmem:[#allocation65_spill] sm:$0xff] }
 0x253   : > { %4811 = vset.pattern.permute.xlu0 %v5131_v44  ;;  %v3879_v36 = vmul.f32 0.0, %v6982_v51  ;;  %v7406_v15 = vsub.s32 %v7292_v48, %v1641_v19  ;;  %v7408_v59 = vadd.s32 %v1946_v10, %v1942_v12  ;;  %v7415_v60 = vadd.f32 %v8922_v11, %v6972_v14 }
 0x254   : > { %3779 = vperm.xlu0 %4811, %v4954_v30   ;;  %v4527_v40 = vadd.s32 4294967294, %v1440_v3  ;;  %v1543_v39 = vclz %v4530_v22  ;;  %v7418_v62 = vand.u32 3, %v1152_v6  ;;  %v1345_v48 = vsub.s32 4294967266, %v7399_v20  ;;  %v8927_v22 = vld [vmem:[#allocation28_spill] sm:$0xff] }
 0x255   : > { %8923 = vst [vmem:[#allocation17_spill] sm:$0xff] %v7415_v60  ;;  %v7422_v28 = vsub.s32 %v7299_v2, %v1744_v61  ;;  %v1845_v27 = vadd.s32 536870912, %v7393_v34  ;;  %v2728_v53 = vsel %vm2726_vm7, %v7057_v63, %v1056_v46  ;;  %v2731_v45 = vsel %vm2729_vm11, %v1059_v32, %v7068_v7  ;;  %v7433_v6 = vpop.eup %4850  ;;  %v8928_v61 = vld [vmem:[#allocation77_spill] sm:$0xff] }
 0x256   : > { %v7431_v58 = vand.u32 3, %v2827_v33  ;;  %v1250_v29 = vxor.u32 2147483648, %v1249_v57  ;;  %v1057_v2 = vsel %vm1055_vm10, %v7057_v63, %v1056_v46  ;;  %v1060_v1 = vsel %vm1058_vm14, %v1059_v32, %v7068_v7  ;;  %4812 = vset.pattern.permute.xlu1 %v5131_v44  ;;  %v8946_v46 = vld [vmem:[#allocation70_spill] sm:$0xff] }
 0x257   : > { %v1644_v35 = vsub.s32 0, %v7406_v15  ;;  %v1948_v19 = vadd.s32 536870912, %v7408_v59  ;;  %v4853_v37 = vpop.eup %4852  ;;  %v7445_v3 = vadd.f32 %v3879_v36, %v8925_v47  ;;  %vm1168_vm9 = vcmp.lt.s32.totalorder %v8927_v22, 0  ;;  %3783 = vperm.xlu1 %4812, %v8928_v61  }
 0x258   : > { %3791 = vperm.xlu0 %4811, %v7257_v31   ;;  %vm4528_vm12 = vcmp.lt.s32.totalorder %v4527_v40, 0  ;;  %v4531_v10 = vadd.s32 4294967294, %v1543_v39  ;;  %v2732_v63 = vsel %vm2725_vm15, %v2728_v53, %v2731_v45  ;;  %v1346_v42 = vadd.s32 127, %v1345_v48  ;;  %v8932_v39 = vld [vmem:[#allocation66_spill] sm:$0xff]  ;;  %v8934_v45 = vld [vmem:[#allocation25_spill] sm:$0xff] }
 0x259   : > { %8926 = vst [vmem:[#allocation42_spill] sm:$0xff] %v7445_v3  ;;  %v1747_v7 = vsub.s32 0, %v7422_v28  ;;  %v7451_v33 = vshrl.u32 %v1845_v27, 30  ;;  %v1061_v31 = vsel %vm1054_vm1, %v1057_v2, %v1060_v1  ;;  %vm2830_vm2 = vcmp.eq.s32.totalorder %v7431_v58, 0  ;;  %v8935_v1 = vld [vmem:[#allocation23_spill] sm:$0xff] }
 0x25a   : > { %v8929_v12 = vand.u32 2147483647, %v8927_v22  ;;  %v1251_v52 = vsel %vm1168_vm9, %v1250_v29, %v1249_v57  ;;  %vm1158_vm5 = vcmp.eq.s32.totalorder %v7418_v62, 0  ;;  %vm1161_vm8 = vcmp.eq.s32.totalorder %v7418_v62, 2 }
 0x25b   : > { %vm2829_vm6 = vcmp.lt.s32.totalorder %v7431_v58, 2  ;;  %v1341_v54 = vsub.s32 32, %v7399_v20  ;;  %v7470_v32 = vsel %vm4528_vm12, 0, %v4527_v40  ;;  %v4534_v44 = vmin.u32 %v1644_v35, %v7406_v15  ;;  %3787 = vperm.xlu1 %4812, %v8934_v45  }
 0x25c   : > { %vm7459_vm4 = vcmp.le.f32.partialorder %v8929_v12, 0.7853982  ;;  %v7473_v36 = vshrl.u32 %v1948_v19, 30  ;;  %4813 = vset.pattern.permute.xlu0 %v8917_v43  ;;  %v1159_v30 = vxor.u32 2147483648, %v4853_v37  ;;  %v1162_v57 = vxor.u32 2147483648, %v7433_v6 }
 0x25d   : > { %v7479_v11 = vsel %vm1052_vm3, nan, %v2732_v63  ;;  %vm4532_vm7 = vcmp.lt.s32.totalorder %v4531_v10, 0  ;;  %v1325_v48 = vadd.s32 %v8933_v9, %v8932_v39  ;;  %v1347_v27 = vshll.u32 %v1346_v42, 23 }
 0x25e   : > { %v4538_v40 = vmin.u32 %v1747_v7, %v7422_v28  ;;  %v1847_v53 = vshll.u32 %v7451_v33, 30  ;;  %v7488_v43 = vsel %vm1052_vm3, nan, %v1061_v31  ;;  %vm1157_vm11 = vcmp.lt.s32.totalorder %v7418_v62, 2  ;;  %v8937_v31 = vld [vmem:[#allocation64_spill] sm:$0xff] }
 0x25f   : > { %vm2833_vm13 = vcmp.eq.s32.totalorder %v7431_v58, 2  ;;  %v1254_v29 = vsel %vm7459_vm4, %v8927_v22, %v1251_v52  ;;  %v1448_v2 = vsub.s32 4294967266, %v7470_v32  ;;  %vm1155_vm10 = vweird.f32 %v8935_v1  ;;  %v8938_v52 = vld [vmem:[#allocation74_spill] sm:$0xff] }
 0x260   : > { %v1343_v35 = vshrl.u32 %v1325_v48, %v1341_v54  ;;  %v7497_v19 = vsel %vm4532_vm7, 0, %v4531_v10  ;;  %v1646_v63 = vclz %v4534_v44  ;;  %v1950_v50 = vshll.u32 %v7473_v36, 30 }
 0x261   : > { %v2832_v42 = vsel %vm2830_vm2, %v7433_v6, %v1159_v30  ;;  %v2835_v7 = vsel %vm2833_vm13, %v1162_v57, %v4853_v37  ;;  %v7504_v61 = vmul.f32 0.0, %v7479_v11  ;;  %v1252_v12 = vsub.s32 4, %v8937_v31 }
 0x262   : > { %v1342_v39 = vshll.u32 %v8938_v52, %v7399_v20  ;;  %v1348_v9 = vor.u32 4788187, %v1347_v27  ;;  %v1749_v54 = vclz %v4538_v40  ;;  %v7510_v10 = vsub.s32 %v7393_v34, %v1847_v53 }
 0x263   : > { %8936 = vst [vmem:[#allocation16_spill] sm:$0xff] %v7504_v61  ;;  %v3880_v44 = vmul.f32 0.0, %v7488_v43  ;;  %4854 = vcosq.f32 %v1254_v29  ;;  %v1449_v48 = vadd.s32 127, %v1448_v2  ;;  %v1551_v45 = vsub.s32 4294967266, %v7497_v19 }
 0x264   : > { %4856 = vsinq.f32 %v1254_v29  ;;  %v1344_v25 = vor.u32 %v1343_v35, %v1342_v39  ;;  %v4535_v56 = vadd.s32 4294967294, %v1646_v63  ;;  %v7515_v3 = vsub.s32 %v7408_v59, %v1950_v50 }
 0x265   : > { %v1160_v20 = vsel %vm1158_vm5, %v7433_v6, %v1159_v30  ;;  %v1163_v34 = vsel %vm1161_vm8, %v1162_v57, %v4853_v37  ;;  %v2836_v27 = vsel %vm2829_vm6, %v2832_v42, %v2835_v7  ;;  %v1444_v40 = vsub.s32 32, %v7470_v32  ;;  %v8939_v6 = vld [vmem:[#allocation44_spill] sm:$0xff]  ;;  %v8940_v30 = vld [vmem:[#allocation67_spill] sm:$0xff] }
 0x266   : > { %v1253_v53 = vsel %vm1168_vm9, %v1252_v12, %v8937_v31  ;;  %v1349_v29 = vand.u32 2147483647, %v1348_v9  ;;  %v4539_v2 = vadd.s32 4294967294, %v1749_v54  ;;  %v1850_v59 = vsub.s32 0, %v7510_v10  ;;  %v8941_v37 = vld [vmem:[#allocation68_spill] sm:$0xff] }
 0x267   : > { %vm1271_vm14 = vcmp.lt.s32.totalorder %v8939_v6, 0  ;;  %v1428_v57 = vadd.s32 %v8941_v37, %v8940_v30  ;;  %v1450_v58 = vshll.u32 %v1449_v48, 23  ;;  %v1552_v63 = vadd.s32 127, %v1551_v45  ;;  %v8947_v37 = vld [vmem:[#allocation69_spill] sm:$0xff] }
 0x268   : > { %v1164_v50 = vsel %vm1157_vm11, %v1160_v20, %v1163_v34  ;;  %v1351_v42 = vcvt.s32.f32 %v1344_v25  ;;  %vm4536_vm0 = vcmp.lt.s32.totalorder %v4535_v56, 0  ;;  %v1953_v7 = vsub.s32 0, %v7515_v3  ;;  %v8945_v20 = vld [vmem:[#allocation71_spill] sm:$0xff] }
 0x269   : > { %v7539_v31 = vsel %vm1155_vm10, nan, %v2836_v27  ;;  %v1255_v12 = vsel %vm7459_vm4, 0, %v1253_v53  ;;  %v1446_v52 = vshrl.u32 %v1428_v57, %v1444_v40  ;;  %v1547_v39 = vsub.s32 32, %v7497_v19 }
 0x26a   : > { %v8942_v9 = vand.u32 2147483647, %v8939_v6  ;;  %v1352_v25 = vmul.f32 %v1351_v42, %v1349_v29  ;;  %v1445_v62 = vshll.u32 %v7071_v24, %v7470_v32  ;;  %vm4540_vm1 = vcmp.lt.s32.totalorder %v4539_v2, 0 }
 0x26b   : > { %v4542_v48 = vmin.u32 %v1850_v59, %v7510_v10  ;;  %v1451_v45 = vor.u32 4788187, %v1450_v58  ;;  %v1531_v34 = vadd.s32 %v8946_v46, %v8945_v20  ;;  %v1553_v27 = vshll.u32 %v1552_v63, 23 }
 0x26c   : > { %vm7546_vm15 = vcmp.le.f32.partialorder %v8942_v9, 0.7853982  ;;  %v7555_v40 = vsel %vm4536_vm0, 0, %v4535_v56  ;;  %v7559_v53 = vsel %vm1155_vm10, nan, %v1164_v50  ;;  %v1259_v30 = vand.u32 3, %v1255_v12 }
 0x26d   : > { %v1355_v29 = vsub.s32 4, %v8947_v37  ;;  %v4546_v57 = vmin.u32 %v1953_v7, %v7515_v3  ;;  %v7563_v24 = vpop.eup %4854  ;;  %v7566_v32 = vadd.f32 %v3880_v44, %v7479_v11  ;;  %v1447_v59 = vor.u32 %v1446_v52, %v1445_v62 }
 0x26e   : > { %v1549_v58 = vshrl.u32 %v1531_v34, %v1547_v39  ;;  %v7568_v42 = vsel %vm4540_vm1, 0, %v4539_v2  ;;  %v7570_v56 = vpop.eup %4856  ;;  %v7573_v1 = vmul.f32 0.0, %v7539_v31  ;;  %v1353_v63 = vxor.u32 2147483648, %v1352_v25 }
 0x26f   : > { %8948 = vst [vmem:[#allocation43_spill] sm:$0xff] %v7566_v32  ;;  %v1654_v50 = vsub.s32 4294967266, %v7555_v40  ;;  %v1852_v9 = vclz %v4542_v48  ;;  %v3881_v7 = vmul.f32 0.0, %v7559_v53  ;;  %v1452_v20 = vand.u32 2147483647, %v1451_v45 }
 0x270   : > { %8949 = vst [vmem:[#allocation19_spill] sm:$0xff] %v7573_v1  ;;  %v1548_v44 = vshll.u32 %v7328_v55, %v7497_v19  ;;  %v1554_v46 = vor.u32 4788187, %v1553_v27  ;;  %vm1260_vm3 = vcmp.lt.s32.totalorder %v1259_v30, 2  ;;  %v1356_v2 = vsel %vm1271_vm14, %v1355_v29, %v8947_v37  ;;  %v8950_v55 = vld [vmem:[#allocation45_spill] sm:$0xff] }
 0x271   : > { %v1757_v52 = vsub.s32 4294967266, %v7568_v42  ;;  %v1955_v39 = vclz %v4546_v57  ;;  %v1454_v48 = vcvt.s32.f32 %v1447_v59  ;;  %vm1261_vm9 = vcmp.eq.s32.totalorder %v1259_v30, 0 }
 0x272   : > { %v1550_v35 = vor.u32 %v1549_v58, %v1548_v44  ;;  %v1354_v45 = vsel %vm1271_vm14, %v1353_v63, %v1352_v25  ;;  %vm1374_vm12 = vcmp.lt.s32.totalorder %v8950_v55, 0  ;;  %v1655_v19 = vadd.s32 127, %v1654_v50 }
 0x273   : > { %v4543_v27 = vadd.s32 4294967294, %v1852_v9  ;;  %vm1264_vm2 = vcmp.eq.s32.totalorder %v1259_v30, 2  ;;  %v1358_v37 = vsel %vm7546_vm15, 0, %v1356_v2  ;;  %v1455_v29 = vmul.f32 %v1454_v48, %v1452_v20  ;;  %v8956_v48 = vld [vmem:[#allocation75_spill] sm:$0xff] }
 0x274   : > { %v1555_v57 = vand.u32 2147483647, %v1554_v46  ;;  %v2931_v32 = vadd.s32 3, %v1255_v12  ;;  %v1650_v62 = vsub.s32 32, %v7555_v40  ;;  %v1758_v34 = vadd.s32 127, %v1757_v52 }
 0x275   : > { %v4547_v59 = vadd.s32 4294967294, %v1955_v39  ;;  %v8951_v58 = vxor.u32 2147483648, %v7570_v56  ;;  %v8952_v25 = vxor.u32 2147483648, %v7563_v24  ;;  %v1357_v50 = vsel %vm7546_vm15, %v8939_v6, %v1354_v45  ;;  %v8957_v45 = vld [vmem:[#allocation22_spill] sm:$0xff] }
 0x276   : > { %v8953_v9 = vand.u32 2147483647, %v8950_v55  ;;  %v1557_v20 = vcvt.s32.f32 %v1550_v35  ;;  %vm1258_vm5 = vweird.f32 %v8927_v22  ;;  %v1634_v46 = vadd.s32 %v7111_v16, %v7133_v4 }
 0x277   : > { %v1263_v44 = vsel %vm1261_vm9, %v7563_v24, %v8951_v58  ;;  %v1266_v63 = vsel %vm1264_vm2, %v8952_v25, %v7570_v56  ;;  %v1656_v2 = vshll.u32 %v1655_v19, 23  ;;  %v1753_v52 = vsub.s32 32, %v7568_v42 }
 0x278   : > { %vm7602_vm4 = vcmp.le.f32.partialorder %v8953_v9, 0.7853982  ;;  %vm4544_vm8 = vcmp.lt.s32.totalorder %v4543_v27, 0  ;;  %v1456_v39 = vxor.u32 2147483648, %v1455_v29  ;;  %v1458_v54 = vsub.s32 4, %v8956_v48 }
 0x279   : > { %vm1477_vm6 = vcmp.lt.s32.totalorder %v8957_v45, 0  ;;  %v1558_v58 = vmul.f32 %v1557_v20, %v1555_v57  ;;  %v3035_v25 = vadd.s32 3, %v1358_v37  ;;  %v1652_v9 = vshrl.u32 %v1634_v46, %v1650_v62 }
 0x27a   : > { %v1737_v35 = vadd.s32 %v7159_v38, %v7173_v17  ;;  %v1759_v60 = vshll.u32 %v1758_v34, 23  ;;  %vm4548_vm7 = vcmp.lt.s32.totalorder %v4547_v59, 0  ;;  %v1267_v61 = vsel %vm1260_vm3, %v1263_v44, %v1266_v63 }
 0x27b   : > { %4858 = vcosq.f32 %v1357_v50  ;;  %v2932_v16 = vand.u32 3, %v2931_v32  ;;  %v7615_v4 = vsel %vm4544_vm8, 0, %v4543_v27  ;;  %v8958_v19 = vand.u32 2147483647, %v8957_v45 }
 0x27c   : > { %4860 = vsinq.f32 %v1357_v50  ;;  %v1651_v62 = vshll.u32 %v7406_v15, %v7555_v40  ;;  %v1657_v57 = vor.u32 4788187, %v1656_v2  ;;  %v1755_v38 = vshrl.u32 %v1737_v35, %v1753_v52 }
 0x27d   : > { %vm7619_vm11 = vcmp.le.f32.partialorder %v8958_v19, 0.7853982  ;;  %v1457_v17 = vsel %vm1374_vm12, %v1456_v39, %v1455_v29  ;;  %v1459_v30 = vsel %vm1374_vm12, %v1458_v54, %v8956_v48  ;;  %v1559_v32 = vxor.u32 2147483648, %v1558_v58 }
 0x27e   : > { %v7630_v34 = vsel %vm4548_vm7, 0, %v4547_v59  ;;  %v1653_v27 = vor.u32 %v1652_v9, %v1651_v62  ;;  %v1754_v44 = vshll.u32 %v7422_v28, %v7568_v42  ;;  %v1760_v63 = vor.u32 4788187, %v1759_v60 }
 0x27f   : > { %v1860_v50 = vsub.s32 4294967266, %v7615_v4  ;;  %v7638_v40 = vadd.f32 %v3881_v7, %v7539_v31  ;;  %v7640_v29 = vand.u32 3, %v1358_v37  ;;  %v7642_v20 = vand.u32 3, %v3035_v25 }
 0x280   : > { %v1461_v59 = vsel %vm7602_vm4, 0, %v1459_v30  ;;  %v1658_v46 = vand.u32 2147483647, %v1657_v57  ;;  %v1756_v2 = vor.u32 %v1755_v38, %v1754_v44  ;;  %v1963_v28 = vsub.s32 4294967266, %v7630_v34 }
 0x281   : > { %8961 = vst [vmem:[#allocation21_spill] sm:$0xff] %v7638_v40  ;;  %v7649_v60 = vsel %vm1258_vm5, nan, %v1267_v61  ;;  %v1460_v42 = vsel %vm7602_vm4, %v8950_v55, %v1457_v17  ;;  %vm2934_vm13 = vcmp.eq.s32.totalorder %v2932_v16, 0  ;;  %vm2937_vm10 = vcmp.eq.s32.totalorder %v2932_v16, 2 }
 0x282   : > { %8962 = vst [vmem:[#allocation18_spill] sm:$0xff] %v7649_v60  ;;  %v1560_v7 = vsel %vm1477_vm6, %v1559_v32, %v1558_v58  ;;  %v1660_v37 = vcvt.s32.f32 %v1653_v27  ;;  %v1761_v52 = vand.u32 2147483647, %v1760_v63  ;;  %v1861_v39 = vadd.s32 127, %v1860_v50 }
 0x283   : > { %v7656_v48 = vand.u32 3, %v1461_v59  ;;  %v1561_v54 = vsub.s32 4, %v7108_v13  ;;  %v8963_v25 = vxor.u32 2147483648, %v7570_v56  ;;  %v8964_v12 = vxor.u32 2147483648, %v7563_v24 }
 0x284   : > { %vm1364_vm14 = vcmp.eq.s32.totalorder %v7640_v29, 0  ;;  %vm1367_vm0 = vcmp.eq.s32.totalorder %v7640_v29, 2  ;;  %v1661_v58 = vmul.f32 %v1660_v37, %v1658_v46  ;;  %v1763_v35 = vcvt.s32.f32 %v1756_v2 }
 0x285   : > { %v2936_v61 = vsel %vm2934_vm13, %v7563_v24, %v8963_v25  ;;  %v2939_v9 = vsel %vm2937_vm10, %v8964_v12, %v7570_v56  ;;  %v1856_v19 = vsub.s32 32, %v7615_v4  ;;  %v1964_v62 = vadd.s32 127, %v1963_v28  ;;  %v4859_v57 = vpop.eup %4858 }
 0x286   : > { %4862 = vcosq.f32 %v1460_v42  ;;  %v1563_v38 = vsel %vm7619_vm11, %v8957_v45, %v1560_v7  ;;  %vm2933_vm15 = vcmp.lt.s32.totalorder %v2932_v16, 2  ;;  %vm3038_vm1 = vcmp.eq.s32.totalorder %v7642_v20, 0  ;;  %v4861_v24 = vpop.eup %4860 }
 0x287   : > { %v1764_v56 = vmul.f32 %v1763_v35, %v1761_v52  ;;  %v1840_v17 = vadd.s32 %v7273_v41, %v7296_v26  ;;  %v1862_v30 = vshll.u32 %v1861_v39, 23  ;;  %v1959_v32 = vsub.s32 32, %v7630_v34  ;;  %v8965_v52 = vld [vmem:[#allocation20_spill] sm:$0xff] }
 0x288   : > { %4864 = vsinq.f32 %v1460_v42  ;;  %v1562_v27 = vsel %vm1477_vm6, %v1561_v54, %v7108_v13  ;;  %v2940_v44 = vsel %vm2933_vm15, %v2936_v61, %v2939_v9  ;;  %vm3041_vm3 = vcmp.eq.s32.totalorder %v7642_v20, 2  ;;  %v8969_v61 = vld [vmem:[#allocation54_spill] sm:$0xff] }
 0x289   : > { %vm1363_vm9 = vcmp.lt.s32.totalorder %v7640_v29, 2  ;;  %vm3037_vm12 = vcmp.lt.s32.totalorder %v7642_v20, 2  ;;  %v1662_v16 = vxor.u32 2147483648, %v1661_v58  ;;  %v1858_v63 = vshrl.u32 %v1840_v17, %v1856_v19 }
 0x28a   : > { %v1943_v41 = vadd.s32 %v7302_v8, %v7308_v21  ;;  %v1965_v26 = vshll.u32 %v1964_v62, 23  ;;  %v1365_v50 = vxor.u32 2147483648, %v4861_v24  ;;  %v1368_v46 = vxor.u32 2147483648, %v4859_v57 }
 0x28b   : > { %4866 = vcosq.f32 %v1563_v38  ;;  %v3139_v2 = vadd.s32 3, %v1461_v59  ;;  %v1765_v28 = vxor.u32 2147483648, %v1764_v56  ;;  %v1857_v13 = vshll.u32 %v7510_v10, %v7615_v4 }
 0x28c   : > { %v1863_v42 = vor.u32 4788187, %v1862_v30  ;;  %v1961_v7 = vshrl.u32 %v1943_v41, %v1959_v32  ;;  %v1564_v37 = vsel %vm7619_vm11, 0, %v1562_v27  ;;  %4868 = vsinq.f32 %v1563_v38 }
 0x28d   : > { %v8966_v39 = vand.u32 2147483647, %v8965_v52  ;;  %vm1580_vm4 = vcmp.lt.s32.totalorder %v8965_v52, 0  ;;  %vm1361_vm8 = vweird.f32 %v8939_v6  ;;  %v1859_v21 = vor.u32 %v1858_v63, %v1857_v13 }
 0x28e   : > { %v1663_v8 = vsel %vm1580_vm4, %v1662_v16, %v1661_v58  ;;  %v1960_v10 = vshll.u32 %v7515_v3, %v7630_v34  ;;  %v1966_v18 = vor.u32 4788187, %v1965_v26  ;;  %v1366_v4 = vsel %vm1364_vm14, %v4859_v57, %v1365_v50 }
 0x28f   : > { %vm7689_vm2 = vcmp.le.f32.partialorder %v8966_v39, 0.7853982  ;;  %v1369_v59 = vsel %vm1367_vm0, %v1368_v46, %v4861_v24  ;;  %v3043_v25 = vsel %vm3041_vm3, %v1368_v46, %v4861_v24  ;;  %vm1683_vm6 = vcmp.lt.s32.totalorder %v8969_v61, 0 }
 0x290   : > { %vm1470_vm7 = vcmp.eq.s32.totalorder %v7656_v48, 2  ;;  %v3040_v12 = vsel %vm3038_vm1, %v4859_v57, %v1365_v50  ;;  %v1766_v3 = vsel %vm1683_vm6, %v1765_v28, %v1764_v56  ;;  %v1864_v34 = vand.u32 2147483647, %v1863_v42  ;;  %v4863_v58 = vpop.eup %4862 }
 0x291   : > { %v1962_v9 = vor.u32 %v1961_v7, %v1960_v10  ;;  %vm1467_vm11 = vcmp.eq.s32.totalorder %v7656_v48, 0  ;;  %v7714_v35 = vsel %vm1258_vm5, nan, %v2940_v44  ;;  %v7716_v19 = vand.u32 3, %v3139_v2 }
 0x292   : > { %v3243_v62 = vadd.s32 3, %v1564_v37  ;;  %v1666_v38 = vsel %vm7689_vm2, %v8965_v52, %v1663_v8  ;;  %v1664_v57 = vsub.s32 4, %v7345_v0  ;;  %v8970_v24 = vand.u32 2147483647, %v8969_v61  ;;  %v4865_v22 = vpop.eup %4864 }
 0x293   : > { %v1866_v17 = vcvt.s32.f32 %v1859_v21  ;;  %v1967_v30 = vand.u32 2147483647, %v1966_v18  ;;  %v1370_v32 = vsel %vm1363_vm9, %v1366_v4, %v1369_v59  ;;  %v7730_v27 = vand.u32 3, %v1564_v37  ;;  %v8974_v59 = vld [vmem:[#allocation55_spill] sm:$0xff] }
 0x294   : > { %vm7724_vm13 = vcmp.le.f32.partialorder %v8970_v24, 0.7853982  ;;  %v3044_v44 = vsel %vm3037_vm12, %v3040_v12, %v3043_v25  ;;  %vm1466_vm5 = vcmp.lt.s32.totalorder %v7656_v48, 2  ;;  %4870 = vcosq.f32 %v1666_v38 }
 0x295   : > { %v1769_v16 = vsel %vm7724_vm13, %v8969_v61, %v1766_v3  ;;  %v1767_v63 = vsub.s32 4, %v7366_v23  ;;  %v1867_v41 = vmul.f32 %v1866_v17, %v1864_v34  ;;  %v1969_v26 = vcvt.s32.f32 %v1962_v9  ;;  %v4867_v50 = vpop.eup %4866 }
 0x296   : > { %v1471_v46 = vxor.u32 2147483648, %v4863_v58  ;;  %vm3142_vm10 = vcmp.eq.s32.totalorder %v7716_v19, 0  ;;  %v3244_v29 = vand.u32 3, %v3243_v62  ;;  %4872 = vsinq.f32 %v1666_v38  ;;  %v4869_v13 = vpop.eup %4868  ;;  %v8978_v38 = vld [vmem:[#allocation26_spill] sm:$0xff] }
 0x297   : > { %v1468_v2 = vxor.u32 2147483648, %v4865_v22  ;;  %vm3141_vm14 = vcmp.lt.s32.totalorder %v7716_v19, 2  ;;  %v1665_v20 = vsel %vm1580_vm4, %v1664_v57, %v7345_v0  ;;  %4874 = vcosq.f32 %v1769_v16 }
 0x298   : > { %v1970_v28 = vmul.f32 %v1969_v26, %v1967_v30  ;;  %v7746_v42 = vsel %vm1361_vm8, nan, %v1370_v32  ;;  %v7750_v7 = vsel %vm1361_vm8, nan, %v3044_v44  ;;  %vm3145_vm0 = vcmp.eq.s32.totalorder %v7716_v19, 2 }
 0x299   : > { %8973 = vst [vmem:[#allocation38_spill] sm:$0xff] %v7746_v42  ;;  %4876 = vsinq.f32 %v1769_v16  ;;  %vm1569_vm15 = vcmp.lt.s32.totalorder %v7730_v27, 2  ;;  %vm1570_vm1 = vcmp.eq.s32.totalorder %v7730_v27, 0  ;;  %vm1573_vm3 = vcmp.eq.s32.totalorder %v7730_v27, 2 }
 0x29a   : > { %v1768_v0 = vsel %vm1683_vm6, %v1767_v63, %v7366_v23  ;;  %v1868_v37 = vxor.u32 2147483648, %v1867_v41  ;;  %v1472_v39 = vsel %vm1470_vm7, %v1471_v46, %v4865_v22  ;;  %vm3245_vm9 = vcmp.lt.s32.totalorder %v3244_v29, 2 }
 0x29b   : > { %vm3246_vm12 = vcmp.eq.s32.totalorder %v3244_v29, 0  ;;  %v1667_v6 = vsel %vm7689_vm2, 0, %v1665_v20  ;;  %v1469_v8 = vsel %vm1467_vm11, %v4863_v58, %v1468_v2  ;;  %v1571_v21 = vxor.u32 2147483648, %v4869_v13 }
 0x29c   : > { %v1574_v10 = vxor.u32 2147483648, %v4867_v50  ;;  %v1971_v18 = vxor.u32 2147483648, %v1970_v28  ;;  %v3147_v4 = vsel %vm3145_vm0, %v1471_v46, %v4865_v22  ;;  %vm3249_vm4 = vcmp.eq.s32.totalorder %v3244_v29, 2 }
 0x29d   : > { %v1770_v23 = vsel %vm7724_vm13, 0, %v1768_v0  ;;  %vm1786_vm8 = vcmp.lt.s32.totalorder %v8974_v59, 0  ;;  %v3144_v25 = vsel %vm3142_vm10, %v4863_v58, %v1468_v2  ;;  %v7770_v12 = vand.u32 3, %v1667_v6 }
 0x29e   : > { %v1869_v54 = vsel %vm1786_vm8, %v1868_v37, %v1867_v41  ;;  %v1870_v3 = vsub.s32 4, %v7451_v33  ;;  %v7777_v34 = vsel %vm1466_vm5, %v1469_v8, %v1472_v39  ;;  %v8975_v9 = vand.u32 2147483647, %v8974_v59  ;;  %v4871_v57 = vpop.eup %4870 }
 0x29f   : > { %vm1889_vm6 = vcmp.lt.s32.totalorder %v8978_v38, 0  ;;  %v3347_v58 = vadd.s32 3, %v1667_v6  ;;  %v1572_v24 = vsel %vm1570_vm1, %v4867_v50, %v1571_v21  ;;  %v1575_v56 = vsel %vm1573_vm3, %v1574_v10, %v4869_v13 }
 0x2a0   : > { %vm7781_vm2 = vcmp.le.f32.partialorder %v8975_v9, 0.7853982  ;;  %v1972_v48 = vsel %vm1889_vm6, %v1971_v18, %v1970_v28  ;;  %v3451_v17 = vadd.s32 3, %v1770_v23  ;;  %v4873_v30 = vpop.eup %4872  ;;  %v3148_v22 = vsel %vm3141_vm14, %v3144_v25, %v3147_v4 }
 0x2a1   : > { %v3248_v32 = vsel %vm3246_vm12, %v4867_v50, %v1571_v21  ;;  %v3251_v44 = vsel %vm3249_vm4, %v1574_v10, %v4869_v13  ;;  %v1872_v16 = vsel %vm7781_vm2, %v8974_v59, %v1869_v54  ;;  %v4875_v63 = vpop.eup %4874  ;;  %vm1673_vm7 = vcmp.eq.s32.totalorder %v7770_v12, 0 }
 0x2a2   : > { %v1774_v41 = vand.u32 3, %v1770_v23  ;;  %v1871_v26 = vsel %vm1786_vm8, %v1870_v3, %v7451_v33  ;;  %v8979_v46 = vand.u32 2147483647, %v8978_v38  ;;  %v1576_v2 = vsel %vm1569_vm15, %v1572_v24, %v1575_v56 }
 0x2a3   : > { %v4877_v50 = vpop.eup %4876  ;;  %vm1672_vm13 = vcmp.lt.s32.totalorder %v7770_v12, 2  ;;  %vm1676_vm5 = vcmp.eq.s32.totalorder %v7770_v12, 2  ;;  %v3348_v28 = vand.u32 3, %v3347_v58  ;;  %vm1464_vm10 = vweird.f32 %v8950_v55 }
 0x2a4   : > { %vm7805_vm11 = vcmp.le.f32.partialorder %v8979_v46, 0.7853982  ;;  %v3252_v33 = vsel %vm3245_vm9, %v3248_v32, %v3251_v44  ;;  %4878 = vcosq.f32 %v1872_v16  ;;  %v1973_v13 = vsub.s32 4, %v7473_v36  ;;  %v4122_v46 = vpop.permute.xlu1 %4121 }
 0x2a5   : > { %v1975_v20 = vsel %vm7805_vm11, %v8978_v38, %v1972_v48  ;;  %v3452_v0 = vand.u32 3, %v3451_v17  ;;  %vm1567_vm14 = vweird.f32 %v8957_v45  ;;  %v1674_v27 = vxor.u32 2147483648, %v4873_v30 }
 0x2a6   : > { %v1677_v37 = vxor.u32 2147483648, %v4871_v57  ;;  %v1873_v39 = vsel %vm7781_vm2, 0, %v1871_v26  ;;  %4880 = vsinq.f32 %v1872_v16  ;;  %vm1670_vm0 = vweird.f32 %v8965_v52  ;;  %v8986_v52 = vld [vmem:[#allocation24_spill] sm:$0xff] }
 0x2a7   : > { %vm1776_vm15 = vcmp.eq.s32.totalorder %v1774_v41, 0  ;;  %v1777_v6 = vxor.u32 2147483648, %v4877_v50  ;;  %v1780_v8 = vxor.u32 2147483648, %v4875_v63  ;;  %4882 = vcosq.f32 %v1975_v20 }
 0x2a8   : > { %vm1779_vm1 = vcmp.eq.s32.totalorder %v1774_v41, 2  ;;  %4884 = vsinq.f32 %v1975_v20  ;;  %vm3350_vm3 = vcmp.eq.s32.totalorder %v3348_v28, 0  ;;  %vm3353_vm9 = vcmp.eq.s32.totalorder %v3348_v28, 2 }
 0x2a9   : > { %v1974_v29 = vsel %vm1889_vm6, %v1973_v13, %v7473_v36  ;;  %vm3454_vm12 = vcmp.eq.s32.totalorder %v3452_v0, 0  ;;  %vm3457_vm4 = vcmp.eq.s32.totalorder %v3452_v0, 2  ;;  %v3555_v21 = vadd.s32 3, %v1873_v39 }
 0x2aa   : > { %v1675_v10 = vsel %vm1673_vm7, %v4871_v57, %v1674_v27  ;;  %v1678_v18 = vsel %vm1676_vm5, %v1677_v37, %v4873_v30  ;;  %v3352_v4 = vsel %vm3350_vm3, %v4871_v57, %v1674_v27  ;;  %v3355_v23 = vsel %vm3353_vm9, %v1677_v37, %v4873_v30  ;;  %v8993_v37 = vld [vmem:[#allocation46_spill] sm:$0xff] }
 0x2ab   : > { %v1778_v25 = vsel %vm1776_vm15, %v4875_v63, %v1777_v6  ;;  %v1781_v54 = vsel %vm1779_vm1, %v1780_v8, %v4877_v50  ;;  %v3456_v3 = vsel %vm3454_vm12, %v4875_v63, %v1777_v6  ;;  %v3459_v9 = vsel %vm3457_vm4, %v1780_v8, %v4877_v50  ;;  %v8994_v6 = vld [vmem:[#allocation47_spill] sm:$0xff] }
 0x2ac   : > { %vm1775_vm8 = vcmp.lt.s32.totalorder %v1774_v41, 2  ;;  %v7831_v62 = vand.u32 3, %v1873_v39  ;;  %v1976_v36 = vsel %vm7805_vm11, 0, %v1974_v29  ;;  %vm3349_vm2 = vcmp.lt.s32.totalorder %v3348_v28, 2  ;;  %v8989_v28 = vld [vmem:[#allocation27_spill] sm:$0xff] }
 0x2ad   : > { %v1679_v58 = vsel %vm1672_vm13, %v1675_v10, %v1678_v18  ;;  %v3356_v24 = vsel %vm3349_vm2, %v3352_v4, %v3355_v23  ;;  %vm3453_vm6 = vcmp.lt.s32.totalorder %v3452_v0, 2  ;;  %v7837_v56 = vand.u32 3, %v3555_v21  ;;  %v8995_v10 = vld [vmem:[#allocation50_spill] sm:$0xff] }
 0x2ae   : > { %v7842_v57 = vsel %vm1464_vm10, nan, %v7777_v34  ;;  %vm1773_vm7 = vweird.f32 %v8969_v61  ;;  %v1782_v48 = vsel %vm1775_vm8, %v1778_v25, %v1781_v54  ;;  %v3460_v17 = vsel %vm3453_vm6, %v3456_v3, %v3459_v9  ;;  %v4879_v30 = vpop.eup %4878  ;;  %v4158_v34 = vpop.permute.xlu0 %4157  ;;  %v8998_v9 = vld [vmem:[#allocation51_spill] sm:$0xff] }
 0x2af   : > { %8982 = vst [vmem:[#allocation61_spill] sm:$0xff] %v7842_v57  ;;  %v7847_v32 = vsel %vm1567_vm14, nan, %v1576_v2  ;;  %v7851_v12 = vsel %vm1464_vm10, nan, %v3148_v22  ;;  %v7855_v44 = vsel %vm1567_vm14, nan, %v3252_v33  ;;  %v3659_v16 = vadd.s32 3, %v1976_v36  ;;  %v8987_v2 = vld [vmem:[#allocation41_spill] sm:$0xff] }
 0x2b0   : > { %8983 = vst [vmem:[#allocation37_spill] sm:$0xff] %v7847_v32  ;;  %v4881_v63 = vpop.eup %4880  ;;  %v7859_v41 = vsel %vm1670_vm0, nan, %v1679_v58  ;;  %vm1879_vm11 = vcmp.eq.s32.totalorder %v7831_v62, 0  ;;  %vm1882_vm13 = vcmp.eq.s32.totalorder %v7831_v62, 2  ;;  %v7865_v55 = vsel %vm1670_vm0, nan, %v3356_v24  ;;  %v8991_v33 = vld [vmem:[#allocation52_spill] sm:$0xff] }
 0x2b1   : > { %8984 = vst [vmem:[#allocation40_spill] sm:$0xff] %v7859_v41  ;;  %v4883_v22 = vpop.eup %4882  ;;  %v7869_v45 = vsel %vm1773_vm7, nan, %v1782_v48  ;;  %v7873_v26 = vsel %vm1773_vm7, nan, %v3460_v17  ;;  %vm3558_vm5 = vcmp.eq.s32.totalorder %v7837_v56, 0  ;;  %vm3561_vm10 = vcmp.eq.s32.totalorder %v7837_v56, 2 }
 0x2b2   : > { %8985 = vst [vmem:[#allocation62_spill] sm:$0xff] %v7869_v45  ;;  %v4885_v19 = vpop.eup %4884  ;;  %vm1878_vm14 = vcmp.lt.s32.totalorder %v7831_v62, 2  ;;  %vm3557_vm0 = vcmp.lt.s32.totalorder %v7837_v56, 2  ;;  %v7880_v50 = vmul.f32 %v4158_v34, %v8986_v52  ;;  %v7883_v20 = vmul.f32 %v4158_v34, %v8987_v2 }
 0x2b3   : > { %v7886_v61 = vmul.f32 %v4158_v34, %v8989_v28  ;;  %v7889_v13 = vmul.f32 %v4158_v34, %v8991_v33  ;;  %v1980_v0 = vand.u32 3, %v1976_v36  ;;  %v3660_v27 = vand.u32 3, %v3659_v16 }
 0x2b4   : > { %8988 = vst [vmem:[#allocation63_spill] sm:$0xff] %v7883_v20  ;;  %v4223_v39 = vmul.f32 %v4158_v34, %v8993_v37  ;;  %v4224_v8 = vmul.f32 %v4158_v34, %v8994_v6  ;;  %v1880_v29 = vxor.u32 2147483648, %v4881_v63  ;;  %v1883_v21 = vxor.u32 2147483648, %v4879_v30 }
 0x2b5   : > { %8990 = vst [vmem:[#allocation39_spill] sm:$0xff] %v7886_v61  ;;  %8992 = vst [vmem:[#allocation72_spill] sm:$0xff] %v7889_v13  ;;  %v4225_v18 = vmul.f32 %v4158_v34, %v8995_v10  ;;  %v7895_v4 = vmul.f32 %v4122_v46, %v8993_v37  ;;  %vm1876_vm15 = vweird.f32 %v8974_v59  ;;  %v1983_v23 = vxor.u32 2147483648, %v4885_v19 }
 0x2b6   : > { %v1986_v25 = vxor.u32 2147483648, %v4883_v22  ;;  %v7899_v54 = vmul.f32 %v4122_v46, %v8994_v6  ;;  %v7902_v3 = vmul.f32 %v4122_v46, %v8995_v10  ;;  %vm1979_vm1 = vweird.f32 %v8978_v38 }
 0x2b7   : > { %v7906_v36 = vmul.f32 %v4122_v46, %v8998_v9  ;;  %v4207_v58 = vmul.f32 %v4122_v46, %v8986_v52  ;;  %v4208_v24 = vmul.f32 %v4122_v46, %v8987_v2  ;;  %v4209_v48 = vmul.f32 %v4122_v46, %v8989_v28 }
 0x2b8   : > { %8996 = vst [vmem:[#allocation28_spill] sm:$0xff] %v7899_v54  ;;  %8997 = vst [vmem:[#allocation77_spill] sm:$0xff] %v7902_v3  ;;  %vm1982_vm3 = vcmp.eq.s32.totalorder %v1980_v0, 0  ;;  %vm1985_vm9 = vcmp.eq.s32.totalorder %v1980_v0, 2  ;;  %vm3662_vm12 = vcmp.eq.s32.totalorder %v3660_v27, 0  ;;  %vm3665_vm4 = vcmp.eq.s32.totalorder %v3660_v27, 2 }
 0x2b9   : > { %8999 = vst [vmem:[#allocation66_spill] sm:$0xff] %v7906_v36  ;;  %v1881_v17 = vsel %vm1879_vm11, %v4879_v30, %v1880_v29  ;;  %v1884_v16 = vsel %vm1882_vm13, %v1883_v21, %v4881_v63  ;;  %v3560_v15 = vsel %vm3558_vm5, %v4879_v30, %v1880_v29  ;;  %v3563_v52 = vsel %vm3561_vm10, %v1883_v21, %v4881_v63 }
 0x2ba   : > { %v1984_v40 = vsel %vm1982_vm3, %v4883_v22, %v1983_v23  ;;  %v1987_v2 = vsel %vm1985_vm9, %v1986_v25, %v4885_v19  ;;  %v3664_v1 = vsel %vm3662_vm12, %v4883_v22, %v1983_v23  ;;  %v3667_v28 = vsel %vm3665_vm4, %v1986_v25, %v4885_v19 }
 0x2bb   : > { %v4226_v49 = vmul.f32 %v4158_v34, %v8998_v9  ;;  %v4210_v37 = vmul.f32 %v4122_v46, %v8991_v33  ;;  %v1885_v30 = vsel %vm1878_vm14, %v1881_v17, %v1884_v16  ;;  %vm1981_vm8 = vcmp.lt.s32.totalorder %v1980_v0, 2  ;;  %v4127_v34 = vpop.permute.xlu0 %4126 }
 0x2bc   : > { %v3564_v63 = vsel %vm3557_vm0, %v3560_v15, %v3563_v52  ;;  %vm3661_vm2 = vcmp.lt.s32.totalorder %v3660_v27, 2  ;;  %v1988_v22 = vsel %vm1981_vm8, %v1984_v40, %v1987_v2  ;;  %v7933_v21 = vadd.f32 %v4223_v39, %v4207_v58 }
 0x2bd   : > { %v3668_v19 = vsel %vm3661_vm2, %v3664_v1, %v3667_v28  ;;  %v7935_v23 = vadd.f32 %v4224_v8, %v4208_v24  ;;  %v7937_v46 = vadd.f32 %v4225_v18, %v4209_v48  ;;  %v7940_v62 = vmul.f32 0.0, %v7865_v55 }
 0x2be   : > { %9000 = vst [vmem:[#allocation65_spill] sm:$0xff] %v7933_v21  ;;  %v7944_v15 = vsel %vm1876_vm15, nan, %v1885_v30  ;;  %v7948_v1 = vsel %vm1876_vm15, nan, %v3564_v63  ;;  %v7950_v40 = vadd.f32 %v4226_v49, %v4210_v37  ;;  %v7953_v56 = vmul.f32 0.0, %v7873_v26  ;;  %v4132_v63 = vpop.permute.xlu1 %4131 }
 0x2bf   : > { %9001 = vst [vmem:[#allocation25_spill] sm:$0xff] %v7935_v23  ;;  %9002 = vst [vmem:[#allocation23_spill] sm:$0xff] %v7937_v46  ;;  %v7957_v33 = vsel %vm1979_vm1, nan, %v1988_v22  ;;  %v7961_v0 = vsel %vm1979_vm1, nan, %v3668_v19  ;;  %v3886_v27 = vmul.f32 0.0, %v7859_v41  ;;  %v3887_v39 = vmul.f32 0.0, %v7869_v45 }
 0x2c0   : > { %9003 = vst [vmem:[#allocation64_spill] sm:$0xff] %v7940_v62  ;;  %9004 = vst [vmem:[#allocation74_spill] sm:$0xff] %v7944_v15  ;;  %v7966_v59 = vmul.f32 0.0, %v7714_v35  ;;  %v7969_v49 = vmul.f32 0.0, %v7750_v7  ;;  %v7972_v37 = vmul.f32 0.0, %v7851_v12  ;;  %v7975_v8 = vmul.f32 0.0, %v7855_v44 }
 0x2c1   : > { %9005 = vst [vmem:[#allocation44_spill] sm:$0xff] %v7948_v1  ;;  %9006 = vst [vmem:[#allocation67_spill] sm:$0xff] %v7950_v40  ;;  %v7978_v38 = vmul.f32 0.0, %v7948_v1  ;;  %v3888_v18 = vmul.f32 0.0, %v7944_v15  ;;  %v3882_v25 = vmul.f32 0.0, %v7649_v60  ;;  %v3883_v58 = vmul.f32 0.0, %v7746_v42 }
 0x2c2   : > { %9007 = vst [vmem:[#allocation68_spill] sm:$0xff] %v7953_v56  ;;  %9008 = vst [vmem:[#allocation71_spill] sm:$0xff] %v7957_v33  ;;  %v7984_v24 = vmul.f32 0.0, %v7961_v0  ;;  %v3889_v48 = vmul.f32 0.0, %v7957_v33  ;;  %v3884_v17 = vmul.f32 0.0, %v7842_v57  ;;  %v3885_v16 = vmul.f32 0.0, %v7847_v32  ;;  %v4137_v10 = vpop.permute.xlu1 %4136 }
 0x2c3   : > { %9009 = vst [vmem:[#allocation70_spill] sm:$0xff] %v7961_v0  ;;  %9010 = vst [vmem:[#allocation69_spill] sm:$0xff] %v7966_v59  ;;  %v7994_v28 = vadd.f32 %v3886_v27, %v7865_v55  ;;  %v7997_v30 = vadd.f32 %v3887_v39, %v7873_v26  ;;  %v8010_v2 = vadd.f32 %v3888_v18, %v7948_v1  ;;  %v9040_v59 = vld [vmem:[#allocation29_spill] sm:$0xff] }
 0x2c4   : > { %9011 = vst [vmem:[#allocation45_spill] sm:$0xff] %v7969_v49  ;;  %9012 = vst [vmem:[#allocation75_spill] sm:$0xff] %v7972_v37  ;;  %v8013_v39 = vadd.f32 %v3882_v25, %v7714_v35  ;;  %v8016_v22 = vadd.f32 %v3883_v58, %v7750_v7  ;;  %v8021_v29 = vadd.f32 %v3889_v48, %v7961_v0  ;;  %v3713_v49 = vpop.permute.xlu0 %3712  ;;  %v9044_v62 = vld [vmem:[#allocation33_spill] sm:$0xff] }
 0x2c5   : > { %9013 = vst [vmem:[#allocation22_spill] sm:$0xff] %v7975_v8  ;;  %9014 = vst [vmem:[#allocation20_spill] sm:$0xff] %v7978_v38  ;;  %v8024_v52 = vadd.f32 %v3884_v17, %v7851_v12  ;;  %v8027_v27 = vadd.f32 %v3885_v16, %v7855_v44  ;;  %v8030_v18 = vmul.f32 %v4132_v63, %v7649_v60  ;;  %v9043_v38 = vld [vmem:[#allocation32_spill] sm:$0xff] }
 0x2c6   : > { %9015 = vst [vmem:[#allocation54_spill] sm:$0xff] %v7984_v24  ;;  %9016 = vst [vmem:[#allocation55_spill] sm:$0xff] %v7994_v28  ;;  %v8033_v25 = vmul.f32 %v4132_v63, %v7746_v42  ;;  %v8036_v58 = vmul.f32 %v4132_v63, %v7842_v57  ;;  %v8039_v19 = vmul.f32 %v4132_v63, %v7847_v32  ;;  %v9042_v28 = vld [vmem:[#allocation31_spill] sm:$0xff] }
 0x2c7   : > { %9017 = vst [vmem:[#allocation26_spill] sm:$0xff] %v7997_v30  ;;  %9018 = vst [vmem:[#allocation24_spill] sm:$0xff] %v8010_v2  ;;  %v8042_v48 = vmul.f32 %v4132_v63, %v7714_v35  ;;  %v8045_v17 = vmul.f32 %v4132_v63, %v7750_v7  ;;  %v8048_v16 = vmul.f32 %v4132_v63, %v7851_v12  ;;  %v9041_v2 = vld [vmem:[#allocation30_spill] sm:$0xff] }
 0x2c8   : > { %9019 = vst [vmem:[#allocation41_spill] sm:$0xff] %v8013_v39  ;;  %9020 = vst [vmem:[#allocation27_spill] sm:$0xff] %v8016_v22  ;;  %v8051_v6 = vmul.f32 %v4132_v63, %v7855_v44  ;;  %v8072_v63 = vmul.f32 %v4127_v34, %v7479_v11  ;;  %v8087_v22 = vmul.f32 %v4137_v10, %v7957_v33  ;;  %v3718_v33 = vpop.permute.xlu1 %3717 }
 0x2c9   : > { %9021 = vst [vmem:[#allocation52_spill] sm:$0xff] %v8021_v29  ;;  %9022 = vst [vmem:[#allocation51_spill] sm:$0xff] %v8024_v52  ;;  %v8084_v52 = vmul.f32 %v4137_v10, %v7944_v15  ;;  %v8090_v39 = vmul.f32 %v4137_v10, %v7865_v55  ;;  %v8093_v8 = vmul.f32 %v4137_v10, %v7873_v26 }
 0x2ca   : > { %9023 = vst [vmem:[#allocation78_spill] sm:$0xff] %v8027_v27  ;;  %9024 = vst [vmem:[#allocation79_spill] sm:$0xff] %v8030_v18  ;;  %v8078_v18 = vmul.f32 %v4137_v10, %v7859_v41  ;;  %v8081_v27 = vmul.f32 %v4137_v10, %v7869_v45  ;;  %v8099_v37 = vmul.f32 %v4137_v10, %v7961_v0 }
 0x2cb   : > { %9025 = vst [vmem:[#allocation80_spill] sm:$0xff] %v8033_v25  ;;  %9026 = vst [vmem:[#allocation81_spill] sm:$0xff] %v8036_v58  ;;  %v8054_v25 = vmul.f32 %v4127_v34, %v8921_v5  ;;  %v8057_v58 = vmul.f32 %v4127_v34, %v6982_v51  ;;  %v3730_v29 = vmul.f32 %v3713_v49, %v9040_v59 }
 0x2cc   : > { %9027 = vst [vmem:[#allocation82_spill] sm:$0xff] %v8039_v19  ;;  %9028 = vst [vmem:[#allocation83_spill] sm:$0xff] %v8042_v48  ;;  %v8060_v19 = vmul.f32 %v4127_v34, %v7488_v43  ;;  %v8063_v48 = vmul.f32 %v4127_v34, %v7559_v53  ;;  %v3731_v30 = vmul.f32 %v3713_v49, %v9041_v2 }
 0x2cd   : > { %9029 = vst [vmem:[#allocation84_spill] sm:$0xff] %v8045_v17  ;;  %9030 = vst [vmem:[#allocation85_spill] sm:$0xff] %v8048_v16  ;;  %v8066_v17 = vmul.f32 %v4127_v34, %v6972_v14  ;;  %v8069_v16 = vmul.f32 %v4127_v34, %v8925_v47  ;;  %v3732_v24 = vmul.f32 %v3713_v49, %v9042_v28 }
 0x2ce   : > { %9031 = vst [vmem:[#allocation86_spill] sm:$0xff] %v8051_v6  ;;  %v8075_v6 = vmul.f32 %v4127_v34, %v7539_v31  ;;  %9032 = vst [vmem:[#allocation87_spill] sm:$0xff] %v8078_v18  ;;  %v8096_v34 = vmul.f32 %v4137_v10, %v7948_v1  ;;  %v3733_v56 = vmul.f32 %v3713_v49, %v9043_v38  ;;  %v9047_v18 = vld [vmem:[#allocation36_spill] sm:$0xff]  ;;  %v3746_v10 = vmul.f32 1.442695, %v3730_v29  ;;  %v3728_v29 = vpop.permute.xlu0 %3727 }
 0x2cf   : > { %9033 = vst [vmem:[#allocation88_spill] sm:$0xff] %v8081_v27  ;;  %9034 = vst [vmem:[#allocation89_spill] sm:$0xff] %v8084_v52  ;;  %v3750_v15 = vmul.f32 1.442695, %v3732_v24  ;;  %v3734_v45 = vmul.f32 %v3718_v33, %v9040_v59  ;;  %v3735_v40 = vmul.f32 %v3718_v33, %v9041_v2  ;;  %v3736_v21 = vmul.f32 %v3718_v33, %v9042_v28 }
 0x2d0   : > { %9035 = vst [vmem:[#allocation90_spill] sm:$0xff] %v8087_v22  ;;  %9036 = vst [vmem:[#allocation91_spill] sm:$0xff] %v8090_v39  ;;  %v4023_v39 = vmul.f32 %v9044_v62, %v3713_v49  ;;  %v9045_v22 = vld [vmem:[#allocation34_spill] sm:$0xff]  ;;  %v3752_v41 = vmul.f32 1.442695, %v3733_v56  ;;  %4886 = vpow2.f32 %v3746_v10  ;;  %v3737_v13 = vmul.f32 %v3718_v33, %v9043_v38 }
 0x2d1   : > { %9037 = vst [vmem:[#allocation92_spill] sm:$0xff] %v8093_v8  ;;  %9038 = vst [vmem:[#allocation93_spill] sm:$0xff] %v8096_v34  ;;  %v4024_v52 = vmul.f32 %v9045_v22, %v3713_v49  ;;  %v9046_v8 = vld [vmem:[#allocation35_spill] sm:$0xff]  ;;  %v4026_v34 = vmul.f32 %v9047_v18, %v3713_v49  ;;  %v3756_v36 = vmul.f32 1.442695, %v3735_v40  ;;  %v4028_v56 = vmul.f32 %v9045_v22, %v3718_v33 }
 0x2d2   : > { %9039 = vst [vmem:[#allocation94_spill] sm:$0xff] %v8099_v37  ;;  %v4025_v27 = vmul.f32 %v9046_v8, %v3713_v49  ;;  %v3748_v37 = vmul.f32 1.442695, %v3731_v30  ;;  %v4039_v0 = vmul.f32 1.442695, %v4023_v39  ;;  %v4027_v30 = vmul.f32 %v9044_v62, %v3718_v33 }
 0x2d3   : > { %v4041_v1 = vmul.f32 1.442695, %v4024_v52  ;;  %v4045_v23 = vmul.f32 1.442695, %v4026_v34  ;;  %v3754_v49 = vmul.f32 1.442695, %v3734_v45  ;;  %v4029_v39 = vmul.f32 %v9046_v8, %v3718_v33 }
 0x2d4   : > { %v4043_v46 = vmul.f32 1.442695, %v4025_v27  ;;  %4888 = vpow2.f32 %v3748_v37  ;;  %v3758_v24 = vmul.f32 1.442695, %v3736_v21  ;;  %v3760_v52 = vmul.f32 1.442695, %v3737_v13 }
 0x2d5   : > { %4890 = vpow2.f32 %v3750_v15  ;;  %v4030_v27 = vmul.f32 %v9047_v18, %v3718_v33  ;;  %v4047_v34 = vmul.f32 1.442695, %v4027_v30  ;;  %v4049_v37 = vmul.f32 1.442695, %v4028_v56  ;;  %v3723_v30 = vpop.permute.xlu1 %3722 }
 0x2d6   : > { %4892 = vpow2.f32 %v3752_v41  ;;  %v3742_v10 = vmul.f32 %v3728_v29, %v9040_v59  ;;  %v4051_v45 = vmul.f32 1.442695, %v4029_v39  ;;  %v3743_v21 = vmul.f32 %v3728_v29, %v9041_v2 }
 0x2d7   : > { %4894 = vpow2.f32 %v4039_v0  ;;  %v4053_v40 = vmul.f32 1.442695, %v4030_v27  ;;  %v3744_v15 = vmul.f32 %v3728_v29, %v9042_v28  ;;  %v3745_v41 = vmul.f32 %v3728_v29, %v9043_v38 }
 0x2d8   : > { %4896 = vpow2.f32 %v4041_v1  ;;  %v3770_v13 = vmul.f32 1.442695, %v3742_v10  ;;  %v3772_v61 = vmul.f32 1.442695, %v3743_v21  ;;  %v4035_v33 = vmul.f32 %v9044_v62, %v3728_v29 }
 0x2d9   : > { %4898 = vpow2.f32 %v4043_v46  ;;  %v4036_v0 = vmul.f32 %v9045_v22, %v3728_v29  ;;  %v3774_v56 = vmul.f32 1.442695, %v3744_v15  ;;  %v3776_v1 = vmul.f32 1.442695, %v3745_v41 }
 0x2da   : > { %4900 = vpow2.f32 %v4045_v23  ;;  %v4037_v39 = vmul.f32 %v9046_v8, %v3728_v29  ;;  %v4038_v46 = vmul.f32 %v9047_v18, %v3728_v29  ;;  %v4063_v27 = vmul.f32 1.442695, %v4035_v33  ;;  %v8125_v20 = vpop.eup %4886 }
 0x2db   : > { %4902 = vpow2.f32 %v3754_v49  ;;  %v4065_v3 = vmul.f32 1.442695, %v4036_v0  ;;  %v3738_v10 = vmul.f32 %v3723_v30, %v9040_v59  ;;  %v3739_v21 = vmul.f32 %v3723_v30, %v9041_v2  ;;  %v4168_v0 = vpop.permute.xlu0 %4167 }
 0x2dc   : > { %4904 = vpow2.f32 %v3756_v36  ;;  %v4067_v23 = vmul.f32 1.442695, %v4037_v39  ;;  %v4069_v49 = vmul.f32 1.442695, %v4038_v46  ;;  %v3740_v15 = vmul.f32 %v3723_v30, %v9042_v28 }
 0x2dd   : > { %4906 = vpow2.f32 %v3758_v24  ;;  %v3741_v36 = vmul.f32 %v3723_v30, %v9043_v38  ;;  %v3762_v29 = vmul.f32 1.442695, %v3738_v10  ;;  %v8135_v33 = vmul.f32 1.442695, %v3739_v21 }
 0x2de   : > { %v8129_v54 = vpop.eup %4888  ;;  %4908 = vpow2.f32 %v3760_v52  ;;  %v4031_v24 = vmul.f32 %v9044_v62, %v3723_v30  ;;  %v8140_v2 = vmul.f32 1.442695, %v3740_v15  ;;  %v4032_v28 = vmul.f32 %v9045_v22, %v3723_v30  ;;  %v4163_v22 = vpop.permute.xlu1 %4162 }
 0x2df   : > { %v8133_v41 = vpop.eup %4890  ;;  %4910 = vpow2.f32 %v4047_v34  ;;  %v8142_v52 = vmul.f32 1.442695, %v3741_v36  ;;  %v4033_v38 = vmul.f32 %v9046_v8, %v3723_v30  ;;  %v4034_v34 = vmul.f32 %v9047_v18, %v3723_v30 }
 0x2e0   : > { %v8138_v59 = vpop.eup %4892  ;;  %4912 = vpow2.f32 %v4049_v37  ;;  %v8149_v46 = vmul.f32 1.442695, %v4031_v24  ;;  %v8153_v10 = vmul.f32 1.442695, %v4032_v28  ;;  %v8156_v37 = vmul.f32 %v4168_v0, %v7714_v35 }
 0x2e1   : > { %v8145_v39 = vpop.eup %4894  ;;  %4914 = vpow2.f32 %v4051_v45  ;;  %v8159_v21 = vmul.f32 %v4168_v0, %v7750_v7  ;;  %v8163_v8 = vmul.f32 1.442695, %v4033_v38  ;;  %v8165_v18 = vmul.f32 1.442695, %v4034_v34 }
 0x2e2   : > { %v8151_v62 = vpop.eup %4896  ;;  %4916 = vpow2.f32 %v4053_v40  ;;  %9048 = vst [vmem:[#allocation29_spill] sm:$0xff] %v8156_v37  ;;  %v8168_v45 = vmul.f32 %v4168_v0, %v7851_v12  ;;  %v8173_v35 = vmul.f32 %v4168_v0, %v7855_v44  ;;  %v8176_v7 = vmul.f32 %v4168_v0, %v7649_v60 }
 0x2e3   : > { %9049 = vst [vmem:[#allocation30_spill] sm:$0xff] %v8159_v21  ;;  %v8161_v15 = vpop.eup %4898  ;;  %4918 = vpow2.f32 %v3770_v13  ;;  %v8179_v30 = vmul.f32 %v4168_v0, %v7746_v42  ;;  %v8184_v36 = vmul.f32 %v4168_v0, %v7842_v57  ;;  %v8187_v12 = vmul.f32 %v4168_v0, %v7847_v32  ;;  %v4173_v57 = vpop.permute.xlu1 %4172 }
 0x2e4   : > { %9050 = vst [vmem:[#allocation31_spill] sm:$0xff] %v8168_v45  ;;  %v8170_v40 = vpop.eup %4900  ;;  %4920 = vpow2.f32 %v3772_v61  ;;  %9051 = vst [vmem:[#allocation32_spill] sm:$0xff] %v8173_v35  ;;  %v8190_v61 = vmul.f32 %v4163_v22, %v6972_v14  ;;  %v8195_v24 = vmul.f32 %v4163_v22, %v8925_v47  ;;  %v8198_v28 = vmul.f32 %v4163_v22, %v7479_v11  ;;  %v9060_v35 = vld [vmem:[#allocation49_spill] sm:$0xff] }
 0x2e5   : > { %9052 = vst [vmem:[#allocation33_spill] sm:$0xff] %v8176_v7  ;;  %9053 = vst [vmem:[#allocation34_spill] sm:$0xff] %v8179_v30  ;;  %v8181_v13 = vpop.eup %4902  ;;  %4922 = vpow2.f32 %v3774_v56  ;;  %v8201_v56 = vmul.f32 %v4163_v22, %v7539_v31  ;;  %v4227_v0 = vmul.f32 %v4163_v22, %v8921_v5  ;;  %v4228_v34 = vmul.f32 %v4163_v22, %v6982_v51 }
 0x2e6   : > { %9054 = vst [vmem:[#allocation35_spill] sm:$0xff] %v8184_v36  ;;  %9055 = vst [vmem:[#allocation36_spill] sm:$0xff] %v8187_v12  ;;  %v8192_v44 = vpop.eup %4904  ;;  %4924 = vpow2.f32 %v3776_v1  ;;  %v3780_v1 = vpop.permute.xlu0 %3779  ;;  %v4229_v14 = vmul.f32 %v4163_v22, %v7488_v43  ;;  %v4230_v36 = vmul.f32 %v4163_v22, %v7559_v53 }
 0x2e7   : > { %v8203_v38 = vpop.eup %4906  ;;  %4926 = vpow2.f32 %v4063_v27  ;;  %v8223_v30 = vadd.f32 %v4227_v0, %v8066_v17  ;;  %v8228_v47 = vadd.f32 %v4228_v34, %v8069_v16  ;;  %v3794_v11 = vmul.f32 %v8125_v20, %v3780_v1  ;;  %v9056_v16 = vld [vmem:[#allocation46_spill] sm:$0xff] }
 0x2e8   : > { %v8209_v12 = vpop.eup %4908  ;;  %4928 = vpow2.f32 %v4065_v3  ;;  %v3795_v31 = vmul.f32 %v8129_v54, %v3780_v1  ;;  %v8238_v22 = vadd.f32 %v4230_v36, %v8075_v6  ;;  %v3796_v17 = vmul.f32 %v8133_v41, %v3780_v1  ;;  %v9057_v54 = vld [vmem:[#allocation48_spill] sm:$0xff]  ;;  %v9062_v6 = vld [vmem:[#allocation50_spill] sm:$0xff]  ;;  %v9063_v41 = vld [vmem:[#allocation53_spill] sm:$0xff] }
 0x2e9   : > { %v8218_v27 = vpop.eup %4910  ;;  %4930 = vpow2.f32 %v4067_v23  ;;  %v8235_v23 = vadd.f32 %v4229_v14, %v8072_v63  ;;  %v3797_v20 = vmul.f32 %v8138_v59, %v3780_v1  ;;  %v9058_v0 = vsub.f32 %v9056_v16, %v9057_v54  ;;  %v9066_v59 = vld [vmem:[#allocation58_spill] sm:$0xff] }
 0x2ea   : > { %v8225_v3 = vpop.eup %4912  ;;  %4932 = vpow2.f32 %v4069_v49  ;;  %v9064_v36 = vsub.f32 %v9062_v6, %v9063_v41  ;;  %v3939_v32 = vmul.f32 %v9066_v59, %v3795_v31  ;;  %v9075_v6 = vld [vmem:[#allocation77_spill] sm:$0xff] }
 0x2eb   : > { %v8232_v7 = vpop.eup %4914  ;;  %4934 = vpow2.f32 %v3762_v29  ;;  %v3906_v34 = vmul.f32 %v9058_v0, %v3794_v11  ;;  %v9059_v29 = vld [vmem:[#allocation47_spill] sm:$0xff]  ;;  %v9082_v59 = vld [vmem:[#allocation25_spill] sm:$0xff] }
 0x2ec   : > { %v8241_v49 = vpop.eup %4916  ;;  %4936 = vpow2.f32 %v8135_v33  ;;  %v9061_v63 = vsub.f32 %v9059_v29, %v9060_v35  ;;  %v3908_v21 = vmul.f32 %v9064_v36, %v3796_v17  ;;  %v9065_v33 = vld [vmem:[#allocation57_spill] sm:$0xff]  ;;  %v9067_v35 = vld [vmem:[#allocation56_spill] sm:$0xff]  ;;  %3955 = vst [vmem:[%s8277_s7 + $0x8] sm:$0xff] %v3939_v32  ;;  %v8293_v32 = vmul.f32 %v4173_v57, %v7873_v26  ;;  %v9078_v26 = vld [vmem:[#allocation66_spill] sm:$0xff] }
 0x2ed   : > { %v8251_v45 = vpop.eup %4918  ;;  %4938 = vpow2.f32 %v8140_v2  ;;  %v3938_v37 = vmul.f32 %v9065_v33, %v3794_v11  ;;  %v9068_v54 = vsub.f32 %v8998_v9, %v9067_v35  ;;  %3922 = vst [vmem:[%s8267_s4] sm:$0xff] %v3906_v34  ;;  %v9069_v2 = vld [vmem:[#allocation59_spill] sm:$0xff]  ;;  %v4071_v9 = vmul.f32 %v8145_v39, %v3780_v1 }
 0x2ee   : > { %v3907_v14 = vmul.f32 %v9061_v63, %v3795_v31  ;;  %v8259_v16 = vpop.eup %4920  ;;  %4940 = vpow2.f32 %v8142_v52  ;;  %v3940_v11 = vmul.f32 %v9069_v2, %v3796_v17  ;;  %v9070_v31 = vld [vmem:[#allocation60_spill] sm:$0xff]  ;;  %3924 = vst [vmem:[%s8267_s4 + $0x10] sm:$0xff] %v3908_v21  ;;  %v4072_v52 = vmul.f32 %v8151_v62, %v3780_v1 }
 0x2ef   : > { %v3909_v0 = vmul.f32 %v9068_v54, %v3797_v20  ;;  %v3941_v29 = vmul.f32 %v9070_v31, %v3797_v20  ;;  %v4923_v63 = vpop.eup %4922  ;;  %4942 = vpow2.f32 %v8149_v46  ;;  %3954 = vst [vmem:[%s8277_s7] sm:$0xff] %v3938_v37  ;;  %v4073_v17 = vmul.f32 %v8161_v15, %v3780_v1  ;;  %v9072_v21 = vld [vmem:[#allocation28_spill] sm:$0xff]  ;;  %v9073_v15 = vld [vmem:[#allocation63_spill] sm:$0xff] }
 0x2f0   : > { %3923 = vst [vmem:[%s8267_s4 + $0x8] sm:$0xff] %v3907_v14  ;;  %v4925_v20 = vpop.eup %4924  ;;  %4944 = vpow2.f32 %v8153_v10  ;;  %3956 = vst [vmem:[%s8277_s7 + $0x10] sm:$0xff] %v3940_v11  ;;  %v4074_v46 = vmul.f32 %v8170_v40, %v3780_v1  ;;  %v8290_v37 = vmul.f32 %v4173_v57, %v7865_v55  ;;  %v9071_v62 = vsub.f32 %v7895_v4, %v7880_v50  ;;  %v9076_v40 = vld [vmem:[#allocation39_spill] sm:$0xff]  ;;  %v9081_v50 = vld [vmem:[#allocation65_spill] sm:$0xff] }
 0x2f1   : > { %3925 = vst [vmem:[%s8267_s4 + $0x18] sm:$0xff] %v3909_v0  ;;  %3957 = vst [vmem:[%s8277_s7 + $0x18] sm:$0xff] %v3941_v29  ;;  %v4927_v39 = vpop.eup %4926  ;;  %4946 = vpow2.f32 %v8163_v8  ;;  %v9074_v34 = vsub.f32 %v9072_v21, %v9073_v15  ;;  %v9077_v1 = vsub.f32 %v9075_v6, %v9076_v40  ;;  %v9079_v8 = vld [vmem:[#allocation72_spill] sm:$0xff]  ;;  %v4288_v4 = vmul.f32 %v9081_v50, %v4071_v9  ;;  %v9083_v0 = vld [vmem:[#allocation23_spill] sm:$0xff] }
 0x2f2   : > { %v4255_v10 = vmul.f32 %v9071_v62, %v4071_v9  ;;  %v4929_v41 = vpop.eup %4928  ;;  %4948 = vpow2.f32 %v8165_v18  ;;  %v9080_v36 = vsub.f32 %v9078_v26, %v9079_v8  ;;  %v4289_v35 = vmul.f32 %v9082_v59, %v4072_v52  ;;  %v9084_v11 = vld [vmem:[#allocation67_spill] sm:$0xff]  ;;  %v9085_v29 = vld [vmem:[#allocation44_spill] sm:$0xff]  ;;  %v9086_v62 = vld [vmem:[#allocation70_spill] sm:$0xff] }
 0x2f3   : > { %v4256_v14 = vmul.f32 %v9074_v34, %v4072_v52  ;;  %v4257_v55 = vmul.f32 %v9077_v1, %v4073_v17  ;;  %v4931_v54 = vpop.eup %4930  ;;  %v4290_v2 = vmul.f32 %v9083_v0, %v4073_v17  ;;  %v4291_v31 = vmul.f32 %v9084_v11, %v4074_v46  ;;  %4629 = vst [vmem:[%s8277_s7 + $0x20] sm:$0xff] %v4288_v4  ;;  %v9087_v9 = vld [vmem:[#allocation40_spill] sm:$0xff]  ;;  %v9088_v34 = vld [vmem:[#allocation62_spill] sm:$0xff]  ;;  %v9090_v40 = vld [vmem:[#allocation71_spill] sm:$0xff] }
 0x2f4   : > { %v4258_v33 = vmul.f32 %v9080_v36, %v4074_v46  ;;  %4613 = vst [vmem:[%s8267_s4 + $0x20] sm:$0xff] %v4255_v10  ;;  %v4189_v18 = vmul.f32 %v4173_v57, %v9085_v29  ;;  %v4190_v21 = vmul.f32 %v4173_v57, %v9086_v62  ;;  %v4933_v15 = vpop.eup %4932  ;;  %4630 = vst [vmem:[%s8277_s7 + $0x28] sm:$0xff] %v4289_v35  ;;  %v9091_v46 = vld [vmem:[#allocation87_spill] sm:$0xff]  ;;  %v9092_v8 = vld [vmem:[#allocation88_spill] sm:$0xff] }
 0x2f5   : > { %4614 = vst [vmem:[%s8267_s4 + $0x28] sm:$0xff] %v4256_v14  ;;  %4615 = vst [vmem:[%s8267_s4 + $0x30] sm:$0xff] %v4257_v55  ;;  %v4235_v52 = vmul.f32 %v4173_v57, %v9087_v9  ;;  %v4236_v10 = vmul.f32 %v4173_v57, %v9088_v34  ;;  %v9089_v14 = vld [vmem:[#allocation74_spill] sm:$0xff]  ;;  %v4238_v1 = vmul.f32 %v4173_v57, %v9090_v40  ;;  %v3792_v55 = vpop.permute.xlu0 %3791  ;;  %v8325_v17 = vpop.eup %4934  ;;  %v9095_v0 = vld [vmem:[#allocation91_spill] sm:$0xff] }
 0x2f6   : > { %4616 = vst [vmem:[%s8267_s4 + $0x38] sm:$0xff] %v4258_v33  ;;  %v4237_v6 = vmul.f32 %v4173_v57, %v9089_v14  ;;  %4631 = vst [vmem:[%s8277_s7 + $0x30] sm:$0xff] %v4290_v2  ;;  %v4203_v26 = vsub.f32 %v9091_v46, %v8290_v37  ;;  %v4204_v36 = vsub.f32 %v9092_v8, %v8293_v32  ;;  %v9093_v33 = vld [vmem:[#allocation89_spill] sm:$0xff]  ;;  %v9094_v4 = vld [vmem:[#allocation90_spill] sm:$0xff]  ;;  %v8335_v35 = vpop.eup %4936 }
 0x2f7   : > { %4632 = vst [vmem:[%s8277_s7 + $0x38] sm:$0xff] %v4291_v31  ;;  %v4205_v50 = vsub.f32 %v9093_v33, %v4189_v18  ;;  %v4206_v59 = vsub.f32 %v9094_v4, %v4190_v21  ;;  %v4251_v11 = vadd.f32 %v4235_v52, %v9095_v0  ;;  %v9096_v57 = vld [vmem:[#allocation92_spill] sm:$0xff]  ;;  %v9097_v62 = vld [vmem:[#allocation93_spill] sm:$0xff]  ;;  %v9098_v2 = vld [vmem:[#allocation94_spill] sm:$0xff]  ;;  %v8341_v60 = vpop.eup %4938  ;;  %v3806_v37 = vmul.f32 %v8251_v45, %v3792_v55 }
 0x2f8   : > { %v4252_v29 = vadd.f32 %v4236_v10, %v9096_v57  ;;  %v4253_v42 = vadd.f32 %v4237_v6, %v9097_v62  ;;  %v4254_v31 = vadd.f32 %v4238_v1, %v9098_v2  ;;  %v3807_v32 = vmul.f32 %v8259_v16, %v3792_v55  ;;  %v8345_v8 = vpop.eup %4940  ;;  %v9100_v1 = vld [vmem:[#allocation64_spill] sm:$0xff] }
 0x2f9   : > { %v3808_v46 = vmul.f32 %v4923_v63, %v3792_v55  ;;  %v3809_v18 = vmul.f32 %v4925_v20, %v3792_v55  ;;  %v4083_v21 = vmul.f32 %v4927_v39, %v3792_v55  ;;  %v4084_v33 = vmul.f32 %v4929_v41, %v3792_v55  ;;  %v8347_v6 = vpop.eup %4942  ;;  %v9102_v16 = vld [vmem:[#allocation68_spill] sm:$0xff]  ;;  %v9106_v41 = vld [vmem:[#allocation54_spill] sm:$0xff] }
 0x2fa   : > { %v4085_v52 = vmul.f32 %v4931_v54, %v3792_v55  ;;  %v4086_v10 = vmul.f32 %v4933_v15, %v3792_v55  ;;  %9099 = vst [vmem:[#allocation46_spill] sm:$0xff] %v8347_v6  ;;  %v9101_v4 = vsub.f32 %v9087_v9, %v9100_v1  ;;  %v9103_v63 = vsub.f32 %v9088_v34, %v9102_v16  ;;  %v9104_v0 = vld [vmem:[#allocation20_spill] sm:$0xff]  ;;  %v8361_v15 = vpop.eup %4944  ;;  %v9108_v55 = vld [vmem:[#allocation55_spill] sm:$0xff]  ;;  %v9109_v6 = vld [vmem:[#allocation26_spill] sm:$0xff] }
 0x2fb   : > { %v9105_v39 = vsub.f32 %v9089_v14, %v9104_v0  ;;  %v9107_v54 = vsub.f32 %v9090_v40, %v9106_v41  ;;  %v3950_v2 = vmul.f32 %v9108_v55, %v3806_v37  ;;  %v3951_v9 = vmul.f32 %v9109_v6, %v3807_v32  ;;  %v9110_v1 = vld [vmem:[#allocation24_spill] sm:$0xff]  ;;  %v3784_v14 = vpop.permute.xlu1 %3783  ;;  %v9121_v41 = vld [vmem:[#allocation42_spill] sm:$0xff] }
 0x2fc   : > { %v3918_v45 = vmul.f32 %v9101_v4, %v3806_v37  ;;  %v3919_v20 = vmul.f32 %v9103_v63, %v3807_v32  ;;  %v3952_v34 = vmul.f32 %v9110_v1, %v3808_v46  ;;  %v9111_v4 = vld [vmem:[#allocation52_spill] sm:$0xff]  ;;  %v8367_v63 = vpop.eup %4946  ;;  %v4267_v40 = vmul.f32 %v4203_v26, %v4083_v21 }
 0x2fd   : > { %v3920_v57 = vmul.f32 %v9105_v39, %v3808_v46  ;;  %v3921_v62 = vmul.f32 %v9107_v54, %v3809_v18  ;;  %v3953_v16 = vmul.f32 %v9111_v4, %v3809_v18  ;;  %v4268_v37 = vmul.f32 %v4204_v36, %v4084_v33  ;;  %v8373_v0 = vpop.eup %4948  ;;  %3966 = vst [vmem:[%s8277_s7 + $0xc0] sm:$0xff] %v3950_v2  ;;  %v9118_v39 = vld [vmem:[#allocation19_spill] sm:$0xff] }
 0x2fe   : > { %3934 = vst [vmem:[%s8267_s4 + $0xc0] sm:$0xff] %v3918_v45  ;;  %3935 = vst [vmem:[%s8267_s4 + $0xc8] sm:$0xff] %v3919_v20  ;;  %v4269_v32 = vmul.f32 %v4205_v50, %v4085_v52  ;;  %v4270_v6 = vmul.f32 %v4206_v59, %v4086_v10  ;;  %v4300_v46 = vmul.f32 %v4251_v11, %v4083_v21  ;;  %v9122_v54 = vld [vmem:[#allocation43_spill] sm:$0xff] }
 0x2ff   : > { %3936 = vst [vmem:[%s8267_s4 + $0xd0] sm:$0xff] %v3920_v57  ;;  %3937 = vst [vmem:[%s8267_s4 + $0xd8] sm:$0xff] %v3921_v62  ;;  %v4301_v18 = vmul.f32 %v4252_v29, %v4084_v33  ;;  %v4302_v45 = vmul.f32 %v4253_v42, %v4085_v52  ;;  %v4303_v20 = vmul.f32 %v4254_v31, %v4086_v10  ;;  %v9114_v31 = vld [vmem:[#allocation76_spill] sm:$0xff]  ;;  %v9120_v57 = vld [vmem:[#allocation17_spill] sm:$0xff]  ;;  %v3788_v2 = vpop.permute.xlu1 %3787 }
 0x300   : > { %3967 = vst [vmem:[%s8277_s7 + $0xc8] sm:$0xff] %v3951_v9  ;;  %3968 = vst [vmem:[%s8277_s7 + $0xd0] sm:$0xff] %v3952_v34  ;;  %v3798_v26 = vmul.f32 %v8181_v13, %v3784_v14  ;;  %v3799_v36 = vmul.f32 %v8192_v44, %v3784_v14  ;;  %v3800_v50 = vmul.f32 %v8203_v38, %v3784_v14  ;;  %v9112_v38 = vld [vmem:[#allocation73_spill] sm:$0xff]  ;;  %v9116_v52 = vld [vmem:[#allocation16_spill] sm:$0xff] }
 0x301   : > { %3969 = vst [vmem:[%s8277_s7 + $0xd8] sm:$0xff] %v3953_v16  ;;  %4625 = vst [vmem:[%s8267_s4 + $0xe0] sm:$0xff] %v4267_v40  ;;  %v3801_v59 = vmul.f32 %v8209_v12, %v3784_v14  ;;  %v4075_v42 = vmul.f32 %v8218_v27, %v3784_v14  ;;  %v4076_v11 = vmul.f32 %v8225_v3, %v3784_v14 }
 0x302   : > { %4626 = vst [vmem:[%s8267_s4 + $0xe8] sm:$0xff] %v4268_v37  ;;  %4627 = vst [vmem:[%s8267_s4 + $0xf0] sm:$0xff] %v4269_v32  ;;  %v4077_v13 = vmul.f32 %v8232_v7, %v3784_v14  ;;  %v4078_v44 = vmul.f32 %v8241_v49, %v3784_v14  ;;  %v9113_v29 = vsub.f32 %v8921_v5, %v9112_v38  ;;  %v9132_v37 = vld [vmem:[#allocation38_spill] sm:$0xff]  ;;  %v9133_v32 = vld [vmem:[#allocation45_spill] sm:$0xff] }
 0x303   : > { %4628 = vst [vmem:[%s8267_s4 + $0xf8] sm:$0xff] %v4270_v6  ;;  %4641 = vst [vmem:[%s8277_s7 + $0xe0] sm:$0xff] %v4300_v46  ;;  %v9115_v21 = vsub.f32 %v6982_v51, %v9114_v31  ;;  %v9117_v10 = vsub.f32 %v7488_v43, %v9116_v52  ;;  %v9119_v3 = vsub.f32 %v7559_v53, %v9118_v39  ;;  %v9123_v51 = vld [vmem:[#allocation21_spill] sm:$0xff]  ;;  %v9144_v38 = vld [vmem:[#allocation78_spill] sm:$0xff] }
 0x304   : > { %4642 = vst [vmem:[%s8277_s7 + $0xe8] sm:$0xff] %v4301_v18  ;;  %4643 = vst [vmem:[%s8277_s7 + $0xf0] sm:$0xff] %v4302_v45  ;;  %v3910_v12 = vmul.f32 %v9113_v29, %v3798_v26  ;;  %v3942_v49 = vmul.f32 %v9120_v57, %v3798_v26  ;;  %v3943_v5 = vmul.f32 %v9121_v41, %v3799_v36  ;;  %v9135_v18 = vld [vmem:[#allocation61_spill] sm:$0xff]  ;;  %v9136_v45 = vld [vmem:[#allocation75_spill] sm:$0xff] }
 0x305   : > { %4644 = vst [vmem:[%s8277_s7 + $0xf8] sm:$0xff] %v4303_v20  ;;  %v3911_v33 = vmul.f32 %v9115_v21, %v3799_v36  ;;  %v3912_v27 = vmul.f32 %v9117_v10, %v3800_v50  ;;  %v3913_v7 = vmul.f32 %v9119_v3, %v3801_v59  ;;  %v3944_v62 = vmul.f32 %v9122_v54, %v3800_v50  ;;  %v9139_v36 = vld [vmem:[#allocation22_spill] sm:$0xff]  ;;  %v9146_v31 = vld [vmem:[#allocation79_spill] sm:$0xff]  ;;  %v9148_v52 = vld [vmem:[#allocation80_spill] sm:$0xff] }
 0x306   : > { %v3945_v55 = vmul.f32 %v9123_v51, %v3801_v59  ;;  %3926 = vst [vmem:[%s8267_s4 + $0x40] sm:$0xff] %v3910_v12  ;;  %v9124_v43 = vsub.f32 %v8054_v25, %v8190_v61  ;;  %v9125_v9 = vsub.f32 %v8057_v58, %v8195_v24  ;;  %v9126_v34 = vsub.f32 %v8060_v19, %v8198_v28  ;;  %v9145_v12 = vld [vmem:[#allocation29_spill] sm:$0xff]  ;;  %v9152_v57 = vld [vmem:[#allocation82_spill] sm:$0xff]  ;;  %v9153_v41 = vld [vmem:[#allocation83_spill] sm:$0xff] }
 0x307   : > { %3927 = vst [vmem:[%s8267_s4 + $0x48] sm:$0xff] %v3911_v33  ;;  %3928 = vst [vmem:[%s8267_s4 + $0x50] sm:$0xff] %v3912_v27  ;;  %v9127_v16 = vsub.f32 %v8063_v48, %v8201_v56  ;;  %v4292_v25 = vmul.f32 %v8223_v30, %v4075_v42  ;;  %v4293_v58 = vmul.f32 %v8228_v47, %v4076_v11  ;;  %v9128_v56 = vld [vmem:[#allocation46_spill] sm:$0xff]  ;;  %v9149_v27 = vld [vmem:[#allocation31_spill] sm:$0xff] }
 0x308   : > { %3929 = vst [vmem:[%s8267_s4 + $0x58] sm:$0xff] %v3913_v7  ;;  %v4259_v53 = vmul.f32 %v9124_v43, %v4075_v42  ;;  %v4260_v1 = vmul.f32 %v9125_v9, %v4076_v11  ;;  %v4261_v4 = vmul.f32 %v9126_v34, %v4077_v13  ;;  %3958 = vst [vmem:[%s8277_s7 + $0x40] sm:$0xff] %v3942_v49  ;;  %v9142_v42 = vld [vmem:[#allocation27_spill] sm:$0xff]  ;;  %v9147_v33 = vld [vmem:[#allocation30_spill] sm:$0xff] }
 0x309   : > { %v4262_v14 = vmul.f32 %v9127_v16, %v4078_v44  ;;  %3959 = vst [vmem:[%s8277_s7 + $0x48] sm:$0xff] %v3943_v5  ;;  %3960 = vst [vmem:[%s8277_s7 + $0x50] sm:$0xff] %v3944_v62  ;;  %v4294_v61 = vmul.f32 %v8235_v23, %v4077_v13  ;;  %v4295_v19 = vmul.f32 %v8238_v22, %v4078_v44  ;;  %v9143_v13 = vld [vmem:[#allocation51_spill] sm:$0xff]  ;;  %v9150_v39 = vld [vmem:[#allocation81_spill] sm:$0xff] }
 0x30a   : > { %3961 = vst [vmem:[%s8277_s7 + $0x58] sm:$0xff] %v3945_v55  ;;  %4617 = vst [vmem:[%s8267_s4 + $0x60] sm:$0xff] %v4259_v53  ;;  %v3802_v48 = vmul.f32 %v8325_v17, %v3788_v2  ;;  %v3803_v24 = vmul.f32 %v8335_v35, %v3788_v2  ;;  %v3804_v28 = vmul.f32 %v8341_v60, %v3788_v2  ;;  %v9129_v60 = vld [vmem:[#allocation18_spill] sm:$0xff]  ;;  %v9130_v35 = vld [vmem:[#allocation69_spill] sm:$0xff] }
 0x30b   : > { %4618 = vst [vmem:[%s8267_s4 + $0x68] sm:$0xff] %v4260_v1  ;;  %4619 = vst [vmem:[%s8267_s4 + $0x70] sm:$0xff] %v4261_v4  ;;  %v3805_v30 = vmul.f32 %v8345_v8, %v3788_v2  ;;  %v4079_v47 = vmul.f32 %v9128_v56, %v3788_v2  ;;  %v4080_v23 = vmul.f32 %v8361_v15, %v3788_v2  ;;  %v9138_v15 = vld [vmem:[#allocation37_spill] sm:$0xff]  ;;  %v9151_v7 = vld [vmem:[#allocation32_spill] sm:$0xff] }
 0x30c   : > { %4620 = vst [vmem:[%s8267_s4 + $0x78] sm:$0xff] %v4262_v14  ;;  %4633 = vst [vmem:[%s8277_s7 + $0x60] sm:$0xff] %v4292_v25  ;;  %v4081_v22 = vmul.f32 %v8367_v63, %v3788_v2  ;;  %v4082_v17 = vmul.f32 %v8373_v0, %v3788_v2  ;;  %v9131_v8 = vsub.f32 %v9129_v60, %v9130_v35  ;;  %v9141_v0 = vld [vmem:[#allocation41_spill] sm:$0xff]  ;;  %v9155_v62 = vld [vmem:[#allocation84_spill] sm:$0xff] }
 0x30d   : > { %4634 = vst [vmem:[%s8277_s7 + $0x68] sm:$0xff] %v4293_v58  ;;  %4635 = vst [vmem:[%s8277_s7 + $0x70] sm:$0xff] %v4294_v61  ;;  %v9134_v6 = vsub.f32 %v9132_v37, %v9133_v32  ;;  %v9137_v20 = vsub.f32 %v9135_v18, %v9136_v45  ;;  %v9140_v50 = vsub.f32 %v9138_v15, %v9139_v36  ;;  %v9154_v5 = vld [vmem:[#allocation33_spill] sm:$0xff]  ;;  %v9156_v51 = vld [vmem:[#allocation34_spill] sm:$0xff] }
 0x30e   : > { %4636 = vst [vmem:[%s8277_s7 + $0x78] sm:$0xff] %v4295_v19  ;;  %v3914_v40 = vmul.f32 %v9131_v8, %v3802_v48  ;;  %v3946_v59 = vmul.f32 %v9141_v0, %v3802_v48  ;;  %v3947_v11 = vmul.f32 %v9142_v42, %v3803_v24  ;;  %v3948_v44 = vmul.f32 %v9143_v13, %v3804_v28  ;;  %v9157_v2 = vld [vmem:[#allocation85_spill] sm:$0xff]  ;;  %v9158_v43 = vld [vmem:[#allocation35_spill] sm:$0xff]  ;;  %v9159_v9 = vld [vmem:[#allocation86_spill] sm:$0xff] }
 0x30f   : > { %v3915_v46 = vmul.f32 %v9134_v6, %v3803_v24  ;;  %v3916_v26 = vmul.f32 %v9137_v20, %v3804_v28  ;;  %v3917_v63 = vmul.f32 %v9140_v50, %v3805_v30  ;;  %v3949_v29 = vmul.f32 %v9144_v38, %v3805_v30  ;;  %v9160_v1 = vld [vmem:[#allocation36_spill] sm:$0xff] }
 0x310   : > { %3930 = vst [vmem:[%s8267_s4 + $0x80] sm:$0xff] %v3914_v40  ;;  %v4199_v21 = vsub.f32 %v9146_v31, %v9145_v12  ;;  %v4200_v10 = vsub.f32 %v9148_v52, %v9147_v33  ;;  %v4201_v3 = vsub.f32 %v9150_v39, %v9149_v27  ;;  %v4202_v49 = vsub.f32 %v9152_v57, %v9151_v7 }
 0x311   : > { %3931 = vst [vmem:[%s8267_s4 + $0x88] sm:$0xff] %v3915_v46  ;;  %3932 = vst [vmem:[%s8267_s4 + $0x90] sm:$0xff] %v3916_v26  ;;  %v4247_v54 = vadd.f32 %v9154_v5, %v9153_v41  ;;  %v4248_v55 = vadd.f32 %v9156_v51, %v9155_v62  ;;  %v4249_v53 = vadd.f32 %v9158_v43, %v9157_v2 }
 0x312   : > { %3933 = vst [vmem:[%s8267_s4 + $0x98] sm:$0xff] %v3917_v63  ;;  %3962 = vst [vmem:[%s8277_s7 + $0x80] sm:$0xff] %v3946_v59  ;;  %v4250_v34 = vadd.f32 %v9160_v1, %v9159_v9  ;;  %v4263_v4 = vmul.f32 %v4199_v21, %v4079_v47  ;;  %v4264_v16 = vmul.f32 %v4200_v10, %v4080_v23 }
 0x313   : > { %3963 = vst [vmem:[%s8277_s7 + $0x88] sm:$0xff] %v3947_v11  ;;  %3964 = vst [vmem:[%s8277_s7 + $0x90] sm:$0xff] %v3948_v44  ;;  %v4265_v14 = vmul.f32 %v4201_v3, %v4081_v22  ;;  %v4266_v25 = vmul.f32 %v4202_v49, %v4082_v17  ;;  %v4296_v58 = vmul.f32 %v4247_v54, %v4079_v47 }
 0x314   : > { %3965 = vst [vmem:[%s8277_s7 + $0x98] sm:$0xff] %v3949_v29  ;;  %v4297_v61 = vmul.f32 %v4248_v55, %v4080_v23  ;;  %v4298_v19 = vmul.f32 %v4249_v53, %v4081_v22  ;;  %v4299_v48 = vmul.f32 %v4250_v34, %v4082_v17  ;;  %4621 = vst [vmem:[%s8267_s4 + $0xa0] sm:$0xff] %v4263_v4 }
 0x315   : > { %4622 = vst [vmem:[%s8267_s4 + $0xa8] sm:$0xff] %v4264_v16  ;;  %4623 = vst [vmem:[%s8267_s4 + $0xb0] sm:$0xff] %v4265_v14 }
 0x316   : > { %4624 = vst [vmem:[%s8267_s4 + $0xb8] sm:$0xff] %v4266_v25  ;;  %4637 = vst [vmem:[%s8277_s7 + $0xa0] sm:$0xff] %v4296_v58 }
 0x317   : > { %4638 = vst [vmem:[%s8277_s7 + $0xa8] sm:$0xff] %v4297_v61  ;;  %4639 = vst [vmem:[%s8277_s7 + $0xb0] sm:$0xff] %v4298_v19 }
 0x318   : > { %4640 = vst [vmem:[%s8277_s7 + $0xb8] sm:$0xff] %v4299_v48 }
 0x319   : > { %5026 = shalt.err (!%p5023_p13)
}
 0x31a   : > { %s5027_s26 = scalar_lea.hbm %s8486_s30, 4096  ;;  %s5031_s7 = scalar_lea.hbm %s8594_s2, 8192 }
 0x31b   : > { %p5028_p7 = scmp.ne.s32.totalorder %s8486_s30, %s5027_s26  ;;  %p5032_p1 = scmp.lt.u32.totalorder %s8486_s30, %s8594_s2 }
 0x31c   : > { %p5033_p11 = scmp.lt.u32.totalorder %s5031_s7, %s5027_s26  ;;  %p5035_p9 = scmp.lt.u32.totalorder %s5027_s26, %s8486_s30 }
 0x31d   : > { %p5029_p3 = pnand %p5028_p7, %p9161_p10 }
 0x31e   : > { %p5034_p8 = por %p5033_p11, %p5032_p1 }
 0x31f   : > { %p5030_p12 = pneg %p5029_p3 }
 0x320   : > { %p5036_p2 = por %p5035_p9, %p5034_p8 }
 0x322   : > { %p5037_p4 = pnand %p5036_p2, %p5030_p12 }
 0x324   : > { %5040 = shalt.err (!%p5037_p4)
}
 0x325   : > { %s5133_s20 = smov 1024   ;;  %s5134_s27 = smov 64  }
 0x326   : > { %4730 = dma.vmem_to_hbm [thread:$0]  (%p9161_p10), %s8501_s29, 4096, %s8486_s30, %s4322_s9, %s5133_s20, %s5133_s20, %s5134_s27  }
 0x327   : > { %s4327_s6 = scalar_lea.sflag [#allocation11], %s5292_s11  ;;  %s5041_s28 = scalar_lea.vmem %s8510_s22, 4096 }
 0x328   : > { %p5042_p5 = scmp.ne.s32.totalorder %s8510_s22, %s5041_s28  ;;  %s5135_s16 = smov [#allocation10]  }
 0x329   : > { %s5045_s5 = sshll.u32 %s5135_s16, 4  ;;  %s5046_s5 = int_to_ptr.vmem [resolvable:$false] %s5045_s5 }
 0x32a   : > { %p5043_p0 = pnand %p5042_p5, %p9161_p10  ;;  %s5047_s17 = scalar_lea.vmem %s5046_s5, 8192 }
 0x32b   : > { %p5048_p13 = scmp.lt.s32.totalorder %s8510_s22, %s5046_s5  ;;  %p5049_p7 = scmp.lt.s32.totalorder %s5047_s17, %s5041_s28 }
 0x32c   : > { %p5044_p6 = pneg %p5043_p0 }
 0x32d   : > { %p5050_p3 = por %p5049_p7, %p5048_p13 }
 0x32f   : > { %p5051_p12 = pnand %p5050_p3, %p5044_p6 }
 0x331   : > { %5054 = shalt.err (!%p5051_p12)
}
 0x332   : > { %s5055_s29 = scalar_lea.hbm %s8508_s8, 4096  ;;  %s5059_s26 = scalar_lea.hbm %s8595_s3, 8192 }
 0x333   : > { %p5056_p1 = scmp.ne.s32.totalorder %s8508_s8, %s5055_s29  ;;  %p5060_p9 = scmp.lt.u32.totalorder %s8508_s8, %s8595_s3 }
 0x334   : > { %p5061_p2 = scmp.lt.u32.totalorder %s5059_s26, %s5055_s29  ;;  %p5063_p5 = scmp.lt.u32.totalorder %s5055_s29, %s8508_s8 }
 0x335   : > { %p5057_p11 = pnand %p5056_p1, %p9161_p10 }
 0x336   : > { %p5062_p4 = por %p5061_p2, %p5060_p9 }
 0x337   : > { %p5058_p8 = pneg %p5057_p11 }
 0x338   : > { %p5064_p0 = por %p5063_p5, %p5062_p4 }
 0x33a   : > { %p5065_p6 = pnand %p5064_p0, %p5058_p8 }
 0x33c   : > { %5068 = shalt.err (!%p5065_p6)
}
 0x33d   : > { %4731 = dma.vmem_to_hbm [thread:$0]  (%p9161_p10), %s8510_s22, 4096, %s8508_s8, %s4327_s6, %s5133_s20, %s5133_s20, %s5134_s27  }
 0x33e PF: > { %s4373_s7 = sand.u32 1, %s5103_s12   ;;  %p9162_p13 = scmp.ne.s32.totalorder %s8756_s25, 0 }
 0x33f   : > { %p9163_p7 = scmp.ge.s32.totalorder %s5115_s15, 2  ;;  %s4374_s10 = scalar_lea.sflag [#allocation6], %s4373_s7 }
 0x341   : > { %p4743_p3 = pnand %p9163_p7, %p9162_p13 }
 0x343   : > { %5094 = dma.done.wait (!%p4743_p3), %s4374_s10, 4096  }
 0x344   : > { %5096 = vsyncadd (!%p4743_p3), %s4374_s10, 4294963200  ;;  %s4383_s24 = scalar_lea.sflag [#allocation11], %s4373_s7 }
 0x345   : > { %5098 = dma.done.wait (!%p4743_p3), %s4383_s24, 4096  }
 0x346   : > { %5100 = vsyncadd (!%p4743_p3), %s4383_s24, 4294963200  ;;  %p21_p10 = scmp.ge.s32.totalorder %s5181_s18, 4   ;;  %s9164_s12 = smov %s5107_s13 }
 0x347   : > { %s9165_s13 = smov %s5111_s14  ;;  %s9166_s14 = smov %s5193_s21 }
 0x348   : > { %s9167_s15 = smov %s5181_s18  ;;  %23 = sbr.rel (!%p21_p10) target bundleno = 8 (0x8), region = 97 }
 0x34f   :  { %4388 = vsyncpa [#allocation5], 1 }
 0x350   :  { %4390 = vsyncpa [#allocation5 + $0x1], 1 }
 0x351   :  { %4391 = vsyncpa [#allocation8], 1 }
 0x352   :  { %4392 = vsyncpa [#allocation6], 1 }
 0x353   :  { %4394 = vsyncpa [#allocation6 + $0x1], 1 }
 0x354   :  { %4395 = vsyncpa [#allocation11], 1 }
 0x355   :  { %4397 = vsyncpa [#allocation11 + $0x1], 1 }

</bundles_post_ra>
